<compile_context>
chip_gen: v5e
topology: v5e:2x2
jax: 0.10.0
libtpu: 0.0.40
codegen_flags: <defaults>
</compile_context>

<pallas_src>
import functools

import jax
import jax.numpy as jnp
from jax.experimental import pallas as pl
from jax.experimental.pallas import tpu as pltpu

EPS = 1e-5


def _layernorm(x, g, b):
    mu = jnp.mean(x, axis=-1, keepdims=True)
    xc = x - mu
    var = jnp.mean(xc * xc, axis=-1, keepdims=True)
    return xc * jax.lax.rsqrt(var + EPS) * g + b


# ----------------------------------------------------------------------------
# Fused kernel: positional add + all transformer layers + ln_final + EOT gather
# + text_projection + L2 normalization.  Grid = (B // TB, L).
# ----------------------------------------------------------------------------
def fused_kernel(eot_ref,                       # scalar-prefetch: (B,) int32 in SMEM
                 x_ref, pos_ref,
                 ln1g, ln1b, wqkv, bqkv, wo, bo,
                 ln2g, ln2b, wfc, bfc, wproj, bproj,
                 lnfg, lnfb, tproj,
                 feat_ref, nfeat_ref, x_acc, *, num_heads):
    bi = pl.program_id(0)
    l = pl.program_id(1)

    @pl.when(l == 0)
    def _():
        # x = prompts + positional_embedding, fused into layer 0.
        x_acc[...] = x_ref[...] + pos_ref[...]

    x = x_acc[...]                                  # (TB, S, D) f32 residual stream
    TB, S, D = x.shape
    H = num_heads
    hd = D // H
    scale = 1.0 / float(hd) ** 0.5

    # ---- multi-head causal self-attention (pre-LN), head-batched ----
    h = _layernorm(x, ln1g[0], ln1b[0])
    h2 = h.reshape(TB * S, D).astype(jnp.bfloat16)
    qkv = jnp.dot(h2, wqkv[0], preferred_element_type=jnp.float32) + bqkv[0]

    def split_heads(t):                             # (TB*S, D) -> (TB*H, S, hd)
        return (t.reshape(TB, S, H, hd)
                 .transpose(0, 2, 1, 3)
                 .reshape(TB * H, S, hd))

    q = split_heads(qkv[:, 0:D] * scale).astype(jnp.bfloat16)
    k = split_heads(qkv[:, D:2 * D]).astype(jnp.bfloat16)
    v = split_heads(qkv[:, 2 * D:3 * D]).astype(jnp.bfloat16)

    row = jax.lax.broadcasted_iota(jnp.int32, (S, S), 0)
    col = jax.lax.broadcasted_iota(jnp.int32, (S, S), 1)
    causal = (col <= row)[None]                     # (1, S, S)

    scores = jnp.einsum("bqd,bkd->bqk", q, k,
                        preferred_element_type=jnp.float32)          # (TB*H, S, S)
    scores = jnp.where(causal, scores, -1e30)
    scores = scores - jnp.max(scores, axis=-1, keepdims=True)
    p = jnp.exp(scores)
    p = p * pl.reciprocal(jnp.sum(p, axis=-1, keepdims=True), approx=True)
    ctx = jnp.einsum("bqk,bkd->bqd", p.astype(jnp.bfloat16), v,
                     preferred_element_type=jnp.float32)             # (TB*H, S, hd)
    ctx = (ctx.reshape(TB, H, S, hd)
              .transpose(0, 2, 1, 3)
              .reshape(TB * S, D))
    attn = jnp.dot(ctx.astype(jnp.bfloat16), wo[0],
                   preferred_element_type=jnp.float32) + bo[0]
    x = x + attn.reshape(TB, S, D)

    # ---- MLP with QuickGELU (as in CLIP); f32 VPU math (v5e-safe) ----
    h = _layernorm(x, ln2g[0], ln2b[0]).reshape(TB * S, D)
    hfc = jnp.dot(h.astype(jnp.bfloat16), wfc[0],
                  preferred_element_type=jnp.float32) + bfc[0]
    hfc = hfc * jax.nn.sigmoid(1.702 * hfc)
    mlp = jnp.dot(hfc.astype(jnp.bfloat16), wproj[0],
                  preferred_element_type=jnp.float32) + bproj[0]
    x = x + mlp.reshape(TB, S, D)

    x_acc[...] = x

    # ---- last layer: fused ln_final + EOT gather + text_projection + L2 ----
    @pl.when(l == pl.num_programs(1) - 1)
    def _():
        seq_iota = jax.lax.broadcasted_iota(jnp.int32, (S, 1), 0)    # (S, 1)
        rows = []
        for b in range(TB):                                          # TB is small/static
            eot_b = eot_ref[bi * TB + b]                             # SMEM scalar read
            mask = seq_iota == eot_b                                 # (S, 1) one-hot
            rows.append(jnp.sum(jnp.where(mask, x[b], 0.0),
                                axis=0, keepdims=True))              # (1, D)
        tok = jnp.concatenate(rows, axis=0)                          # (TB, D)
        tok = _layernorm(tok, lnfg[...], lnfb[...])
        feat = jnp.dot(tok.astype(jnp.bfloat16), tproj[...],
                       preferred_element_type=jnp.float32)           # (TB, E)
        inv_norm = jax.lax.rsqrt(jnp.sum(feat * feat, axis=-1, keepdims=True))
        E = feat.shape[-1]
        feat_ref[...] = feat.reshape(TB, 1, E).astype(feat_ref.dtype)
        nfeat_ref[...] = (feat * inv_norm).reshape(TB, 1, E).astype(nfeat_ref.dtype)


def text_encoder_forward(prompts, tokenized_prompts, params, num_heads, batch_tile):
    """TextEncoder.forward (raw features) + Custom_Clip.forward_txt (L2-normalized)."""
    prompts = prompts.astype(jnp.float32)                            # .type(self.dtype)
    B, S, D = prompts.shape
    L = params["w_qkv"].shape[0]
    E = params["text_projection"].shape[1]
    assert B % batch_tile == 0 and D % num_heads == 0

    eot_idx = jnp.argmax(tokenized_prompts, axis=-1).astype(jnp.int32)
    kern = functools.partial(fused_kernel, num_heads=num_heads)

    def layer_spec(arr):                            # stacked (L, ...) per-layer weight
        nd = arr.ndim
        return pl.BlockSpec((1,) + arr.shape[1:],
                            lambda b, l, eot, _nd=nd: (l,) + (0,) * (_nd - 1))

    def whole_spec(arr):                            # layer-invariant small weight
        nd = arr.ndim
        return pl.BlockSpec(arr.shape, lambda b, l, eot, _nd=nd: (0,) * _nd)

    # bf16 weights for the MXU; biases / LN params stay f32.
    inputs = (
        prompts,
        params["pos"],
        params["ln1_g"], params["ln1_b"],
        params["w_qkv"].astype(jnp.bfloat16), params["b_qkv"],
        params["w_out"].astype(jnp.bfloat16), params["b_out"],
        params["ln2_g"], params["ln2_b"],
        params["w_fc"].astype(jnp.bfloat16), params["b_fc"],
        params["w_proj"].astype(jnp.bfloat16), params["b_proj"],
        params["lnf_g"], params["lnf_b"],
        params["text_projection"].astype(jnp.bfloat16),
    )

    in_specs = (
        [pl.BlockSpec((batch_tile, S, D), lambda b, l, eot: (b, 0, 0)),   # prompts
         pl.BlockSpec((S, D), lambda b, l, eot: (0, 0))]                  # pos emb
        + [layer_spec(a) for a in inputs[2:14]]
        + [whole_spec(a) for a in inputs[14:]]
    )

    feat, nfeat = pl.pallas_call(
        kern,
        out_shape=(jax.ShapeDtypeStruct((B, 1, E), jnp.float32),
                   jax.ShapeDtypeStruct((B, 1, E), jnp.float32)),
        grid_spec=pltpu.PrefetchScalarGridSpec(
            num_scalar_prefetch=1,
            grid=(B // batch_tile, L),
            in_specs=in_specs,
            out_specs=[pl.BlockSpec((batch_tile, 1, E), lambda b, l, eot: (b, 0, 0)),
                       pl.BlockSpec((batch_tile, 1, E), lambda b, l, eot: (b, 0, 0))],
            scratch_shapes=[pltpu.VMEM((batch_tile, S, D), jnp.float32)]),
        compiler_params=pltpu.CompilerParams(
            dimension_semantics=("parallel", "arbitrary"),
            # explicit VMEM budget (v7x has 64 MiB physical VMEM); bf16 weights
            # double-buffered stay comfortably inside this.
            vmem_limit_bytes=48 * 1024 * 1024,
        ),
    )(eot_idx, *inputs)
    return feat.reshape(B, E), nfeat.reshape(B, E)


# ----------------------------------------------------------------------------
# Parameter init (deterministic, synthetic)
# ----------------------------------------------------------------------------
def init_params(key, num_layers, seq_len, d_model, num_heads, mlp_dim, embed_dim):
    L, D, F, E = num_layers, d_model, mlp_dim, embed_dim
    ks = jax.random.split(key, 10)
    std = 0.02
    return {
        "pos": std * jax.random.normal(ks[0], (seq_len, D), jnp.float32),
        "text_projection": std * jax.random.normal(ks[1], (D, E), jnp.float32),
        "lnf_g": jnp.ones((1, D), jnp.float32),
        "lnf_b": jnp.zeros((1, D), jnp.float32),
        "ln1_g": jnp.ones((L, 1, D), jnp.float32),
        "ln1_b": jnp.zeros((L, 1, D), jnp.float32),
        "w_qkv": std * jax.random.normal(ks[2], (L, D, 3 * D), jnp.float32),
        "b_qkv": std * jax.random.normal(ks[3], (L, 1, 3 * D), jnp.float32),
        "w_out": std * jax.random.normal(ks[4], (L, D, D), jnp.float32),
        "b_out": std * jax.random.normal(ks[5], (L, 1, D), jnp.float32),
        "ln2_g": jnp.ones((L, 1, D), jnp.float32),
        "ln2_b": jnp.zeros((L, 1, D), jnp.float32),
        "w_fc": std * jax.random.normal(ks[6], (L, D, F), jnp.float32),
        "b_fc": std * jax.random.normal(ks[7], (L, 1, F), jnp.float32),
        "w_proj": std * jax.random.normal(ks[8], (L, F, D), jnp.float32),
        "b_proj": std * jax.random.normal(ks[9], (L, 1, D), jnp.float32),
    }


# ----------------------------------------------------------------------------
# Pure-JAX reference (same math, f32 weights) for verification
# ----------------------------------------------------------------------------
def reference_forward(prompts, tokenized_prompts, params, num_heads):
    x = prompts.astype(jnp.float32) + params["pos"]
    B, S, D = x.shape
    H = num_heads
    hd = D // H
    L = params["w_qkv"].shape[0]
    causal = jnp.arange(S)[None, :] <= jnp.arange(S)[:, None]
    for l in range(L):
        h = _layernorm(x, params["ln1_g"][l], params["ln1_b"][l])
        qkv = h @ params["w_qkv"][l] + params["b_qkv"][l]
        q, k, v = qkv[..., :D], qkv[..., D:2 * D], qkv[..., 2 * D:]
        qh = q.reshape(B, S, H, hd).transpose(0, 2, 1, 3) / jnp.sqrt(hd)
        kh = k.reshape(B, S, H, hd).transpose(0, 2, 1, 3)
        vh = v.reshape(B, S, H, hd).transpose(0, 2, 1, 3)
        s = jnp.einsum("bhqd,bhkd->bhqk", qh, kh)
        s = jnp.where(causal[None, None], s, -1e30)
        a = jax.nn.softmax(s, axis=-1)
        o = jnp.einsum("bhqk,bhkd->bhqd", a, vh).transpose(0, 2, 1, 3).reshape(B, S, D)
        x = x + o @ params["w_out"][l] + params["b_out"][l]
        h = _layernorm(x, params["ln2_g"][l], params["ln2_b"][l])
        hfc = h @ params["w_fc"][l] + params["b_fc"][l]
        hfc = hfc * jax.nn.sigmoid(1.702 * hfc)
        x = x + hfc @ params["w_proj"][l] + params["b_proj"][l]
    x = _layernorm(x, params["lnf_g"], params["lnf_b"])
    eot = jnp.argmax(tokenized_prompts, axis=-1)
    feat = x[jnp.arange(B), eot] @ params["text_projection"]
    return feat, feat / jnp.linalg.norm(feat, axis=-1, keepdims=True)


if __name__ == "__main__":
    B, S, D = 4, 8, 128          # batch, seq, d_model  (lane-dense last dim)
    HEADS, LAYERS = 4, 2
    MLP, E = 4 * D, 128          # mlp hidden, projection (embed) dim
    TB = 2                       # batch rows per grid step (parallel axis extent = 2)

    key = jax.random.PRNGKey(0)
    kp, kt, kw = jax.random.split(key, 3)
    prompts = jax.random.normal(kp, (B, S, D), jnp.float32)
    tokenized_prompts = jax.random.randint(kt, (B, S), 0, 1000, jnp.int32)
    params = init_params(kw, LAYERS, S, D, HEADS, MLP, E)

    fwd = jax.jit(functools.partial(text_encoder_forward,
                                    num_heads=HEADS, batch_tile=TB))
    feat, feat_n = fwd(prompts, tokenized_prompts, params)
    feat = jax.block_until_ready(feat)
    feat_n = jax.block_until_ready(feat_n)

    ref, ref_n = reference_forward(prompts, tokenized_prompts, params, HEADS)
    assert feat.shape == (B, E) and feat_n.shape == (B, E)
    assert bool(jnp.allclose(feat, ref, rtol=2e-2, atol=2e-2)), "raw features mismatch"
    assert bool(jnp.allclose(feat_n, ref_n, rtol=2e-2, atol=2e-2)), "normalized mismatch"

    print("KERNEL_OK")
</pallas_src>

<mosaic_0001>
module attributes {stable_mosaic.version = 11 : i64} {
  func.func @fused_kernel(%arg0: i32, %arg1: i32, %arg2: memref<4xi32, #tpu.memory_space<smem>>, %arg3: memref<2x8x128xf32, #tpu.memory_space<vmem>>, %arg4: memref<8x128xf32, #tpu.memory_space<vmem>>, %arg5: memref<1x1x128xf32, #tpu.memory_space<vmem>>, %arg6: memref<1x1x128xf32, #tpu.memory_space<vmem>>, %arg7: memref<1x128x384xbf16, #tpu.memory_space<vmem>>, %arg8: memref<1x1x384xf32, #tpu.memory_space<vmem>>, %arg9: memref<1x128x128xbf16, #tpu.memory_space<vmem>>, %arg10: memref<1x1x128xf32, #tpu.memory_space<vmem>>, %arg11: memref<1x1x128xf32, #tpu.memory_space<vmem>>, %arg12: memref<1x1x128xf32, #tpu.memory_space<vmem>>, %arg13: memref<1x128x512xbf16, #tpu.memory_space<vmem>>, %arg14: memref<1x1x512xf32, #tpu.memory_space<vmem>>, %arg15: memref<1x512x128xbf16, #tpu.memory_space<vmem>>, %arg16: memref<1x1x128xf32, #tpu.memory_space<vmem>>, %arg17: memref<1x128xf32, #tpu.memory_space<vmem>>, %arg18: memref<1x128xf32, #tpu.memory_space<vmem>>, %arg19: memref<128x128xbf16, #tpu.memory_space<vmem>>, %arg20: memref<2x1x128xf32, #tpu.memory_space<vmem>>, %arg21: memref<2x1x128xf32, #tpu.memory_space<vmem>>, %arg22: memref<2x8x128xf32, #tpu.memory_space<vmem>>) attributes {dimension_semantics = [#tpu.dimension_semantics<parallel>, #tpu.dimension_semantics<arbitrary>], iteration_bounds = array<i64: 2, 2>, scalar_prefetch = 1 : i64, scratch_operands = 1 : i64, tpu.core_type = #tpu.core_type<tc>, window_params = [{transform_indices = @transform_0, window_bounds = array<i64: 2, 8, 128>}, {pipeline_mode = #tpu.pipeline_mode<synchronous>, transform_indices = @transform_1, window_bounds = array<i64: 8, 128>}, {transform_indices = @transform_2, window_bounds = array<i64: 1, 1, 128>}, {transform_indices = @transform_3, window_bounds = array<i64: 1, 1, 128>}, {transform_indices = @transform_4, window_bounds = array<i64: 1, 128, 384>}, {transform_indices = @transform_5, window_bounds = array<i64: 1, 1, 384>}, {transform_indices = @transform_6, window_bounds = array<i64: 1, 128, 128>}, {transform_indices = @transform_7, window_bounds = array<i64: 1, 1, 128>}, {transform_indices = @transform_8, window_bounds = array<i64: 1, 1, 128>}, {transform_indices = @transform_9, window_bounds = array<i64: 1, 1, 128>}, {transform_indices = @transform_10, window_bounds = array<i64: 1, 128, 512>}, {transform_indices = @transform_11, window_bounds = array<i64: 1, 1, 512>}, {transform_indices = @transform_12, window_bounds = array<i64: 1, 512, 128>}, {transform_indices = @transform_13, window_bounds = array<i64: 1, 1, 128>}, {pipeline_mode = #tpu.pipeline_mode<synchronous>, transform_indices = @transform_14, window_bounds = array<i64: 1, 128>}, {pipeline_mode = #tpu.pipeline_mode<synchronous>, transform_indices = @transform_15, window_bounds = array<i64: 1, 128>}, {pipeline_mode = #tpu.pipeline_mode<synchronous>, transform_indices = @transform_16, window_bounds = array<i64: 128, 128>}, {transform_indices = @transform_17, window_bounds = array<i64: 2, 1, 128>}, {transform_indices = @transform_18, window_bounds = array<i64: 2, 1, 128>}]} {
    %c0_i32 = arith.constant 0 : i32
    %0 = arith.cmpi eq, %arg1, %c0_i32 : i32
    %1 = arith.extui %0 : i1 to i32
    %c0_i32_0 = arith.constant 0 : i32
    %2 = arith.cmpi ne, %1, %c0_i32_0 : i32
    scf.if %2 {
      %c0_64 = arith.constant 0 : index
      %c0_65 = arith.constant 0 : index
      %c0_66 = arith.constant 0 : index
      %147 = vector.load %arg3[%c0_64, %c0_65, %c0_66] : memref<2x8x128xf32, #tpu.memory_space<vmem>>, vector<2x8x128xf32>
      %c0_67 = arith.constant 0 : index
      %c0_68 = arith.constant 0 : index
      %148 = vector.load %arg4[%c0_67, %c0_68] : memref<8x128xf32, #tpu.memory_space<vmem>>, vector<8x128xf32>
      %149 = vector.shape_cast %148 : vector<8x128xf32> to vector<1x8x128xf32>
      %150 = vector.broadcast %149 : vector<1x8x128xf32> to vector<2x8x128xf32>
      %151 = arith.addf %147, %150 : vector<2x8x128xf32>
      %c0_69 = arith.constant 0 : index
      %c0_70 = arith.constant 0 : index
      %c0_71 = arith.constant 0 : index
      %152 = vector.load %arg22[%c0_69, %c0_70, %c0_71] : memref<2x8x128xf32, #tpu.memory_space<vmem>>, vector<2x8x128xf32>
      tpu.vector_store %arg22[%c0_69, %c0_70, %c0_71], %151 {strides = array<i32>} : memref<2x8x128xf32, #tpu.memory_space<vmem>>, vector<2x8x128xf32>,
    } else {
    }
    %c0 = arith.constant 0 : index
    %c0_1 = arith.constant 0 : index
    %c0_2 = arith.constant 0 : index
    %3 = vector.load %arg22[%c0, %c0_1, %c0_2] : memref<2x8x128xf32, #tpu.memory_space<vmem>>, vector<2x8x128xf32>
    %c0_3 = arith.constant 0 : index
    %c0_4 = arith.constant 0 : index
    %c0_5 = arith.constant 0 : index
    %4 = vector.load %arg5[%c0_3, %c0_4, %c0_5] : memref<1x1x128xf32, #tpu.memory_space<vmem>>, vector<1x1x128xf32>
    %5 = vector.shape_cast %4 : vector<1x1x128xf32> to vector<1x128xf32>
    %c0_6 = arith.constant 0 : index
    %c0_7 = arith.constant 0 : index
    %c0_8 = arith.constant 0 : index
    %6 = vector.load %arg6[%c0_6, %c0_7, %c0_8] : memref<1x1x128xf32, #tpu.memory_space<vmem>>, vector<1x1x128xf32>
    %7 = vector.shape_cast %6 : vector<1x1x128xf32> to vector<1x128xf32>
    %cst = arith.constant dense<0.000000e+00> : vector<2x8xf32>
    %8 = vector.multi_reduction <add>, %3, %cst [2] : vector<2x8x128xf32> to vector<2x8xf32>
    %9 = vector.shape_cast %8 : vector<2x8xf32> to vector<2x8x1xf32>
    %cst_9 = arith.constant 1.280000e+02 : f32
    %10 = vector.broadcast %cst_9 : f32 to vector<2x8x1xf32>
    %11 = arith.divf %9, %10 : vector<2x8x1xf32>
    %12 = vector.broadcast %11 : vector<2x8x1xf32> to vector<2x8x128xf32>
    %13 = arith.subf %3, %12 : vector<2x8x128xf32>
    %14 = arith.mulf %13, %13 : vector<2x8x128xf32>
    %cst_10 = arith.constant dense<0.000000e+00> : vector<2x8xf32>
    %15 = vector.multi_reduction <add>, %14, %cst_10 [2] : vector<2x8x128xf32> to vector<2x8xf32>
    %16 = vector.shape_cast %15 : vector<2x8xf32> to vector<2x8x1xf32>
    %cst_11 = arith.constant 1.280000e+02 : f32
    %17 = vector.broadcast %cst_11 : f32 to vector<2x8x1xf32>
    %18 = arith.divf %16, %17 : vector<2x8x1xf32>
    %cst_12 = arith.constant 9.99999974E-6 : f32
    %19 = vector.broadcast %cst_12 : f32 to vector<2x8x1xf32>
    %20 = arith.addf %18, %19 : vector<2x8x1xf32>
    %21 = math.rsqrt %20 : vector<2x8x1xf32>
    %22 = vector.broadcast %21 : vector<2x8x1xf32> to vector<2x8x128xf32>
    %23 = arith.mulf %13, %22 : vector<2x8x128xf32>
    %24 = vector.shape_cast %5 : vector<1x128xf32> to vector<1x1x128xf32>
    %25 = vector.broadcast %24 : vector<1x1x128xf32> to vector<2x8x128xf32>
    %26 = arith.mulf %23, %25 : vector<2x8x128xf32>
    %27 = vector.shape_cast %7 : vector<1x128xf32> to vector<1x1x128xf32>
    %28 = vector.broadcast %27 : vector<1x1x128xf32> to vector<2x8x128xf32>
    %29 = arith.addf %26, %28 : vector<2x8x128xf32>
    %30 = vector.shape_cast %29 : vector<2x8x128xf32> to vector<16x128xf32>
    %31 = arith.truncf %30 : vector<16x128xf32> to vector<16x128xbf16>
    %c0_13 = arith.constant 0 : index
    %c0_14 = arith.constant 0 : index
    %c0_15 = arith.constant 0 : index
    %32 = vector.load %arg7[%c0_13, %c0_14, %c0_15] : memref<1x128x384xbf16, #tpu.memory_space<vmem>>, vector<1x128x384xbf16>
    %33 = vector.shape_cast %32 : vector<1x128x384xbf16> to vector<128x384xbf16>
    %cst_16 = arith.constant dense<0.000000e+00> : vector<16x384xf32>
    %34 = tpu.matmul %31, %33, %cst_16 {dimension_numbers = #tpu.dot_dimension_numbers<[1], [0], [0], [1], [0, 0, 1, 1], [], []>} : vector<16x128xbf16>, vector<128x384xbf16>, vector<16x384xf32> -> vector<16x384xf32>
    %c0_17 = arith.constant 0 : index
    %c0_18 = arith.constant 0 : index
    %c0_19 = arith.constant 0 : index
    %35 = vector.load %arg8[%c0_17, %c0_18, %c0_19] : memref<1x1x384xf32, #tpu.memory_space<vmem>>, vector<1x1x384xf32>
    %36 = vector.shape_cast %35 : vector<1x1x384xf32> to vector<1x384xf32>
    %37 = vector.broadcast %36 : vector<1x384xf32> to vector<16x384xf32>
    %38 = arith.addf %34, %37 : vector<16x384xf32>
    %39 = vector.extract_strided_slice %38 {offsets = [0, 0], sizes = [16, 128], strides = [1, 1]} : vector<16x384xf32> to vector<16x128xf32>
    %cst_20 = arith.constant 0.176776692 : f32
    %40 = vector.broadcast %cst_20 : f32 to vector<16x128xf32>
    %41 = arith.mulf %39, %40 : vector<16x128xf32>
    %42 = vector.shape_cast %41 : vector<16x128xf32> to vector<2x8x4x32xf32>
    %43 = tpu.transpose %42, [0, 2, 1, 3] : vector<2x8x4x32xf32> -> vector<2x4x8x32xf32>
    %44 = vector.shape_cast %43 : vector<2x4x8x32xf32> to vector<8x8x32xf32>
    %45 = arith.truncf %44 : vector<8x8x32xf32> to vector<8x8x32xbf16>
    %46 = vector.extract_strided_slice %38 {offsets = [0, 128], sizes = [16, 128], strides = [1, 1]} : vector<16x384xf32> to vector<16x128xf32>
    %47 = vector.shape_cast %46 : vector<16x128xf32> to vector<2x8x4x32xf32>
    %48 = tpu.transpose %47, [0, 2, 1, 3] : vector<2x8x4x32xf32> -> vector<2x4x8x32xf32>
    %49 = vector.shape_cast %48 : vector<2x4x8x32xf32> to vector<8x8x32xf32>
    %50 = arith.truncf %49 : vector<8x8x32xf32> to vector<8x8x32xbf16>
    %51 = vector.extract_strided_slice %38 {offsets = [0, 256], sizes = [16, 128], strides = [1, 1]} : vector<16x384xf32> to vector<16x128xf32>
    %52 = vector.shape_cast %51 : vector<16x128xf32> to vector<2x8x4x32xf32>
    %53 = tpu.transpose %52, [0, 2, 1, 3] : vector<2x8x4x32xf32> -> vector<2x4x8x32xf32>
    %54 = vector.shape_cast %53 : vector<2x4x8x32xf32> to vector<8x8x32xf32>
    %55 = arith.truncf %54 : vector<8x8x32xf32> to vector<8x8x32xbf16>
    %56 = tpu.iota {dimensions = array<i32: 0>} : vector<8x8xi32>
    %57 = tpu.iota {dimensions = array<i32: 1>} : vector<8x8xi32>
    %58 = arith.cmpi sle, %57, %56 : vector<8x8xi32>
    %59 = vector.shape_cast %58 : vector<8x8xi1> to vector<1x8x8xi1>
    "tpu.trace_start"() <{level = 10 : i32, message = "bqd,bkd->bqk"}> : () -> ()
    %cst_21 = arith.constant dense<0.000000e+00> : vector<8x8x8xf32>
    %60 = tpu.matmul %45, %50, %cst_21 {dimension_numbers = #tpu.dot_dimension_numbers<[2], [2], [1], [1], [0, 0, 0, 1, 1, 1], [0], [0]>} : vector<8x8x32xbf16>, vector<8x8x32xbf16>, vector<8x8x8xf32> -> vector<8x8x8xf32>
    %cst_22 = arith.constant -1.000000e+30 : f32
    "tpu.trace_stop"() : () -> ()
    %61 = vector.shape_cast %59 : vector<1x8x8xi1> to vector<1x8x8xi1>
    %62 = vector.broadcast %61 : vector<1x8x8xi1> to vector<8x8x8xi1>
    %63 = vector.broadcast %cst_22 : f32 to vector<8x8x8xf32>
    %64 = arith.select %62, %60, %63 : vector<8x8x8xi1>, vector<8x8x8xf32>
    %cst_23 = arith.constant dense<0xFF800000> : vector<8x8xf32>
    %65 = vector.multi_reduction <maximumf>, %64, %cst_23 [2] : vector<8x8x8xf32> to vector<8x8xf32>
    %66 = vector.shape_cast %65 : vector<8x8xf32> to vector<8x8x1xf32>
    %67 = vector.broadcast %66 : vector<8x8x1xf32> to vector<8x8x8xf32>
    %68 = arith.subf %64, %67 : vector<8x8x8xf32>
    %69 = math.exp %68 : vector<8x8x8xf32>
    %cst_24 = arith.constant dense<0.000000e+00> : vector<8x8xf32>
    %70 = vector.multi_reduction <add>, %69, %cst_24 [2] : vector<8x8x8xf32> to vector<8x8xf32>
    %71 = vector.shape_cast %70 : vector<8x8xf32> to vector<8x8x1xf32>
    %72 = tpu.reciprocal %71 {approx = true} : vector<8x8x1xf32> -> vector<8x8x1xf32>
    %73 = vector.broadcast %72 : vector<8x8x1xf32> to vector<8x8x8xf32>
    %74 = arith.mulf %69, %73 : vector<8x8x8xf32>
    %75 = arith.truncf %74 : vector<8x8x8xf32> to vector<8x8x8xbf16>
    "tpu.trace_start"() <{level = 10 : i32, message = "bqk,bkd->bqd"}> : () -> ()
    %cst_25 = arith.constant dense<0.000000e+00> : vector<8x8x32xf32>
    %76 = tpu.matmul %75, %55, %cst_25 {dimension_numbers = #tpu.dot_dimension_numbers<[2], [1], [1], [2], [0, 0, 0, 1, 1, 2], [0], [0]>} : vector<8x8x8xbf16>, vector<8x8x32xbf16>, vector<8x8x32xf32> -> vector<8x8x32xf32>
    "tpu.trace_stop"() : () -> ()
    %77 = vector.shape_cast %76 : vector<8x8x32xf32> to vector<2x4x8x32xf32>
    %78 = tpu.transpose %77, [0, 2, 1, 3] : vector<2x4x8x32xf32> -> vector<2x8x4x32xf32>
    %79 = vector.shape_cast %78 : vector<2x8x4x32xf32> to vector<16x128xf32>
    %80 = arith.truncf %79 : vector<16x128xf32> to vector<16x128xbf16>
    %c0_26 = arith.constant 0 : index
    %c0_27 = arith.constant 0 : index
    %c0_28 = arith.constant 0 : index
    %81 = vector.load %arg9[%c0_26, %c0_27, %c0_28] : memref<1x128x128xbf16, #tpu.memory_space<vmem>>, vector<1x128x128xbf16>
    %82 = vector.shape_cast %81 : vector<1x128x128xbf16> to vector<128x128xbf16>
    %cst_29 = arith.constant dense<0.000000e+00> : vector<16x128xf32>
    %83 = tpu.matmul %80, %82, %cst_29 {dimension_numbers = #tpu.dot_dimension_numbers<[1], [0], [0], [1], [0, 0, 1, 1], [], []>} : vector<16x128xbf16>, vector<128x128xbf16>, vector<16x128xf32> -> vector<16x128xf32>
    %c0_30 = arith.constant 0 : index
    %c0_31 = arith.constant 0 : index
    %c0_32 = arith.constant 0 : index
    %84 = vector.load %arg10[%c0_30, %c0_31, %c0_32] : memref<1x1x128xf32, #tpu.memory_space<vmem>>, vector<1x1x128xf32>
    %85 = vector.shape_cast %84 : vector<1x1x128xf32> to vector<1x128xf32>
    %86 = vector.broadcast %85 : vector<1x128xf32> to vector<16x128xf32>
    %87 = arith.addf %83, %86 : vector<16x128xf32>
    %88 = vector.shape_cast %87 : vector<16x128xf32> to vector<2x8x128xf32>
    %89 = arith.addf %3, %88 : vector<2x8x128xf32>
    %c0_33 = arith.constant 0 : index
    %c0_34 = arith.constant 0 : index
    %c0_35 = arith.constant 0 : index
    %90 = vector.load %arg11[%c0_33, %c0_34, %c0_35] : memref<1x1x128xf32, #tpu.memory_space<vmem>>, vector<1x1x128xf32>
    %91 = vector.shape_cast %90 : vector<1x1x128xf32> to vector<1x128xf32>
    %c0_36 = arith.constant 0 : index
    %c0_37 = arith.constant 0 : index
    %c0_38 = arith.constant 0 : index
    %92 = vector.load %arg12[%c0_36, %c0_37, %c0_38] : memref<1x1x128xf32, #tpu.memory_space<vmem>>, vector<1x1x128xf32>
    %93 = vector.shape_cast %92 : vector<1x1x128xf32> to vector<1x128xf32>
    %cst_39 = arith.constant dense<0.000000e+00> : vector<2x8xf32>
    %94 = vector.multi_reduction <add>, %89, %cst_39 [2] : vector<2x8x128xf32> to vector<2x8xf32>
    %95 = vector.shape_cast %94 : vector<2x8xf32> to vector<2x8x1xf32>
    %cst_40 = arith.constant 1.280000e+02 : f32
    %96 = vector.broadcast %cst_40 : f32 to vector<2x8x1xf32>
    %97 = arith.divf %95, %96 : vector<2x8x1xf32>
    %98 = vector.broadcast %97 : vector<2x8x1xf32> to vector<2x8x128xf32>
    %99 = arith.subf %89, %98 : vector<2x8x128xf32>
    %100 = arith.mulf %99, %99 : vector<2x8x128xf32>
    %cst_41 = arith.constant dense<0.000000e+00> : vector<2x8xf32>
    %101 = vector.multi_reduction <add>, %100, %cst_41 [2] : vector<2x8x128xf32> to vector<2x8xf32>
    %102 = vector.shape_cast %101 : vector<2x8xf32> to vector<2x8x1xf32>
    %cst_42 = arith.constant 1.280000e+02 : f32
    %103 = vector.broadcast %cst_42 : f32 to vector<2x8x1xf32>
    %104 = arith.divf %102, %103 : vector<2x8x1xf32>
    %cst_43 = arith.constant 9.99999974E-6 : f32
    %105 = vector.broadcast %cst_43 : f32 to vector<2x8x1xf32>
    %106 = arith.addf %104, %105 : vector<2x8x1xf32>
    %107 = math.rsqrt %106 : vector<2x8x1xf32>
    %108 = vector.broadcast %107 : vector<2x8x1xf32> to vector<2x8x128xf32>
    %109 = arith.mulf %99, %108 : vector<2x8x128xf32>
    %110 = vector.shape_cast %91 : vector<1x128xf32> to vector<1x1x128xf32>
    %111 = vector.broadcast %110 : vector<1x1x128xf32> to vector<2x8x128xf32>
    %112 = arith.mulf %109, %111 : vector<2x8x128xf32>
    %113 = vector.shape_cast %93 : vector<1x128xf32> to vector<1x1x128xf32>
    %114 = vector.broadcast %113 : vector<1x1x128xf32> to vector<2x8x128xf32>
    %115 = arith.addf %112, %114 : vector<2x8x128xf32>
    %116 = vector.shape_cast %115 : vector<2x8x128xf32> to vector<16x128xf32>
    %117 = arith.truncf %116 : vector<16x128xf32> to vector<16x128xbf16>
    %c0_44 = arith.constant 0 : index
    %c0_45 = arith.constant 0 : index
    %c0_46 = arith.constant 0 : index
    %118 = vector.load %arg13[%c0_44, %c0_45, %c0_46] : memref<1x128x512xbf16, #tpu.memory_space<vmem>>, vector<1x128x512xbf16>
    %119 = vector.shape_cast %118 : vector<1x128x512xbf16> to vector<128x512xbf16>
    %cst_47 = arith.constant dense<0.000000e+00> : vector<16x512xf32>
    %120 = tpu.matmul %117, %119, %cst_47 {dimension_numbers = #tpu.dot_dimension_numbers<[1], [0], [0], [1], [0, 0, 1, 1], [], []>} : vector<16x128xbf16>, vector<128x512xbf16>, vector<16x512xf32> -> vector<16x512xf32>
    %c0_48 = arith.constant 0 : index
    %c0_49 = arith.constant 0 : index
    %c0_50 = arith.constant 0 : index
    %121 = vector.load %arg14[%c0_48, %c0_49, %c0_50] : memref<1x1x512xf32, #tpu.memory_space<vmem>>, vector<1x1x512xf32>
    %122 = vector.shape_cast %121 : vector<1x1x512xf32> to vector<1x512xf32>
    %123 = vector.broadcast %122 : vector<1x512xf32> to vector<16x512xf32>
    %124 = arith.addf %120, %123 : vector<16x512xf32>
    %cst_51 = arith.constant 1.702000e+00 : f32
    %125 = vector.broadcast %cst_51 : f32 to vector<16x512xf32>
    %126 = arith.mulf %125, %124 : vector<16x512xf32>
    %127 = arith.negf %126 : vector<16x512xf32>
    %128 = math.exp %127 : vector<16x512xf32>
    %cst_52 = arith.constant 1.000000e+00 : f32
    %129 = vector.broadcast %cst_52 : f32 to vector<16x512xf32>
    %130 = arith.addf %129, %128 : vector<16x512xf32>
    %131 = arith.divf %129, %130 : vector<16x512xf32>
    %132 = arith.mulf %124, %131 : vector<16x512xf32>
    %133 = arith.truncf %132 : vector<16x512xf32> to vector<16x512xbf16>
    %c0_53 = arith.constant 0 : index
    %c0_54 = arith.constant 0 : index
    %c0_55 = arith.constant 0 : index
    %134 = vector.load %arg15[%c0_53, %c0_54, %c0_55] : memref<1x512x128xbf16, #tpu.memory_space<vmem>>, vector<1x512x128xbf16>
    %135 = vector.shape_cast %134 : vector<1x512x128xbf16> to vector<512x128xbf16>
    %cst_56 = arith.constant dense<0.000000e+00> : vector<16x128xf32>
    %136 = tpu.matmul %133, %135, %cst_56 {dimension_numbers = #tpu.dot_dimension_numbers<[1], [0], [0], [1], [0, 0, 1, 1], [], []>} : vector<16x512xbf16>, vector<512x128xbf16>, vector<16x128xf32> -> vector<16x128xf32>
    %c0_57 = arith.constant 0 : index
    %c0_58 = arith.constant 0 : index
    %c0_59 = arith.constant 0 : index
    %137 = vector.load %arg16[%c0_57, %c0_58, %c0_59] : memref<1x1x128xf32, #tpu.memory_space<vmem>>, vector<1x1x128xf32>
    %138 = vector.shape_cast %137 : vector<1x1x128xf32> to vector<1x128xf32>
    %139 = vector.broadcast %138 : vector<1x128xf32> to vector<16x128xf32>
    %140 = arith.addf %136, %139 : vector<16x128xf32>
    %141 = vector.shape_cast %140 : vector<16x128xf32> to vector<2x8x128xf32>
    %142 = arith.addf %89, %141 : vector<2x8x128xf32>
    %c0_60 = arith.constant 0 : index
    %c0_61 = arith.constant 0 : index
    %c0_62 = arith.constant 0 : index
    %143 = vector.load %arg22[%c0_60, %c0_61, %c0_62] : memref<2x8x128xf32, #tpu.memory_space<vmem>>, vector<2x8x128xf32>
    tpu.vector_store %arg22[%c0_60, %c0_61, %c0_62], %142 {strides = array<i32>} : memref<2x8x128xf32, #tpu.memory_space<vmem>>, vector<2x8x128xf32>,
    %c1_i32 = arith.constant 1 : i32
    %144 = arith.cmpi eq, %arg1, %c1_i32 : i32
    %145 = arith.extui %144 : i1 to i32
    %c0_i32_63 = arith.constant 0 : i32
    %146 = arith.cmpi ne, %145, %c0_i32_63 : i32
    scf.if %146 {
      %147 = tpu.iota {dimensions = array<i32: 0>} : vector<8x1xi32>
      %c2_i32 = arith.constant 2 : i32
      %148 = arith.muli %arg0, %c2_i32 : i32
      %c0_i32_64 = arith.constant 0 : i32
      %149 = arith.addi %148, %c0_i32_64 : i32
      %150 = arith.index_cast %149 : i32 to index
      %151 = memref.load %arg2[%150] : memref<4xi32, #tpu.memory_space<smem>>
      %152 = vector.broadcast %151 : i32 to vector<8x1xi32>
      %153 = arith.cmpi eq, %147, %152 : vector<8x1xi32>
      %154 = vector.extract_strided_slice %142 {offsets = [0, 0, 0], sizes = [1, 8, 128], strides = [1, 1, 1]} : vector<2x8x128xf32> to vector<1x8x128xf32>
      %155 = vector.shape_cast %154 : vector<1x8x128xf32> to vector<8x128xf32>
      %cst_65 = arith.constant 0.000000e+00 : f32
      %156 = vector.shape_cast %153 : vector<8x1xi1> to vector<8x1xi1>
      %157 = vector.broadcast %156 : vector<8x1xi1> to vector<8x128xi1>
      %158 = vector.broadcast %cst_65 : f32 to vector<8x128xf32>
      %159 = arith.select %157, %155, %158 : vector<8x128xi1>, vector<8x128xf32>
      %cst_66 = arith.constant dense<0.000000e+00> : vector<128xf32>
      %160 = vector.multi_reduction <add>, %159, %cst_66 [0] : vector<8x128xf32> to vector<128xf32>
      %161 = vector.shape_cast %160 : vector<128xf32> to vector<1x128xf32>
      %c2_i32_67 = arith.constant 2 : i32
      %162 = arith.muli %arg0, %c2_i32_67 : i32
      %c1_i32_68 = arith.constant 1 : i32
      %163 = arith.addi %162, %c1_i32_68 : i32
      %164 = arith.index_cast %163 : i32 to index
      %165 = memref.load %arg2[%164] : memref<4xi32, #tpu.memory_space<smem>>
      %166 = vector.broadcast %165 : i32 to vector<8x1xi32>
      %167 = arith.cmpi eq, %147, %166 : vector<8x1xi32>
      %168 = vector.extract_strided_slice %142 {offsets = [1, 0, 0], sizes = [1, 8, 128], strides = [1, 1, 1]} : vector<2x8x128xf32> to vector<1x8x128xf32>
      %169 = vector.shape_cast %168 : vector<1x8x128xf32> to vector<8x128xf32>
      %cst_69 = arith.constant 0.000000e+00 : f32
      %170 = vector.shape_cast %167 : vector<8x1xi1> to vector<8x1xi1>
      %171 = vector.broadcast %170 : vector<8x1xi1> to vector<8x128xi1>
      %172 = vector.broadcast %cst_69 : f32 to vector<8x128xf32>
      %173 = arith.select %171, %169, %172 : vector<8x128xi1>, vector<8x128xf32>
      %cst_70 = arith.constant dense<0.000000e+00> : vector<128xf32>
      %174 = vector.multi_reduction <add>, %173, %cst_70 [0] : vector<8x128xf32> to vector<128xf32>
      %175 = vector.shape_cast %174 : vector<128xf32> to vector<1x128xf32>
      %176 = tpu.concatenate %161, %175 in 0 : vector<1x128xf32>, vector<1x128xf32> -> vector<2x128xf32>
      %c0_71 = arith.constant 0 : index
      %c0_72 = arith.constant 0 : index
      %177 = vector.load %arg17[%c0_71, %c0_72] : memref<1x128xf32, #tpu.memory_space<vmem>>, vector<1x128xf32>
      %c0_73 = arith.constant 0 : index
      %c0_74 = arith.constant 0 : index
      %178 = vector.load %arg18[%c0_73, %c0_74] : memref<1x128xf32, #tpu.memory_space<vmem>>, vector<1x128xf32>
      %cst_75 = arith.constant dense<0.000000e+00> : vector<2xf32>
      %179 = vector.multi_reduction <add>, %176, %cst_75 [1] : vector<2x128xf32> to vector<2xf32>
      %180 = vector.shape_cast %179 : vector<2xf32> to vector<2x1xf32>
      %cst_76 = arith.constant 1.280000e+02 : f32
      %181 = vector.broadcast %cst_76 : f32 to vector<2x1xf32>
      %182 = arith.divf %180, %181 : vector<2x1xf32>
      %183 = vector.broadcast %182 : vector<2x1xf32> to vector<2x128xf32>
      %184 = arith.subf %176, %183 : vector<2x128xf32>
      %185 = arith.mulf %184, %184 : vector<2x128xf32>
      %cst_77 = arith.constant dense<0.000000e+00> : vector<2xf32>
      %186 = vector.multi_reduction <add>, %185, %cst_77 [1] : vector<2x128xf32> to vector<2xf32>
      %187 = vector.shape_cast %186 : vector<2xf32> to vector<2x1xf32>
      %cst_78 = arith.constant 1.280000e+02 : f32
      %188 = vector.broadcast %cst_78 : f32 to vector<2x1xf32>
      %189 = arith.divf %187, %188 : vector<2x1xf32>
      %cst_79 = arith.constant 9.99999974E-6 : f32
      %190 = vector.broadcast %cst_79 : f32 to vector<2x1xf32>
      %191 = arith.addf %189, %190 : vector<2x1xf32>
      %192 = math.rsqrt %191 : vector<2x1xf32>
      %193 = vector.broadcast %192 : vector<2x1xf32> to vector<2x128xf32>
      %194 = arith.mulf %184, %193 : vector<2x128xf32>
      %195 = vector.broadcast %177 : vector<1x128xf32> to vector<2x128xf32>
      %196 = arith.mulf %194, %195 : vector<2x128xf32>
      %197 = vector.broadcast %178 : vector<1x128xf32> to vector<2x128xf32>
      %198 = arith.addf %196, %197 : vector<2x128xf32>
      %199 = arith.truncf %198 : vector<2x128xf32> to vector<2x128xbf16>
      %c0_80 = arith.constant 0 : index
      %c0_81 = arith.constant 0 : index
      %200 = vector.load %arg19[%c0_80, %c0_81] : memref<128x128xbf16, #tpu.memory_space<vmem>>, vector<128x128xbf16>
      %cst_82 = arith.constant dense<0.000000e+00> : vector<2x128xf32>
      %201 = tpu.matmul %199, %200, %cst_82 {dimension_numbers = #tpu.dot_dimension_numbers<[1], [0], [0], [1], [0, 0, 1, 1], [], []>} : vector<2x128xbf16>, vector<128x128xbf16>, vector<2x128xf32> -> vector<2x128xf32>
      %202 = arith.mulf %201, %201 : vector<2x128xf32>
      %cst_83 = arith.constant dense<0.000000e+00> : vector<2xf32>
      %203 = vector.multi_reduction <add>, %202, %cst_83 [1] : vector<2x128xf32> to vector<2xf32>
      %204 = vector.shape_cast %203 : vector<2xf32> to vector<2x1xf32>
      %205 = math.rsqrt %204 : vector<2x1xf32>
      %206 = vector.shape_cast %201 : vector<2x128xf32> to vector<2x1x128xf32>
      %c0_84 = arith.constant 0 : index
      %c0_85 = arith.constant 0 : index
      %c0_86 = arith.constant 0 : index
      %207 = vector.load %arg20[%c0_84, %c0_85, %c0_86] : memref<2x1x128xf32, #tpu.memory_space<vmem>>, vector<2x1x128xf32>
      tpu.vector_store %arg20[%c0_84, %c0_85, %c0_86], %206 {strides = array<i32>} : memref<2x1x128xf32, #tpu.memory_space<vmem>>, vector<2x1x128xf32>,
      %208 = vector.broadcast %205 : vector<2x1xf32> to vector<2x128xf32>
      %209 = arith.mulf %201, %208 : vector<2x128xf32>
      %210 = vector.shape_cast %209 : vector<2x128xf32> to vector<2x1x128xf32>
      %c0_87 = arith.constant 0 : index
      %c0_88 = arith.constant 0 : index
      %c0_89 = arith.constant 0 : index
      %211 = vector.load %arg21[%c0_87, %c0_88, %c0_89] : memref<2x1x128xf32, #tpu.memory_space<vmem>>, vector<2x1x128xf32>
      tpu.vector_store %arg21[%c0_87, %c0_88, %c0_89], %210 {strides = array<i32>} : memref<2x1x128xf32, #tpu.memory_space<vmem>>, vector<2x1x128xf32>,
    } else {
    }
    return
  }
  func.func @transform_0(%arg0: i32, %arg1: i32, %arg2: memref<4xi32, #tpu.memory_space<smem>>) -> (i32, i32, i32) {
    %c0_i32 = arith.constant 0 : i32
    %c0_i32_0 = arith.constant 0 : i32
    %c0_i32_1 = arith.constant 0 : i32
    return %arg0, %c0_i32, %c0_i32_0 : i32, i32, i32
  }
  func.func @transform_1(%arg0: i32, %arg1: i32, %arg2: memref<4xi32, #tpu.memory_space<smem>>) -> (i32, i32) {
    %c0_i32 = arith.constant 0 : i32
    %c0_i32_0 = arith.constant 0 : i32
    %c0_i32_1 = arith.constant 0 : i32
    return %c0_i32, %c0_i32_0 : i32, i32
  }
  func.func @transform_2(%arg0: i32, %arg1: i32, %arg2: memref<4xi32, #tpu.memory_space<smem>>) -> (i32, i32, i32) {
    %c0_i32 = arith.constant 0 : i32
    %c0_i32_0 = arith.constant 0 : i32
    %c0_i32_1 = arith.constant 0 : i32
    return %arg1, %c0_i32, %c0_i32_0 : i32, i32, i32
  }
  func.func @transform_3(%arg0: i32, %arg1: i32, %arg2: memref<4xi32, #tpu.memory_space<smem>>) -> (i32, i32, i32) {
    %c0_i32 = arith.constant 0 : i32
    %c0_i32_0 = arith.constant 0 : i32
    %c0_i32_1 = arith.constant 0 : i32
    return %arg1, %c0_i32, %c0_i32_0 : i32, i32, i32
  }
  func.func @transform_4(%arg0: i32, %arg1: i32, %arg2: memref<4xi32, #tpu.memory_space<smem>>) -> (i32, i32, i32) {
    %c0_i32 = arith.constant 0 : i32
    %c0_i32_0 = arith.constant 0 : i32
    %c0_i32_1 = arith.constant 0 : i32
    return %arg1, %c0_i32, %c0_i32_0 : i32, i32, i32
  }
  func.func @transform_5(%arg0: i32, %arg1: i32, %arg2: memref<4xi32, #tpu.memory_space<smem>>) -> (i32, i32, i32) {
    %c0_i32 = arith.constant 0 : i32
    %c0_i32_0 = arith.constant 0 : i32
    %c0_i32_1 = arith.constant 0 : i32
    return %arg1, %c0_i32, %c0_i32_0 : i32, i32, i32
  }
  func.func @transform_6(%arg0: i32, %arg1: i32, %arg2: memref<4xi32, #tpu.memory_space<smem>>) -> (i32, i32, i32) {
    %c0_i32 = arith.constant 0 : i32
    %c0_i32_0 = arith.constant 0 : i32
    %c0_i32_1 = arith.constant 0 : i32
    return %arg1, %c0_i32, %c0_i32_0 : i32, i32, i32
  }
  func.func @transform_7(%arg0: i32, %arg1: i32, %arg2: memref<4xi32, #tpu.memory_space<smem>>) -> (i32, i32, i32) {
    %c0_i32 = arith.constant 0 : i32
    %c0_i32_0 = arith.constant 0 : i32
    %c0_i32_1 = arith.constant 0 : i32
    return %arg1, %c0_i32, %c0_i32_0 : i32, i32, i32
  }
  func.func @transform_8(%arg0: i32, %arg1: i32, %arg2: memref<4xi32, #tpu.memory_space<smem>>) -> (i32, i32, i32) {
    %c0_i32 = arith.constant 0 : i32
    %c0_i32_0 = arith.constant 0 : i32
    %c0_i32_1 = arith.constant 0 : i32
    return %arg1, %c0_i32, %c0_i32_0 : i32, i32, i32
  }
  func.func @transform_9(%arg0: i32, %arg1: i32, %arg2: memref<4xi32, #tpu.memory_space<smem>>) -> (i32, i32, i32) {
    %c0_i32 = arith.constant 0 : i32
    %c0_i32_0 = arith.constant 0 : i32
    %c0_i32_1 = arith.constant 0 : i32
    return %arg1, %c0_i32, %c0_i32_0 : i32, i32, i32
  }
  func.func @transform_10(%arg0: i32, %arg1: i32, %arg2: memref<4xi32, #tpu.memory_space<smem>>) -> (i32, i32, i32) {
    %c0_i32 = arith.constant 0 : i32
    %c0_i32_0 = arith.constant 0 : i32
    %c0_i32_1 = arith.constant 0 : i32
    return %arg1, %c0_i32, %c0_i32_0 : i32, i32, i32
  }
  func.func @transform_11(%arg0: i32, %arg1: i32, %arg2: memref<4xi32, #tpu.memory_space<smem>>) -> (i32, i32, i32) {
    %c0_i32 = arith.constant 0 : i32
    %c0_i32_0 = arith.constant 0 : i32
    %c0_i32_1 = arith.constant 0 : i32
    return %arg1, %c0_i32, %c0_i32_0 : i32, i32, i32
  }
  func.func @transform_12(%arg0: i32, %arg1: i32, %arg2: memref<4xi32, #tpu.memory_space<smem>>) -> (i32, i32, i32) {
    %c0_i32 = arith.constant 0 : i32
    %c0_i32_0 = arith.constant 0 : i32
    %c0_i32_1 = arith.constant 0 : i32
    return %arg1, %c0_i32, %c0_i32_0 : i32, i32, i32
  }
  func.func @transform_13(%arg0: i32, %arg1: i32, %arg2: memref<4xi32, #tpu.memory_space<smem>>) -> (i32, i32, i32) {
    %c0_i32 = arith.constant 0 : i32
    %c0_i32_0 = arith.constant 0 : i32
    %c0_i32_1 = arith.constant 0 : i32
    return %arg1, %c0_i32, %c0_i32_0 : i32, i32, i32
  }
  func.func @transform_14(%arg0: i32, %arg1: i32, %arg2: memref<4xi32, #tpu.memory_space<smem>>) -> (i32, i32) {
    %c0_i32 = arith.constant 0 : i32
    %c0_i32_0 = arith.constant 0 : i32
    %c0_i32_1 = arith.constant 0 : i32
    return %c0_i32, %c0_i32_0 : i32, i32
  }
  func.func @transform_15(%arg0: i32, %arg1: i32, %arg2: memref<4xi32, #tpu.memory_space<smem>>) -> (i32, i32) {
    %c0_i32 = arith.constant 0 : i32
    %c0_i32_0 = arith.constant 0 : i32
    %c0_i32_1 = arith.constant 0 : i32
    return %c0_i32, %c0_i32_0 : i32, i32
  }
  func.func @transform_16(%arg0: i32, %arg1: i32, %arg2: memref<4xi32, #tpu.memory_space<smem>>) -> (i32, i32) {
    %c0_i32 = arith.constant 0 : i32
    %c0_i32_0 = arith.constant 0 : i32
    %c0_i32_1 = arith.constant 0 : i32
    return %c0_i32, %c0_i32_0 : i32, i32
  }
  func.func @transform_17(%arg0: i32, %arg1: i32, %arg2: memref<4xi32, #tpu.memory_space<smem>>) -> (i32, i32, i32) {
    %c0_i32 = arith.constant 0 : i32
    %c0_i32_0 = arith.constant 0 : i32
    %c0_i32_1 = arith.constant 0 : i32
    return %arg0, %c0_i32, %c0_i32_0 : i32, i32, i32
  }
  func.func @transform_18(%arg0: i32, %arg1: i32, %arg2: memref<4xi32, #tpu.memory_space<smem>>) -> (i32, i32, i32) {
    %c0_i32 = arith.constant 0 : i32
    %c0_i32_0 = arith.constant 0 : i32
    %c0_i32_1 = arith.constant 0 : i32
    return %arg0, %c0_i32, %c0_i32_0 : i32, i32, i32
  }
}

</mosaic_0001>

<bundles_post_ra>
// kernel: text_encoder_forward.1
= control target key start
LH: loop header
LB: loop body
LE: loop exit
PB: predicated region body
PF: predicated region fallthrough
CT: control target
= control target key end

     0   :  { %s4753_s21 = smov [#allocation4]   ;;  %s6089_s0 = inlined_call_operand.vmem [shape: s32[4], index: 0, kind: input, shape index: {}]   ;;  %s6090_s1 = inlined_call_operand.vmem [shape: f32[4,8,128], index: 1, kind: input, shape index: {}]   ;;  %s6091_s2 = inlined_call_operand.vmem [shape: f32[8,128], index: 2, kind: input, shape index: {}]   ;;  %s6092_s3 = inlined_call_operand.vmem [shape: f32[2,1,128], index: 3, kind: input, shape index: {}]   ;;  %s6093_s4 = inlined_call_operand.vmem [shape: f32[2,1,128], index: 4, kind: input, shape index: {}]   ;;  %s6094_s5 = inlined_call_operand.vmem [shape: bf16[2,128,384], index: 5, kind: input, shape index: {}]   ;;  %s6095_s6 = inlined_call_operand.vmem [shape: f32[2,1,384], index: 6, kind: input, shape index: {}]   ;;  %s6096_s7 = inlined_call_operand.vmem [shape: bf16[2,128,128], index: 7, kind: input, shape index: {}]   ;;  %s6097_s8 = inlined_call_operand.vmem [shape: f32[2,1,128], index: 8, kind: input, shape index: {}]   ;;  %s6098_s9 = inlined_call_operand.vmem [shape: f32[2,1,128], index: 9, kind: input, shape index: {}]   ;;  %s6099_s10 = inlined_call_operand.vmem [shape: f32[2,1,128], index: 10, kind: input, shape index: {}]   ;;  %s6100_s11 = inlined_call_operand.vmem [shape: bf16[2,128,512], index: 11, kind: input, shape index: {}]   ;;  %s6101_s12 = inlined_call_operand.vmem [shape: f32[2,1,512], index: 12, kind: input, shape index: {}]   ;;  %s6102_s13 = inlined_call_operand.vmem [shape: bf16[2,512,128], index: 13, kind: input, shape index: {}]   ;;  %s6103_s14 = inlined_call_operand.vmem [shape: f32[2,1,128], index: 14, kind: input, shape index: {}]   ;;  %s6104_s15 = inlined_call_operand.vmem [shape: f32[1,128], index: 15, kind: input, shape index: {}]   ;;  %s6105_s16 = inlined_call_operand.vmem [shape: f32[1,128], index: 16, kind: input, shape index: {}]   ;;  %s6106_s17 = inlined_call_operand.vmem [shape: bf16[128,128], index: 17, kind: input, shape index: {}]   ;;  %s6107_s18 = inlined_call_operand.hbm [shape: f32[4,1,128], index: 18, kind: output, shape index: {0}]   ;;  %s6108_s19 = inlined_call_operand.hbm [shape: f32[4,1,128], index: 19, kind: output, shape index: {1}]  }
   0x1   :  { %6128 = sst [smem:[#allocation25_spill]] %s6089_s0 }
   0x2   :  { %6129 = sst [smem:[#allocation26_spill]] %s6090_s1 }
   0x3   :  { %6130 = sst [smem:[#allocation27_spill]] %s6091_s2 }
   0x4   :  { %6131 = sst [smem:[#allocation28_spill]] %s6092_s3 }
   0x5   :  { %6132 = sst [smem:[#allocation29_spill]] %s6094_s5 }
   0x6   :  { %6133 = sst [smem:[#allocation30_spill]] %s6096_s7 }
   0x7   :  { %6134 = sst [smem:[#allocation31_spill]] %s6102_s13 }
   0x8   :  { %6135 = sst [smem:[#allocation32_spill]] %s6104_s15 }
   0x9   :  { %6136 = sst [smem:[#allocation33_spill]] %s6105_s16 }
   0xa   :  { %6137 = sst [smem:[#allocation34_spill]] %s6106_s17 }
   0xb   :  { %6138 = sst [smem:[#allocation35_spill]] %s6107_s18 }
   0xc   :  { %6139 = sst [smem:[#allocation36_spill]] %s6108_s19 }
   0xd   :  { %s6140_s20 = sld [smem:[#allocation25_spill]] }
  0x13   :  { %s26_s13 = sshll.u32 %s6140_s20, 4  ;;  %s27_s13 = int_to_ptr.vmem [resolvable:$true] %s26_s13 }
  0x14   :  { %29 = dma.vmem_to_smem %s27_s13, 16, %s4753_s21, [#allocation3] }
  0x15   :  { %4711 = dma.done.wait [#allocation3], 16 }
  0x16   :  { %4712 = vsyncadd [#allocation3], 4294967280 }
  0x17   :  { %32 = sfence }
  0x18   :  { %33 = vsyncpa [#allocation6], 0 }
  0x19   :  { %35 = vsyncpa [#allocation6 + $0x1], 0 }
  0x1a   :  { %36 = vsyncpa [#allocation8], 0 }
  0x1b   :  { %38 = vsyncpa [#allocation8 + $0x1], 0  ;;  %s4865_s1 = smov 0   ;;  %s4867_s22 = smov 0  }
  0x1c   :  { %s4869_s2 = smov 0   ;;  %s4871_s23 = smov 0  }
  0x1d   :  { %s4873_s24 = smov 0   ;;  %s4875_s25 = smov 0  }
  0x1e   :  { %s4877_s13 = smov 0   ;;  %s4879_s3 = smov 0  }
  0x1f LB: > { %6141 = sst [smem:[#allocation12_spill]] %s4723_s1  ;;  %s3833_s26 = sadd.s32 4294967295, %s4751_s3   ;;  %s4751_s3 = sphi %s4879_s3, %s44_s3   ;;  %s4747_s13 = sphi %s4877_s13, %s6204_s13   ;;  %s4743_s25 = sphi %s4875_s25, %s6203_s25   ;;  %s4739_s24 = sphi %s4873_s24, %s6202_s24   ;;  %s4735_s23 = sphi %s4871_s23, %s6201_s23   ;;  %s4731_s2 = sphi %s4869_s2, %s6200_s2   ;;  %s4727_s22 = sphi %s4867_s22, %s6199_s22   ;;  %s4723_s1 = sphi %s4865_s1, %s6198_s1  }
  0x20   : > { %6142 = sst [smem:[#allocation13_spill]] %s4727_s22  ;;  %s3834_s27 = sadd.s32 4294967294, %s4751_s3  }
  0x21   : > { %6143 = sst [smem:[#allocation14_spill]] %s4731_s2  ;;  %s53_s28 = sadd.s32 1, %s4743_s25 }
  0x22   : > { %6144 = sst [smem:[#allocation15_spill]] %s4743_s25  ;;  %p54_p0 = scmp.ge.s32.totalorder %s53_s28, 2 }
  0x23   : > { %6145 = sst [smem:[#allocation16_spill]] %s4747_s13  ;;  %s56_s29 = sadd.s32 1, %s4747_s13 }
  0x24   : > { %6146 = sst [smem:[#allocation17_spill]] %s4751_s3  ;;  %p495_p1 = scmp.ne.s32.totalorder %s4731_s2, %s4727_s22 }
  0x25   : > { %p496_p2 = scmp.eq.s32.totalorder %s3833_s26, 3  ;;  %s6206_s28 = smov (%p54_p0, %s53_s28), 0 }
  0x26   : > { %6147 = sst [smem:[#allocation18_spill]] %s6206_s28  ;;  %s6208_s29 = smov (!%p54_p0, %s56_s29), %s4747_s13 }
  0x27   : > { %p4912_p3 = por %p496_p2, %p495_p1  ;;  %p501_p4 = scmp.ne.s32.totalorder %s4727_s22, %s4723_s1 }
  0x28   : > { %p58_p5 = scmp.ge.s32.totalorder %s6208_s29, 2  ;;  %p502_p6 = scmp.eq.s32.totalorder %s3834_s27, 3 }
  0x29   : > { %s6148_s0 = scalar_select %p4912_p3, 1, 0 }
  0x2a   : > { %p3837_p7 = scmp.ge.s32.totalorder %s4751_s3, 1  ;;  %p649_p8 = scmp.lt.s32.totalorder %s4751_s3, 5 }
  0x2b   : > { %6149 = sst [smem:[#allocation19_spill]] %s6148_s0  ;;  %s6210_s29 = smov (%p58_p5, %s6208_s29), 0 }
  0x2c   : > { %6150 = sst [smem:[#allocation20_spill]] %s6210_s29  ;;  %p4922_p9 = por %p502_p6, %p501_p4 }
  0x2d   : > { %p650_p10 = pnand %p3837_p7, %p649_p8  ;;  %s482_s20 = ssub.s32 %s4747_s13, %s6210_s29 }
  0x2e   : > { %s6151_s30 = scalar_select %p4922_p9, 1, 0 }
  0x2f   : > { %s485_s21 = sadd.s32 1, %s4731_s2  ;;  %p483_p11 = scmp.eq.s32.totalorder %s482_s20, 0 }
  0x30   : > { %6152 = sst [smem:[#allocation21_spill]] %s6151_s30  ;;  %653 = sbr.rel (%p650_p10) target bundleno = 2715 (0xa9b), region = 88 }
  0x31   : > { %s4930_s26 = scalar_select %p483_p11, %s4731_s2, %s485_s21  }
  0x33   : > { %6153 = sst [smem:[#allocation22_spill]] %s4930_s26 }
  0x35   : > { %s4933_s27 = sand.u32 1, %s4727_s22   ;;  %s4935_s28 = sshll.u32 %s4739_s24, 1 }
  0x36   : > { %6154 = sst [smem:[#allocation23_spill]] %s4933_s27  ;;  %s3838_s25 = sshll.u32 %s4933_s27, 1 }
  0x37   : > { %6155 = sst [smem:[#allocation24_spill]] %s4935_s28  ;;  %p755_p12 = scmp.lt.s32.totalorder %s4935_s28, 3 }
  0x38   : > { %p760_p13 = scmp.lt.s32.totalorder %s4735_s23, 1  ;;  %s6156_s21 = sld [smem:[#allocation26_spill]] }
  0x39   : > { %s756_s30 = scalar_select %p755_p12, %s4935_s28, 3 }
  0x3a   : > { %s4945_s2 = scalar_select %p760_p13, %s4735_s23, 1 }
  0x3b   : > { %s3841_s29 = sshll.u32 %s756_s30, 3  ;;  %s6158_s7 = sld [smem:[#allocation30_spill]] }
  0x3c   : > { %s4299_s20 = sshll.u32 %s4945_s2, 6  ;;  %s6159_s5 = sld [smem:[#allocation29_spill]] }
  0x3d   : > { %s4300_s18 = sshll.u32 %s4945_s2, 8  ;;  %s3847_s15 = sshll.u32 %s4945_s2, 2 }
  0x3e   : > { %s758_s26 = scalar_lea.vmem %s6156_s21, %s3841_s29  ;;  %s4406_s29 = smul.u32 192, %s4945_s2 }
  0x3f   : > { %s4407_s21 = smul.u32 3, %s4945_s2  ;;  %s6160_s17 = sld [smem:[#allocation31_spill]] }
  0x40   : > { %s805_s1 = scalar_lea.vmem %s6103_s14, %s4945_s2  ;;  %s5008_s27 = scalar_lea.vmem [#allocation7], %s3838_s25 }
  0x41   : > { %s4961_s22 = scalar_lea.vmem %s6158_s7, %s4299_s20  ;;  %s4975_s13 = scalar_lea.vmem %s6095_s6, %s4407_s21 }
  0x42   : > { %s4966_s16 = scalar_lea.vmem %s6159_s5, %s4406_s29  ;;  %s4989_s5 = scalar_lea.vmem %s6100_s11, %s4300_s18 }
  0x43   : > { %s4995_s21 = scalar_lea.vmem %s6101_s12, %s3847_s15  ;;  %s5006_s7 = scalar_lea.vmem [#allocation5], %s3838_s25 }
  0x44   : > { %p3850_p0 = scmp.ne.s32.totalorder %s4735_s23, 0 }
  0x45   : > { %s5000_s28 = scalar_lea.vmem %s6160_s17, %s4300_s18  ;;  %s6161_s15 = sld [smem:[#allocation27_spill]] (!%p3850_p0) }
  0x46   : > { %812 = sbr.rel (%p3850_p0) target bundleno = 81 (0x51), region = 92 }
  0x4b   : > { %v813_v0 = vld [vmem:[%s758_s26] sm:$0xff]  ;;  %v814_v2 = vld [vmem:[%s758_s26 + $0x8] sm:$0xff] }
  0x4c   : > { %v815_v1 = vld [vmem:[%s6161_s15] sm:$0xff] }
  0x4d   : > { %v816_v3 = vadd.f32 %v815_v1, %v813_v0  ;;  %v817_v4 = vadd.f32 %v815_v1, %v814_v2 }
  0x4f   : > { %818 = vst [vmem:[#allocation2] sm:$0xff] %v816_v3 }
  0x50   : > { %819 = vst [vmem:[#allocation2 + $0x8] sm:$0xff] %v817_v4 }
  0x51 PF: > { %v4754_v7 = vmov 128.0   ;;  %v3937_v22 = vld [vmem:[%s4966_s16 + $0xa8] sm:$0xf]  ;;  %v4324_v23 = vld [vmem:[%s4966_s16 + $0xb0] sm:$0xf0]  ;;  %s6162_s26 = sld [smem:[#allocation28_spill]]  ;;  %s6164_s19 = scalar_lea.vmem %s6093_s4, %s4945_s2 }
  0x52   : > { %4529 = vrcp.f32 %v4754_v7  ;;  %v4323_v24 = vld [vmem:[%s4966_s16 + $0xac] sm:$0xf]  ;;  %v3938_v25 = vor.u32 %v4324_v23, %v3937_v22  ;;  %v3939_v26 = vld [vmem:[%s4966_s16 + $0xb4] sm:$0xf0]  ;;  %v3945_v27 = vld [vmem:[%s4966_s16 + $0xb0] sm:$0xf]  ;;  %s6167_s24 = scalar_lea.vmem %s6097_s8, %s4945_s2  ;;  %s6168_s15 = scalar_lea.vmem %s6098_s9, %s4945_s2 }
  0x53   : > { %v4325_v28 = vld [vmem:[%s4966_s16 + $0xb8] sm:$0xf0]  ;;  %v3942_v29 = vor.u32 %v4323_v24, %v3939_v26  ;;  %v3925_v31 = vld [vmem:[%s4966_s16 + $0x90] sm:$0xf]  ;;  %v4320_v33 = vld [vmem:[%s4966_s16 + $0x94] sm:$0xf] }
  0x54   : > { %v3946_v30 = vor.u32 %v4325_v28, %v3945_v27  ;;  %1050 = vmatpush.bf16.msra.mxu0 %v3938_v25  ;;  %v4321_v32 = vld [vmem:[%s4966_s16 + $0x98] sm:$0xf0]  ;;  %v3927_v35 = vld [vmem:[%s4966_s16 + $0x9c] sm:$0xf0]  ;;  %v3933_v36 = vld [vmem:[%s4966_s16 + $0x98] sm:$0xf] }
  0x55   : > { %1064 = vmatpush.bf16.msra.mxu1 %v3942_v29  ;;  %v3926_v34 = vor.u32 %v4321_v32, %v3925_v31  ;;  %v4322_v37 = vld [vmem:[%s4966_s16 + $0xa0] sm:$0xf0]  ;;  %v3930_v38 = vor.u32 %v4320_v33, %v3927_v35  ;;  %v3913_v40 = vld [vmem:[%s4966_s16 + $0x78] sm:$0xf]  ;;  %v4317_v42 = vld [vmem:[%s4966_s16 + $0x7c] sm:$0xf] }
  0x56   : > { %v820_v5 = vld [vmem:[#allocation2] sm:$0xff]  ;;  %1078 = vmatpush.bf16.msra.mxu2 %v3946_v30  ;;  %v3934_v39 = vor.u32 %v4322_v37, %v3933_v36  ;;  %v3915_v44 = vld [vmem:[%s4966_s16 + $0x84] sm:$0xf0]  ;;  %v4319_v46 = vld [vmem:[%s4966_s16 + $0x88] sm:$0xf0]  ;;  %s4755_s30 = smov 32  }
  0x57   : > { %824 = vadd.xlane.f32.xlu0 %v820_v5  ;;  %v821_v6 = vld [vmem:[#allocation2 + $0x8] sm:$0xff]  ;;  %v4318_v41 = vld [vmem:[%s4966_s16 + $0x80] sm:$0xf0]  ;;  %v3921_v45 = vld [vmem:[%s4966_s16 + $0x80] sm:$0xf]  ;;  %v3918_v47 = vor.u32 %v4317_v42, %v3915_v44  ;;  %s6163_s0 = scalar_lea.vmem %s6162_s26, %s4945_s2  ;;  %s4756_s17 = smov 96  }
  0x58   : > { %v4530_v8 = vpop.eup %4529  ;;  %1051 = vmatpush.bf16.msra.mxu0 %v3926_v34  ;;  %v3914_v43 = vor.u32 %v4318_v41, %v3913_v40  ;;  %v3922_v48 = vor.u32 %v4319_v46, %v3921_v45  ;;  %v3901_v49 = vld [vmem:[%s4966_s16 + $0x60] sm:$0xf]  ;;  %v4315_v50 = vld [vmem:[%s4966_s16 + $0x68] sm:$0xf0]  ;;  %v4314_v51 = vld [vmem:[%s4966_s16 + $0x64] sm:$0xf]  ;;  %s6169_s26 = scalar_lea.vmem %s6099_s10, %s4945_s2 }
  0x59   : > { %v829_v9 = vmul.f32 128.0, %v4530_v8  ;;  %vm833_vm0 = vweird.f32 %v4530_v8  ;;  %1065 = vmatpush.bf16.msra.mxu1 %v3930_v38  ;;  %v3902_v52 = vor.u32 %v4315_v50, %v3901_v49  ;;  %v3903_v53 = vld [vmem:[%s4966_s16 + $0x6c] sm:$0xf0]  ;;  %v3909_v54 = vld [vmem:[%s4966_s16 + $0x68] sm:$0xf]  ;;  %vm1115_vm7 = vcmask 1047556  }
  0x5a   : > { %1079 = vmatpush.bf16.msra.mxu2 %v3934_v39  ;;  %v4316_v55 = vld [vmem:[%s4966_s16 + $0x70] sm:$0xf0]  ;;  %v3906_v56 = vor.u32 %v4314_v51, %v3903_v53  ;;  %v3889_v58 = vld [vmem:[%s4966_s16 + $0x48] sm:$0xf]  ;;  %v4311_v60 = vld [vmem:[%s4966_s16 + $0x4c] sm:$0xf] }
  0x5b   : > { %v830_v10 = vsub.f32 1.0, %v829_v9  ;;  %v3910_v57 = vor.u32 %v4316_v55, %v3909_v54  ;;  %v4312_v59 = vld [vmem:[%s4966_s16 + $0x50] sm:$0xf0]  ;;  %v3891_v62 = vld [vmem:[%s4966_s16 + $0x54] sm:$0xf0]  ;;  %vm1844_vm8 = vcmask 261120  }
  0x5c   : > { %1052 = vmatpush.bf16.msra.mxu0 %v3914_v43  ;;  %v3890_v61 = vor.u32 %v4312_v59, %v3889_v58  ;;  %v3897_v63 = vld [vmem:[%s4966_s16 + $0x50] sm:$0xf]  ;;  %v4313_v0 = vld [vmem:[%s4966_s16 + $0x58] sm:$0xf0]  ;;  %v3894_v1 = vor.u32 %v4311_v60, %v3891_v62  ;;  %v3879_v7 = vld [vmem:[%s4966_s16 + $0x3c] sm:$0xf0] }
  0x5d   : > { %v831_v11 = vmul.f32 %v4530_v8, %v830_v10  ;;  %1066 = vmatpush.bf16.msra.mxu1 %v3918_v47  ;;  %v3898_v2 = vor.u32 %v4313_v0, %v3897_v63  ;;  %v3877_v3 = vld [vmem:[%s4966_s16 + $0x30] sm:$0xf]  ;;  %v4309_v4 = vld [vmem:[%s4966_s16 + $0x38] sm:$0xf0]  ;;  %v4310_v9 = vld [vmem:[%s4966_s16 + $0x40] sm:$0xf0] }
  0x5e   : > { %1080 = vmatpush.bf16.msra.mxu2 %v3922_v48  ;;  %v3853_v24 = vld [vmem:[%s4966_s16] sm:$0xf]  ;;  %v4303_v25 = vld [vmem:[%s4966_s16 + $0x8] sm:$0xf0]  ;;  %v4302_v26 = vld [vmem:[%s4966_s16 + $0x4] sm:$0xf] }
  0x5f   : > { %826 = vadd.xlane.f32.xlu0 %v821_v6  ;;  %v832_v12 = vadd.f32 %v4530_v8, %v831_v11  ;;  %v3854_v28 = vor.u32 %v4303_v25, %v3853_v24  ;;  %v3855_v29 = vld [vmem:[%s4966_s16 + $0xc] sm:$0xf0]  ;;  %v3861_v30 = vld [vmem:[%s4966_s16 + $0x8] sm:$0xf]  ;;  %v4304_v31 = vld [vmem:[%s4966_s16 + $0x10] sm:$0xf0] }
  0x60   : > { %1053 = vmatpush.bf16.msra.mxu0 %v3902_v52  ;;  %v3858_v33 = vor.u32 %v4302_v26, %v3855_v29  ;;  %v3862_v34 = vor.u32 %v4304_v31, %v3861_v30  ;;  %v4523_v52 = vld [vmem:[%s6163_s0] ss:$0 sm:$0xff]  ;;  %v4759_v24 = vmov 1934713408   ;;  %vm2007_vm10 = vcmask 64512   ;;  %p4259_p1 = scmp.ne.s32.totalorder %s4735_s23, 1 }
  0x61   : > { %v5014_v13 = vsel %vm833_vm0, %v4530_v8, %v832_v12  ;;  %1067 = vmatpush.bf16.msra.mxu1 %v3906_v56  ;;  %v3885_v8 = vld [vmem:[%s4966_s16 + $0x38] sm:$0xf]  ;;  %v1144_v25 = vunpack.c.l.s4 %v4759_v24  ;;  %vm2107_vm11 = vcmask 1043456   ;;  %vm2503_vm12 = vcmask 523264   ;;  %s6184_s2 = sld [smem:[#allocation24_spill]] (!%p4259_p1) }
  0x62   : > { %1081 = vmatpush.bf16.msra.mxu2 %v3910_v57  ;;  %v3886_v11 = vor.u32 %v4310_v9, %v3885_v8  ;;  %v3865_v12 = vld [vmem:[%s4966_s16 + $0x18] sm:$0xf]  ;;  %v4524_v57 = vld [vmem:[%s6164_s19] ss:$0 sm:$0xff]  ;;  %vm2506_vm13 = vcmask 785408   ;;  %s6185_s19 = sld [smem:[#allocation34_spill]] (!%p4259_p1) }
  0x63   : > { %s6187_s3 = sld [smem:[#allocation33_spill]] (!%p4259_p1) }
  0x64   : > { %1054 = vmatpush.bf16.msra.mxu0 %v3890_v61  ;;  %v5089_v61 = vld [vmem:[%s4975_s13] sm:$0x7]  ;;  %s4757_s13 = smov 64  }
  0x65   : > { %1068 = vmatpush.bf16.msra.mxu1 %v3894_v1  ;;  %v916_v62 = vperm.slane %v5089_v61, 0  ;;  %v917_v63 = vperm.slane %v5089_v61, 1 }
  0x66   : > { %1082 = vmatpush.bf16.msra.mxu2 %v3898_v2 }
  0x67   : > { %s3414_s0 = sadd.s32 (!%p4259_p1), 1, %s6184_s2 }
  0x68   : > { %s3415_s18 = sld [smem:[#allocation4 + %s3414_s0]] (!%p4259_p1) }
  0x69   : > { %s6186_s0 = sld [smem:[#allocation32_spill]] (!%p4259_p1) }
  0x6a   : > { %1083 = vmatpush.bf16.msra.mxu2 %v3886_v11  ;;  %v4758_v11 = vmov 1983009808  }
  0xca   : > { %v825_v14 = vpop.xlane.xlu0 %824 }
  0xcb   : > { %v835_v15 = vmul.f32 %v5014_v13, %v825_v14  ;;  %v4306_v14 = vld [vmem:[%s4966_s16 + $0x20] sm:$0xf0] }
  0xcd   : > { %v5017_v16 = vsub.f32 %v820_v5, %v835_v15  ;;  %v4308_v5 = vld [vmem:[%s4966_s16 + $0x34] sm:$0xf]  ;;  %v4305_v15 = vld [vmem:[%s4966_s16 + $0x1c] sm:$0xf] }
  0xce   : > { %v3882_v10 = vor.u32 %v4308_v5, %v3879_v7 }
  0xcf   : > { %v839_v17 = vmul.f32 %v5017_v16, %v5017_v16 }
  0xd0   : > { %1069 = vmatpush.bf16.msra.mxu1 %v3882_v10 }
  0xd1   : > { %841 = vadd.xlane.f32.xlu1 %v839_v17  ;;  %v3866_v17 = vor.u32 %v4306_v14, %v3865_v12  ;;  %v1120_v12 = vunpack.c.l.s4 %v4758_v11 }
  0xd2   : > { %v827_v18 = vpop.xlane.xlu0 %826 }
  0xd3   : > { %v836_v19 = vmul.f32 %v5014_v13, %v827_v18  ;;  %v3867_v18 = vld [vmem:[%s4966_s16 + $0x24] sm:$0xf0] }
  0xd4   : > { %v3870_v22 = vor.u32 %v4305_v15, %v3867_v18  ;;  %v5115_v18 = vunpack.c.0.s8 %v1120_v12 }
  0xd5   : > { %v5022_v20 = vsub.f32 %v821_v6, %v836_v19  ;;  %v3878_v6 = vor.u32 %v4309_v4, %v3877_v3  ;;  %v3873_v19 = vld [vmem:[%s4966_s16 + $0x20] sm:$0xf] }
  0xd6   : > { %1070 = vmatpush.bf16.msra.mxu1 %v3870_v22 }
  0xd7   : > { %v840_v21 = vmul.f32 %v5022_v20, %v5022_v20  ;;  %1055 = vmatpush.bf16.msra.mxu0 %v3878_v6 }
  0xd9   : > { %843 = vadd.xlane.f32.xlu1 %v840_v21  ;;  %v4307_v21 = vld [vmem:[%s4966_s16 + $0x28] sm:$0xf0] }
  0xda   : > { %v3874_v23 = vor.u32 %v4307_v21, %v3873_v19  ;;  %1071 = vmatpush.bf16.msra.mxu1 %v3858_v33 }
  0xdb   : > { %1056 = vmatpush.bf16.msra.mxu0 %v3866_v17 }
  0xdc   : > { %1084 = vmatpush.bf16.msra.mxu2 %v3874_v23 }
  0xdf   : > { %1057 = vmatpush.bf16.msra.mxu0 %v3854_v28 }
  0xe0   : > { %1085 = vmatpush.bf16.msra.mxu2 %v3862_v34 }
 0x144   : > { %v842_v27 = vpop.xlane.xlu1 %841 }
 0x145   : > { %v845_v32 = vmul.f32 %v842_v27, %v5014_v13 }
 0x147   : > { %v847_v35 = vadd.f32 1e-05, %v845_v32  ;;  %v5124_v32 = vunpack.c.0.s8 %v1144_v25 }
 0x149   : > { %4531 = vrsqrt.f32 %v847_v35  ;;  %vm855_vm2 = vweird.f32 %v847_v35 }
 0x14c   : > { %v844_v36 = vpop.xlane.xlu1 %843 }
 0x14d   : > { %v846_v37 = vmul.f32 %v844_v36, %v5014_v13 }
 0x14f   : > { %v4532_v38 = vpop.eup %4531  ;;  %v848_v39 = vadd.f32 1e-05, %v846_v37 }
 0x150   : > { %v850_v40 = vmul.f32 %v4532_v38, %v847_v35  ;;  %vm856_vm1 = vweird.f32 %v4532_v38 }
 0x151   : > { %4533 = vrsqrt.f32 %v848_v39  ;;  %vm857_vm3 = vmor %vm855_vm2, %vm856_vm1  ;;  %vm865_vm5 = vweird.f32 %v848_v39 }
 0x152   : > { %v851_v41 = vmul.f32 %v4532_v38, %v850_v40 }
 0x154   : > { %v852_v42 = vmul.f32 0.5, %v851_v41 }
 0x156   : > { %v853_v43 = vsub.f32 1.5, %v852_v42 }
 0x157   : > { %v4534_v44 = vpop.eup %4533 }
 0x158   : > { %v854_v45 = vmul.f32 %v4532_v38, %v853_v43  ;;  %v860_v46 = vmul.f32 %v4534_v44, %v848_v39  ;;  %vm866_vm4 = vweird.f32 %v4534_v44 }
 0x159   : > { %vm867_vm6 = vmor %vm865_vm5, %vm866_vm4 }
 0x15a   : > { %v861_v47 = vmul.f32 %v4534_v44, %v860_v46  ;;  %v858_v48 = vsel %vm857_vm3, %v4532_v38, %v854_v45 }
 0x15b   : > { %v869_v51 = vmul.f32 %v858_v48, %v5017_v16 }
 0x15c   : > { %v862_v49 = vmul.f32 0.5, %v861_v47 }
 0x15d   : > { %v874_v56 = vmul.f32 %v4523_v52, %v869_v51 }
 0x15e   : > { %v863_v50 = vsub.f32 1.5, %v862_v49 }
 0x15f   : > { %v879_v16 = vadd.f32 %v4524_v57, %v874_v56 }
 0x160   : > { %v864_v53 = vmul.f32 %v4534_v44, %v863_v50 }
 0x162   : > { %v868_v54 = vsel %vm867_vm6, %v4534_v44, %v864_v53 }
 0x163   : > { %v870_v55 = vmul.f32 %v868_v54, %v5022_v20 }
 0x165   : > { %v875_v58 = vmul.f32 %v4523_v52, %v870_v55 }
 0x167   : > { %v880_v59 = vadd.f32 %v4524_v57, %v875_v58 }
 0x169   : > { %v881_v60 = vpack.c.bf16 %v880_v59, %v879_v16 }
 0x16b   : > { %1058 = vmatmul.bf16.vlgmr.msra.gmra.mxu0 %v881_v60  ;;  %1072 = vmatmul.bf16.vlgmr.msra.gmra.mxu1 %v881_v60 }
 0x16c   : > { %1086 = vmatmul.bf16.vlgmr.msra.gmra.mxu2 %v881_v60 }
 0x1e8   : > { %v1059_v20 = vpop.f32.mrf.mxu0  ;;  %v1073_v0 = vpop.f32.mrf.mxu1 }
 0x1e9   : > { %v1060_v1 = vadd.f32 %v1059_v20, %v916_v62  ;;  %v1074_v2 = vadd.f32 %v1073_v0, %v917_v63 }
 0x1eb   : > { %v1092_v3 = vmul.f32 0.17677669, %v1060_v1  ;;  %1357 = vrot.lane.b32.xlu0 %v1074_v2, %s4755_s30  ;;  %1345 = vrot.lane.b32.xlu2 %v1074_v2, %s4756_s17  ;;  %v1365_v17 = vrot.slane %v1074_v2, 4 }
 0x1ed   : > { %1096 = vrot.lane.b32.xlu1 %v1092_v3, %s4756_s17  ;;  %v1117_v22 = vrot.slane %v1092_v3, 4 }
 0x1f0   : > { %v1061_v4 = vpop.f32.mrf.mxu0  ;;  %v1075_v5 = vpop.f32.mrf.mxu1 }
 0x1f1   : > { %v1062_v6 = vadd.f32 %v1061_v4, %v916_v62  ;;  %v5096_v7 = vadd.f32 %v1075_v5, %v917_v63 }
 0x1f3   : > { %v5098_v8 = vmul.f32 0.17677669, %v1062_v6  ;;  %1353 = vrot.lane.b32.xlu0 %v5096_v7, %s4757_s13  ;;  %1351 = vrot.lane.b32.xlu2 %v1074_v2, %s4757_s13  ;;  %v1421_v12 = vrot.slane %v5096_v7, 4 }
 0x1f5   : > { %1098 = vrot.lane.b32.xlu1 %v5098_v8, %s4756_s17 }
 0x1fb   : > { %1104 = vrot.lane.b32.xlu0 %v5098_v8, %s4757_s13  ;;  %1102 = vrot.lane.b32.xlu2 %v1092_v3, %s4757_s13 }
 0x203   : > { %1108 = vrot.lane.b32.xlu2 %v1092_v3, %s4755_s30 }
 0x20b   : > { %1347 = vrot.lane.b32.xlu2 %v5096_v7, %s4756_s17 }
 0x213   : > { %1359 = vrot.lane.b32.xlu2 %v5096_v7, %s4755_s30 }
 0x21b   : > { %1110 = vrot.lane.b32.xlu2 %v5098_v8, %s4755_s30 }
 0x245   : > { %v1346_v9 = vpop.permute.xlu2 %1345 }
 0x246   : > { %v1377_v29 = vrot.slane %v1346_v9, 4 }
 0x24d   : > { %v1352_v10 = vpop.permute.xlu2 %1351 }
 0x24e   : > { %v1363_v14 = vrot.slane %v1352_v10, 4  ;;  %v1366_v21 = vsel %vm1115_vm7, %v1352_v10, %v1365_v17 }
 0x24f   : > { %v1374_v27 = vperm.slane %v1366_v21, %v5115_v18 }
 0x250   : > { %v1364_v23 = vsel %vm1115_vm7, %v1363_v14, %v1074_v2  ;;  %v1173_v14 = vrot.slane %v5098_v8, 4 }
 0x251   : > { %v1370_v30 = vperm.slane %v1364_v23, %v5115_v18  ;;  %v1401_v39 = vrot.slane %v1374_v27, 4 }
 0x253   : > { %v1389_v42 = vrot.slane %v1370_v30, 4 }
 0x255   : > { %v1103_v15 = vpop.permute.xlu2 %1102 }
 0x256   : > { %v1114_v19 = vrot.slane %v1103_v15, 4  ;;  %v1118_v26 = vsel %vm1115_vm7, %v1103_v15, %v1117_v22 }
 0x257   : > { %v1126_v31 = vperm.slane %v1118_v26, %v5115_v18 }
 0x258   : > { %v1116_v28 = vsel %vm1115_vm7, %v1114_v19, %v1092_v3 }
 0x259   : > { %v1122_v35 = vperm.slane %v1116_v28, %v5115_v18  ;;  %v1153_v51 = vrot.slane %v1126_v31, 4 }
 0x25b   : > { %v1141_v50 = vrot.slane %v1122_v35, 4 }
 0x25d   : > { %v1358_v33 = vpop.permute.xlu0 %1357  ;;  %v1109_v34 = vpop.permute.xlu2 %1108 }
 0x25e   : > { %v1375_v36 = vrot.slane %v1358_v33, 4  ;;  %v1378_v37 = vsel %vm1115_vm7, %v1358_v33, %v1377_v29  ;;  %v1127_v38 = vrot.slane %v1109_v34, 4 }
 0x25f   : > { %v1386_v40 = vperm.slane %v1378_v37, %v5115_v18  ;;  %v1097_v41 = vpop.permute.xlu1 %1096 }
 0x260   : > { %v1376_v43 = vsel %vm1115_vm7, %v1375_v36, %v1346_v9  ;;  %v1128_v44 = vsel %vm1115_vm7, %v1127_v38, %v1097_v41  ;;  %v1129_v45 = vrot.slane %v1097_v41, 4 }
 0x261   : > { %v1382_v46 = vperm.slane %v1376_v43, %v5115_v18  ;;  %v1399_v47 = vrot.slane %v1386_v40, 4  ;;  %v1402_v48 = vsel %vm1115_vm7, %v1386_v40, %v1401_v39  ;;  %v1134_v49 = vperm.slane %v1128_v44, %v5115_v18 }
 0x262   : > { %v1410_v52 = vperm.slane %v1402_v48, %v5124_v32  ;;  %v1130_v53 = vsel %vm1115_vm7, %v1109_v34, %v1129_v45 }
 0x263   : > { %v1387_v54 = vrot.slane %v1382_v46, 4  ;;  %v1390_v55 = vsel %vm1115_vm7, %v1382_v46, %v1389_v42  ;;  %v1400_v56 = vsel %vm1115_vm7, %v1399_v47, %v1374_v27  ;;  %v1138_v57 = vperm.slane %v1130_v53, %v5115_v18 }
 0x264   : > { %v1398_v58 = vperm.slane %v1390_v55, %v5124_v32  ;;  %v1406_v16 = vperm.slane %v1400_v56, %v5124_v32  ;;  %v1417_v59 = vrot.slane %v1410_v52, 4  ;;  %v1139_v60 = vrot.slane %v1134_v49, 4 }
 0x265   : > { %v1388_v62 = vsel %vm1115_vm7, %v1387_v54, %v1370_v30  ;;  %v1142_v63 = vsel %vm1115_vm7, %v1134_v49, %v1141_v50  ;;  %v1151_v20 = vrot.slane %v1138_v57, 4  ;;  %v1354_v0 = vpop.permute.xlu0 %1353  ;;  %v1348_v1 = vpop.permute.xlu2 %1347  ;;  %v1154_v5 = vsel %vm1115_vm7, %v1138_v57, %v1153_v51 }
 0x266   : > { %v5143_v2 = vrot.slane %v1398_v58, 4  ;;  %v1415_v3 = vrot.slane %v1406_v16, 4  ;;  %v1418_v4 = vsel %vm1115_vm7, 0.0, %v1417_v59  ;;  %v1140_v6 = vsel %vm1115_vm7, %v1139_v60, %v1122_v35 }
 0x267   : > { %v1150_v9 = vperm.slane %v1142_v63, %v5124_v32  ;;  %v1394_v10 = vperm.slane %v1388_v62, %v5124_v32  ;;  %v1146_v11 = vperm.slane %v1140_v6, %v5124_v32  ;;  %v1491_v17 = vrot.slane %v1418_v4, 4  ;;  %v1099_v30 = vpop.permute.xlu1 %1098 }
 0x268   : > { %v1414_v15 = vsel %vm1115_vm7, 0.0, %v5143_v2  ;;  %v1152_v19 = vsel %vm1115_vm7, %v1151_v20, %v1126_v31  ;;  %v1162_v21 = vperm.slane %v1154_v5, %v5124_v32  ;;  %v1416_v22 = vsel %vm1115_vm7, 0.0, %v1415_v3 }
 0x269   : > { %v5159_v23 = vperm.slane %v1152_v19, %v5124_v32  ;;  %v1165_v24 = vrot.slane %v1150_v9, 4  ;;  %v1419_v25 = vrot.slane %v1354_v0, 4  ;;  %v5162_v26 = vsel %vm1115_vm7, %v1417_v59, %v1406_v16 }
 0x26a   : > { %v1163_v27 = vrot.slane %v1146_v11, 4  ;;  %v5164_v28 = vrot.slane %v1162_v21, 4  ;;  %v1422_v29 = vsel %vm1115_vm7, %v1354_v0, %v1421_v12  ;;  %v1411_v33 = vrot.slane %v1394_v10, 4 }
 0x26b   : > { %v1480_v31 = vrot.slane %v1414_v15, 4  ;;  %v1166_v34 = vsel %vm1115_vm7, 0.0, %v1165_v24  ;;  %v1167_v35 = vrot.slane %v5159_v23, 4  ;;  %v1492_v36 = vsel %vm1115_vm7, %v1491_v17, %v1416_v22 }
 0x26c   : > { %v5172_v37 = vsel %vm1115_vm7, 0.0, %v5164_v28  ;;  %v1420_v38 = vsel %vm1115_vm7, %v1419_v25, %v5096_v7  ;;  %v1430_v39 = vperm.slane %v1422_v29, %v5115_v18  ;;  %v1433_v43 = vrot.slane %v1348_v1, 4 }
 0x26d   : > { %v1105_v40 = vpop.permute.xlu0 %1104  ;;  %v1360_v41 = vpop.permute.xlu2 %1359  ;;  %v1426_v42 = vperm.slane %v1420_v38, %v5115_v18  ;;  %v1185_v44 = vrot.slane %v1099_v30, 4  ;;  %v1164_v46 = vsel %vm1115_vm7, 0.0, %v1163_v27  ;;  %v5180_v47 = vsel %vm1115_vm7, %v1165_v24, %v1146_v11 }
 0x26e   : > { %v1171_v45 = vrot.slane %v1105_v40, 4  ;;  %v1232_v48 = vrot.slane %v1166_v34, 4  ;;  %v1431_v49 = vrot.slane %v1360_v41, 4  ;;  %v5183_v50 = vsel %vm1115_vm7, 0.0, %v1167_v35 }
 0x26f   : > { %v1243_v7 = vrot.slane %v5172_v37, 4  ;;  %v1174_v51 = vsel %vm1115_vm7, %v1105_v40, %v1173_v14  ;;  %v1434_v52 = vsel %vm1115_vm7, %v1360_v41, %v1433_v43  ;;  %v1457_v53 = vrot.slane %v1430_v39, 4 }
 0x270   : > { %v1432_v54 = vsel %vm1115_vm7, %v1431_v49, %v1348_v1  ;;  %v1442_v55 = vperm.slane %v1434_v52, %v5115_v18  ;;  %v1412_v56 = vsel %vm1115_vm7, 0.0, %v1411_v33  ;;  %v1445_v57 = vrot.slane %v1426_v42, 4 }
 0x271   : > { %v1172_v58 = vsel %vm1115_vm7, %v1171_v45, %v5098_v8  ;;  %v1438_v16 = vperm.slane %v1432_v54, %v5115_v18  ;;  %v1481_v59 = vsel %vm1115_vm7, %v1480_v31, %v1412_v56  ;;  %v5196_v60 = vsel %vm1115_vm7, %v1232_v48, %v1164_v46 }
 0x272   : > { %v1182_v62 = vperm.slane %v1174_v51, %v5115_v18  ;;  %v1455_v63 = vrot.slane %v1442_v55, 4  ;;  %v1458_v20 = vsel %vm1115_vm7, %v1442_v55, %v1457_v53  ;;  %v1485_v4 = vperm.slane %v1481_v59, %v5115_v18 }
 0x273   : > { %v1443_v0 = vrot.slane %v1438_v16, 4  ;;  %v1446_v1 = vsel %vm1115_vm7, %v1438_v16, %v1445_v57  ;;  %v1466_v3 = vperm.slane %v1458_v20, %v5124_v32  ;;  %v1178_v8 = vperm.slane %v1172_v58, %v5115_v18 }
 0x274   : > { %v1454_v5 = vperm.slane %v1446_v1, %v5124_v32  ;;  %v1456_v6 = vsel %vm1115_vm7, %v1455_v63, %v1430_v39  ;;  %v1475_v11 = vsel %vm1115_vm7, %v5143_v2, %v1394_v10  ;;  %v1496_v22 = vperm.slane %v1492_v36, %v5115_v18 }
 0x275   : > { %v1111_v9 = vpop.permute.xlu2 %1110  ;;  %v1444_v12 = vsel %vm1115_vm7, %v1443_v0, %v1426_v42  ;;  %v1462_v14 = vperm.slane %v1456_v6, %v5124_v32  ;;  %v1473_v15 = vrot.slane %v1466_v3, 4  ;;  %v1497_v24 = vrot.slane %v1485_v4, 4 }
 0x276   : > { %v1183_v17 = vrot.slane %v1111_v9, 4  ;;  %v5210_v19 = vrot.slane %v1454_v5, 4  ;;  %v1186_v21 = vsel %vm1115_vm7, %v1111_v9, %v1185_v44  ;;  %v1479_v2 = vperm.slane %v1475_v11, %v5115_v18 }
 0x277   : > { %v1471_v25 = vrot.slane %v1462_v14, 4  ;;  %v1474_v27 = vsel %vm1115_vm7, 0.0, %v1473_v15  ;;  %v1197_v10 = vrot.slane %v1178_v8, 4  ;;  %v1209_v33 = vrot.slane %v1182_v62, 4 }
 0x278   : > { %v1184_v29 = vsel %vm1115_vm7, %v1183_v17, %v1099_v30  ;;  %v5218_v31 = vperm.slane %v1444_v12, %v5124_v32  ;;  %v1490_v34 = vperm.slane %v5162_v26, %v5115_v18  ;;  %v5224_v35 = vsel %vm1115_vm7, 0.0, %v5210_v19 }
 0x279   : > { %v1540_v36 = vsel %vm1115_vm7, %v1473_v15, %v1462_v14  ;;  %v1190_v38 = vperm.slane %v1184_v29, %v5115_v18  ;;  %v1194_v30 = vperm.slane %v1186_v21, %v5115_v18  ;;  %v1472_v39 = vsel %vm1115_vm7, 0.0, %v1471_v25 }
 0x27a   : > { %v1545_v40 = vrot.slane %v1474_v27, 4  ;;  %v1498_v41 = vsel %vm1115_vm7, %v1497_v24, %v1479_v2  ;;  %v1509_v42 = vrot.slane %v1496_v22, 4  ;;  %v1499_v45 = vrot.slane %v1479_v2, 4 }
 0x27b   : > { %v1195_v43 = vrot.slane %v1190_v38, 4  ;;  %v1198_v44 = vsel %vm1115_vm7, %v1190_v38, %v1197_v10  ;;  %v1207_v26 = vrot.slane %v1194_v30, 4  ;;  %v1210_v48 = vsel %vm1115_vm7, %v1194_v30, %v1209_v33 }
 0x27c   : > { %v1206_v46 = vperm.slane %v1198_v44, %v5124_v32  ;;  %v1504_v49 = vperm.slane %v1498_v41, %v5124_v32  ;;  %v1510_v51 = vsel %vm1115_vm7, %v1509_v42, %v1490_v34  ;;  %v1218_v54 = vperm.slane %v1210_v48, %v5124_v32 }
 0x27d   : > { %v1196_v52 = vsel %vm1115_vm7, %v1195_v43, %v1178_v8  ;;  %v1208_v53 = vsel %vm1115_vm7, %v1207_v26, %v1182_v62  ;;  %v1516_v55 = vperm.slane %v1510_v51, %v5124_v32  ;;  %v1546_v56 = vsel %vm1115_vm7, %v1545_v40, %v1472_v39 }
 0x27e   : > { %v1202_v57 = vperm.slane %v1196_v52, %v5124_v32  ;;  %v1214_v58 = vperm.slane %v1208_v53, %v5124_v32  ;;  %v1221_v16 = vrot.slane %v1206_v46, 4  ;;  %v1467_v59 = vrot.slane %v5218_v31, 4 }
 0x27f   : > { %v1225_v63 = vrot.slane %v1218_v54, 4  ;;  %v1521_v20 = vrot.slane %v1516_v55, 4  ;;  %v1511_v0 = vrot.slane %v1490_v34, 4  ;;  %v1534_v1 = vrot.slane %v5224_v35, 4 }
 0x280   : > { %v5246_v62 = vperm.slane %v1540_v36, %v5115_v18  ;;  %v1223_v3 = vrot.slane %v1214_v58, 4  ;;  %v1500_v8 = vsel %vm1115_vm7, %v1485_v4, %v1499_v45  ;;  %v5250_v5 = vperm.slane %v1546_v56, %v5115_v18 }
 0x281   : > { %v1222_v6 = vsel %vm1115_vm7, 0.0, %v1221_v16  ;;  %v1226_v9 = vsel %vm1115_vm7, 0.0, %v1225_v63  ;;  %v1522_v11 = vsel %vm1115_vm7, %v1521_v20, %v1504_v49  ;;  %v1219_v12 = vrot.slane %v1202_v57, 4 }
 0x282   : > { %v1224_v14 = vsel %vm1115_vm7, 0.0, %v1223_v3  ;;  %v1297_v15 = vrot.slane %v1226_v9, 4  ;;  %v5257_v17 = vsel %vm1115_vm7, %v1221_v16, %v1202_v57  ;;  %v1583_v21 = vpack.c.bf16 %v1522_v11, %v1522_v11 }
 0x283   : > { %v1508_v4 = vperm.slane %v1500_v8, %v5124_v32  ;;  %v1512_v24 = vsel %vm1115_vm7, %v1496_v22, %v1511_v0  ;;  %v1286_v25 = vrot.slane %v1222_v6, 4  ;;  %v1292_v27 = vsel %vm1115_vm7, %v1225_v63, %v1214_v58 }
 0x284   : > { %v1520_v29 = vperm.slane %v1512_v24, %v5124_v32  ;;  %v1523_v2 = vrot.slane %v1504_v49, 4  ;;  %v1298_v10 = vsel %vm1115_vm7, %v1297_v15, %v1224_v14  ;;  %v1849_v33 = vsel %vm1844_vm8, %v1583_v21, 0 }
 0x285   : > { %v1527_v34 = vrot.slane %v1508_v4, 4  ;;  %v1231_v35 = vperm.slane %v5180_v47, %v5115_v18  ;;  %v1220_v36 = vsel %vm1115_vm7, 0.0, %v1219_v12  ;;  %1858 = vmatpush.bf16.xpose.msra.mxu3 %v1849_v33  ;;  %v1237_v22 = vperm.slane %v5196_v60, %v5115_v18 }
 0x286   : > { %v1524_v38 = vsel %vm1115_vm7, %v1516_v55, %v1523_v2  ;;  %v1238_v30 = vsel %vm1115_vm7, %v5164_v28, %v5159_v23  ;;  %v1525_v39 = vrot.slane %v1520_v29, 4  ;;  %v5277_v47 = vperm.slane %v1298_v10, %v5115_v18 }
 0x287   : > { %v1528_v40 = vsel %vm1115_vm7, %v1520_v29, %v1527_v34  ;;  %v1584_v41 = vpack.c.bf16 %v1524_v38, %v1524_v38  ;;  %v1242_v42 = vperm.slane %v1238_v30, %v5115_v18  ;;  %v1244_v44 = vsel %vm1115_vm7, %v1243_v7, %v5183_v50 }
 0x288   : > { %v1586_v43 = vpack.c.bf16 %v1528_v40, %v1528_v40  ;;  %v1251_v60 = vrot.slane %v1231_v35, 4  ;;  %v1248_v23 = vperm.slane %v1244_v44, %v5115_v18  ;;  %v1249_v28 = vrot.slane %v1237_v22, 4 }
 0x289   : > { %v1868_v26 = vsel %vm1844_vm8, %v1584_v41, 0  ;;  %v1263_v45 = vrot.slane %v1242_v42, 4  ;;  %v1287_v46 = vsel %vm1115_vm7, %v1286_v25, %v1220_v36  ;;  %v5287_v48 = vperm.slane %v1292_v27, %v5115_v18 }
 0x28a   : > { %v1906_v49 = vsel %vm1844_vm8, %v1586_v43, 0  ;;  %v1252_v51 = vsel %vm1115_vm7, %v1237_v22, %v1251_v60  ;;  %v1261_v37 = vrot.slane %v1248_v23, 4  ;;  %v1526_v52 = vsel %vm1115_vm7, %v1525_v39, %v1508_v4 }
 0x28b   : > { %1915 = vmatpush.bf16.xpose.msrb.mxu0 %v1906_v49  ;;  %v5292_v50 = vperm.slane %v1252_v51, %v5124_v32  ;;  %v1264_v7 = vsel %vm1115_vm7, %v1248_v23, %v1263_v45  ;;  %v1315_v53 = vrot.slane %v5277_v47, 4  ;;  %v1468_v55 = vsel %vm1115_vm7, 0.0, %v1467_v59 }
 0x28c   : > { %v5298_v54 = vperm.slane %v1264_v7, %v5124_v32  ;;  %v1529_v56 = vsel %vm1115_vm7, %v5210_v19, %v5218_v31  ;;  %v1250_v57 = vsel %vm1115_vm7, %v1249_v28, %v1231_v35  ;;  %v1262_v58 = vsel %vm1115_vm7, %v1261_v37, %v1242_v42 }
 0x28d   : > { %1877 = vmatpush.bf16.xpose.msrb.mxu3 %v1868_v26  ;;  %v1279_v16 = vrot.slane %v5292_v50, 4  ;;  %v1533_v63 = vperm.slane %v1529_v56, %v5115_v18  ;;  %v5309_v20 = vperm.slane %v1262_v58, %v5124_v32  ;;  %v1585_v0 = vpack.c.bf16 %v1526_v52, %v1526_v52 }
 0x28e   : > { %v1535_v3 = vsel %vm1115_vm7, %v1534_v1, %v1468_v55  ;;  %v1563_v59 = vrot.slane %v5250_v5, 4  ;;  %v1565_v6 = vrot.slane %v5246_v62, 4  ;;  %v1256_v9 = vperm.slane %v1250_v57, %v5124_v32 }
 0x28f   : > { %v1280_v8 = vsel %vm1115_vm7, %v5298_v54, %v1279_v16  ;;  %v1539_v19 = vperm.slane %v1535_v3, %v5115_v18  ;;  %v1553_v31 = vrot.slane %v1533_v63, 4  ;;  %v1273_v11 = vrot.slane %v5309_v20, 4 }
 0x290   : > { %v1338_v12 = vpack.c.bf16 %v1280_v8, %v1280_v8  ;;  %v1564_v14 = vsel %vm1115_vm7, %v1563_v59, %v5246_v62  ;;  %v1566_v4 = vsel %vm1115_vm7, %v5250_v5, %v1565_v6  ;;  %v1317_v24 = vrot.slane %v5287_v48, 4 }
 0x291   : > { %v1551_v15 = vrot.slane %v1539_v19, 4  ;;  %v1570_v1 = vperm.slane %v1564_v14, %v5124_v32  ;;  %v1554_v21 = vsel %vm1115_vm7, %v1539_v19, %v1553_v31  ;;  %v1274_v25 = vsel %vm1115_vm7, %v1273_v11, %v1256_v9 }
 0x292   : > { %3950 = vmatmul.msk.bf16.vlgmr.msrb.gmra.mxu0 %vm1844_vm8, %v1338_v12  ;;  %v1562_v27 = vperm.slane %v1554_v21, %v5124_v32  ;;  %v1574_v29 = vperm.slane %v1566_v4, %v5124_v32  ;;  %v1335_v2 = vpack.c.bf16 %v1274_v25, %v1274_v25  ;;  %v1285_v33 = vperm.slane %v5257_v17, %v5115_v18  ;;  %v1087_v25 = vpop.f32.mrf.mxu2 }
 0x293   : > { %v1552_v62 = vsel %vm1115_vm7, %v1551_v15, %v1533_v63  ;;  %v1575_v10 = vrot.slane %v1570_v1, 4  ;;  %v1291_v35 = vperm.slane %v1287_v46, %v5115_v18  ;;  %v1316_v36 = vsel %vm1115_vm7, %v1315_v53, %v5287_v48 }
 0x294   : > { %v1558_v34 = vperm.slane %v1552_v62, %v5124_v32  ;;  %v1581_v5 = vrot.slane %v1562_v27, 4  ;;  %3947 = vmatmul.msk.bf16.vlgmr.msra.gmra.mxu3 %vm1844_vm8, %v1335_v2  ;;  %v1887_v38 = vsel %vm1844_vm8, %v1585_v0, 0  ;;  %v1305_v22 = vrot.slane %v1285_v33, 4 }
 0x295   : > { %v1322_v30 = vperm.slane %v1316_v36, %v5124_v32  ;;  %1896 = vmatpush.bf16.xpose.msra.mxu3 %v1887_v38  ;;  %v1303_v41 = vrot.slane %v1291_v35, 4  ;;  %v1318_v28 = vsel %vm1115_vm7, %v5277_v47, %v1317_v24  ;;  %v1579_v51 = vrot.slane %v1574_v29, 4 }
 0x296   : > { %v1576_v39 = vsel %vm1115_vm7, %v1575_v10, %v1558_v34  ;;  %v1577_v40 = vrot.slane %v1558_v34, 4  ;;  %v1582_v17 = vsel %vm1115_vm7, %v1574_v29, %v1581_v5  ;;  %v1306_v23 = vsel %vm1115_vm7, %v1291_v35, %v1305_v22 }
 0x297   : > { %v1587_v42 = vpack.c.bf16 %v1576_v39, %v1576_v39  ;;  %v1590_v43 = vpack.c.bf16 %v1582_v17, %v1582_v17  ;;  %v1327_v44 = vrot.slane %v1322_v30, 4  ;;  %v1304_v26 = vsel %vm1115_vm7, %v1303_v41, %v1285_v33 }
 0x298   : > { %v1578_v60 = vsel %vm1115_vm7, %v1570_v1, %v1577_v40  ;;  %v1310_v49 = vperm.slane %v1304_v26, %v5124_v32  ;;  %v1314_v37 = vperm.slane %v1306_v23, %v5124_v32  ;;  %v1275_v53 = vrot.slane %v1256_v9, 4 }
 0x299   : > { %v1925_v45 = vsel %vm1844_vm8, %v1587_v42, 0  ;;  %v1982_v46 = vsel %vm1844_vm8, %v1590_v43, 0  ;;  %v1588_v48 = vpack.c.bf16 %v1578_v60, %v1578_v60  ;;  %v1326_v47 = vperm.slane %v1318_v28, %v5124_v32 }
 0x29a   : > { %1934 = vmatpush.bf16.xpose.msrb.mxu2 %v1925_v45  ;;  %1991 = vmatpush.bf16.xpose.msra.mxu0 %v1982_v46  ;;  %v1328_v52 = vsel %vm1115_vm7, %v1327_v44, %v1310_v49  ;;  %v1333_v55 = vrot.slane %v1314_v37, 4  ;;  %v1580_v57 = vsel %vm1115_vm7, %v1579_v51, %v1562_v27  ;;  %v1276_v63 = vsel %vm1115_vm7, %v5309_v20, %v1275_v53  ;;  %v1089_v10 = vpop.f32.mrf.mxu2 }
 0x29b   : > { %v1944_v7 = vsel %vm1844_vm8, %v1588_v48, 0  ;;  %v1339_v56 = vpack.c.bf16 %v1328_v52, %v1328_v52  ;;  %v1589_v0 = vpack.c.bf16 %v1580_v57, %v1580_v57  ;;  %v1336_v3 = vpack.c.bf16 %v1276_v63, %v1276_v63 }
 0x29c   : > { %v1334_v58 = vsel %vm1115_vm7, %v1326_v47, %v1333_v55  ;;  %v1329_v8 = vrot.slane %v1310_v49, 4  ;;  %v1277_v19 = vrot.slane %v5298_v54, 4  ;;  %v1331_v11 = vrot.slane %v1326_v47, 4 }
 0x29d   : > { %v1342_v16 = vpack.c.bf16 %v1334_v58, %v1334_v58  ;;  %v1963_v59 = vsel %vm1844_vm8, %v1589_v0, 0  ;;  %v1839_v15 = vlaneseq  ;;  %v918_v48 = vperm.slane %v5089_v61, 2 }
 0x29e   : > { %v1330_v31 = vsel %vm1115_vm7, %v1322_v30, %v1329_v8  ;;  %v1278_v20 = vsel %vm1115_vm7, %v1277_v19, %v5292_v50  ;;  %v1332_v12 = vsel %vm1115_vm7, %v1331_v11, %v1314_v37 }
 0x29f   : > { %v1340_v6 = vpack.c.bf16 %v1330_v31, %v1330_v31  ;;  %v1337_v9 = vpack.c.bf16 %v1278_v20, %v1278_v20  ;;  %v1341_v14 = vpack.c.bf16 %v1332_v12, %v1332_v12  ;;  %v5370_v1 = vshrl.u32 %v1839_v15, 7 }
 0x2a0   : > { %v1842_v54 = vand.u32 127, %v1839_v15  ;;  %v5408_v51 = vadd.f32 %v1089_v10, %v918_v48  ;;  %v5413_v52 = vadd.f32 %v1087_v25, %v918_v48 }
 0x2a1   : > { %3951 = vmatmul.msk.bf16.vlgmr.msrb.gmra.mxu2 %vm1844_vm8, %v1339_v56 }
 0x2a2   : > { %1953 = vmatpush.bf16.xpose.msra.mxu2 %v1944_v7  ;;  %3954 = vmatmul.msk.bf16.vlgmr.msra.gmra.mxu0 %vm1844_vm8, %v1342_v16  ;;  %vm5373_vm9 = vcmp.le.s32.totalorder %v1842_v54, %v5370_v1  ;;  %v4493_v53 = vpack.i.bf16 %v5408_v51, %v5413_v52 }
 0x2a4   : > { %3948 = vmatmul.msk.bf16.vlgmr.msrb.gmra.mxu3 %vm1844_vm8, %v1336_v3 }
 0x2a5   : > { %1972 = vmatpush.bf16.xpose.msrb.mxu3 %v1963_v59 }
 0x2b1   : > { %3952 = vmatmul.msk.bf16.vlgmr.msra.gmra.mxu2 %vm1844_vm8, %v1340_v6 }
 0x2b4   : > { %3949 = vmatmul.msk.bf16.vlgmr.msra.gmra.mxu3 %vm1844_vm8, %v1337_v9 }
 0x2c4   : > { %3953 = vmatmul.msk.bf16.vlgmr.msrb.gmra.mxu3 %vm1844_vm8, %v1341_v14 }
 0x30f   : > { %v1917_v50 = vpop.f32.mrf.mxu0 }
 0x310   : > { %v5379_v4 = vsel %vm5373_vm9, %v1917_v50, -1e+30 }
 0x311   : > { %v2017_v24 = vsel %vm2007_vm10, %v5379_v4, -inf }
 0x312   : > { %2018 = vmax.xlane.f32.xlu1 %v2017_v24 }
 0x317   : > { %v1919_v27 = vpop.f32.mrf.mxu0  ;;  %v1860_v29 = vpop.f32.mrf.mxu3 }
 0x318   : > { %v1999_v2 = vsel %vm5373_vm9, %v1860_v29, -1e+30 }
 0x319   : > { %v2008_v62 = vsel %vm2007_vm10, %v1999_v2, -inf }
 0x31a   : > { %2009 = vmax.xlane.f32.xlu2 %v2008_v62 }
 0x31f   : > { %v1993_v33 = vpop.f32.mrf.mxu0  ;;  %v1862_v34 = vpop.f32.mrf.mxu3 }
 0x320   : > { %v5388_v5 = vsel %vm5373_vm9, %v1993_v33, -1e+30 }
 0x321   : > { %v2029_v35 = vsel %vm2007_vm10, %v5388_v5, -inf }
 0x322   : > { %2030 = vmax.xlane.f32.xlu0 %v2029_v35 }
 0x324   : > { %v1936_v36 = vpop.f32.mrf.mxu2 }
 0x325   : > { %v5394_v38 = vsel %vm5373_vm9, %v1936_v36, -1e+30 }
 0x326   : > { %v2020_v22 = vsel %vm2007_vm10, %v5394_v38, -inf }
 0x327   : > { %v1995_v30 = vpop.f32.mrf.mxu0  ;;  %2021 = vmax.xlane.f32.xlu1 %v2020_v22  ;;  %v1879_v39 = vpop.f32.mrf.mxu3 }
 0x328   : > { %v2000_v40 = vsel %vm5373_vm9, %v1879_v39, -1e+30 }
 0x329   : > { %v2011_v17 = vsel %vm2007_vm10, %v2000_v40, -inf }
 0x32a   : > { %2012 = vmax.xlane.f32.xlu0 %v2011_v17 }
 0x32c   : > { %v1938_v41 = vpop.f32.mrf.mxu2 }
 0x32f   : > { %v1881_v42 = vpop.f32.mrf.mxu3 }
 0x330   : > { %v1669_v42 = vrot.slane %v5408_v51, 4 }
 0x334   : > { %v1955_v43 = vpop.f32.mrf.mxu2 }
 0x335   : > { %v2004_v44 = vsel %vm5373_vm9, %v1955_v43, -1e+30 }
 0x336   : > { %v2023_v60 = vsel %vm2007_vm10, %v2004_v44, -inf }
 0x337   : > { %2024 = vmax.xlane.f32.xlu2 %v2023_v60  ;;  %v1898_v26 = vpop.f32.mrf.mxu3 }
 0x338   : > { %v2001_v23 = vsel %vm5373_vm9, %v1898_v26, -1e+30  ;;  %v1613_v26 = vrot.slane %v5413_v52, 4 }
 0x339   : > { %v2014_v28 = vsel %vm2007_vm10, %v2001_v23, -inf }
 0x33a   : > { %2015 = vmax.xlane.f32.xlu1 %v2014_v28 }
 0x33c   : > { %v1957_v45 = vpop.f32.mrf.mxu2 }
 0x33f   : > { %v1900_v46 = vpop.f32.mrf.mxu3 }
 0x347   : > { %v1974_v49 = vpop.f32.mrf.mxu3 }
 0x348   : > { %v2005_v37 = vsel %vm5373_vm9, %v1974_v49, -1e+30 }
 0x349   : > { %v2026_v7 = vsel %vm2007_vm10, %v2005_v37, -inf }
 0x34a   : > { %2027 = vmax.xlane.f32.xlu0 %v2026_v7 }
 0x34f   : > { %4494 = vrot.lane.b32.xlu2 %v4493_v53, %s4756_s17  ;;  %v1976_v47 = vpop.f32.mrf.mxu3 }
 0x353   : > { %4499 = vrot.lane.b32.xlu1 %v4493_v53, %s4757_s13 }
 0x35e   : > { %4504 = vrot.lane.b32.xlu0 %v4493_v53, %s4755_s30 }
 0x385   : > { %v2019_v63 = vpop.xlane.xlu1 %2018 }
 0x386   : > { %v2035_v14 = vsub.f32 %v5379_v4, %v2019_v63 }
 0x388   : > { %v2046_v21 = vmul.f32 1.442695, %v2035_v14 }
 0x38d   : > { %v2010_v61 = vpop.xlane.xlu2 %2009 }
 0x38e   : > { %v2032_v55 = vsub.f32 %v1999_v2, %v2010_v61 }
 0x390   : > { %v2040_v56 = vmul.f32 1.442695, %v2032_v55 }
 0x392   : > { %4535 = vpow2.f32 %v2040_v56 }
 0x395   : > { %v2031_v57 = vpop.xlane.xlu0 %2030 }
 0x396   : > { %v2039_v10 = vsub.f32 %v5388_v5, %v2031_v57 }
 0x398   : > { %v5420_v58 = vpop.eup %4535  ;;  %v2054_v35 = vmul.f32 1.442695, %v2039_v10 }
 0x399   : > { %v2056_v16 = vsel %vm2007_vm10, %v5420_v58, 0.0 }
 0x39a   : > { %2057 = vadd.xlane.f32.xlu1 %v2056_v16  ;;  %v2022_v8 = vpop.xlane.xlu1 %2021 }
 0x39b   : > { %v2036_v25 = vsub.f32 %v5394_v38, %v2022_v8 }
 0x39d   : > { %v2013_v0 = vpop.xlane.xlu0 %2012  ;;  %v2048_v29 = vmul.f32 1.442695, %v2036_v25 }
 0x39e   : > { %v2033_v3 = vsub.f32 %v2000_v40, %v2013_v0 }
 0x3a0   : > { %v2042_v59 = vmul.f32 1.442695, %v2033_v3 }
 0x3a2   : > { %4537 = vpow2.f32 %v2042_v59 }
 0x3a8   : > { %v5424_v19 = vpop.eup %4537 }
 0x3a9   : > { %v2059_v31 = vsel %vm2007_vm10, %v5424_v19, 0.0 }
 0x3aa   : > { %v2025_v6 = vpop.xlane.xlu2 %2024  ;;  %2060 = vadd.xlane.f32.xlu0 %v2059_v31 }
 0x3ab   : > { %v2037_v20 = vsub.f32 %v2004_v44, %v2025_v6 }
 0x3ad   : > { %v2050_v9 = vmul.f32 1.442695, %v2037_v20  ;;  %v2016_v11 = vpop.xlane.xlu1 %2015 }
 0x3ae   : > { %v2034_v12 = vsub.f32 %v2001_v23, %v2016_v11 }
 0x3af   : > { %4539 = vpow2.f32 %v2050_v9 }
 0x3b0   : > { %v2044_v15 = vmul.f32 1.442695, %v2034_v12 }
 0x3b2   : > { %4541 = vpow2.f32 %v2044_v15  ;;  %v4495_v40 = vpop.permute.xlu2 %4494 }
 0x3b3   : > { %4543 = vpow2.f32 %v2046_v21  ;;  %v4497_v44 = vunpack.i.h.bf16 %v4495_v40  ;;  %v4496_v60 = vunpack.i.l.bf16 %v4495_v40 }
 0x3b4   : > { %4545 = vpow2.f32 %v2048_v29 }
 0x3b5   : > { %v5429_v54 = vpop.eup %4539  ;;  %v1681_v49 = vrot.slane %v4497_v44, 4 }
 0x3b6   : > { %v2071_v50 = vsel %vm2007_vm10, %v5429_v54, 0.0 }
 0x3b7   : > { %2072 = vadd.xlane.f32.xlu1 %v2071_v50 }
 0x3b8   : > { %v5433_v24 = vpop.eup %4541 }
 0x3b9   : > { %v2062_v27 = vsel %vm2007_vm10, %v5433_v24, 0.0  ;;  %v5438_v2 = vpop.eup %4543 }
 0x3ba   : > { %2063 = vadd.xlane.f32.xlu2 %v2062_v27  ;;  %v2065_v34 = vsel %vm2007_vm10, %v5438_v2, 0.0  ;;  %v5443_v38 = vpop.eup %4545 }
 0x3bb   : > { %v2068_v5 = vsel %vm2007_vm10, %v5443_v38, 0.0 }
 0x3bd   : > { %v2028_v4 = vpop.xlane.xlu0 %2027 }
 0x3be   : > { %v2038_v62 = vsub.f32 %v2005_v37, %v2028_v4  ;;  %v1625_v37 = vrot.slane %v4496_v60, 4 }
 0x3c0   : > { %v2052_v33 = vmul.f32 1.442695, %v2038_v62 }
 0x3c2   : > { %4547 = vpow2.f32 %v2052_v33  ;;  %2066 = vadd.xlane.f32.xlu2 %v2065_v34 }
 0x3c3   : > { %4549 = vpow2.f32 %v2054_v35 }
 0x3c5   : > { %v4500_v36 = vpop.permute.xlu1 %4499 }
 0x3c6   : > { %v4502_v22 = vunpack.i.h.bf16 %v4500_v36  ;;  %v4501_v30 = vunpack.i.l.bf16 %v4500_v36 }
 0x3c8   : > { %v5445_v39 = vpop.eup %4547  ;;  %v1667_v41 = vrot.slane %v4502_v22, 4  ;;  %v1611_v43 = vrot.slane %v4501_v30, 4  ;;  %v1670_v28 = vsel %vm1115_vm7, %v4502_v22, %v1669_v42  ;;  %v1614_v46 = vsel %vm1115_vm7, %v4501_v30, %v1613_v26 }
 0x3c9   : > { %v2074_v17 = vsel %vm2007_vm10, %v5445_v39, 0.0  ;;  %v5453_v23 = vpop.eup %4549  ;;  %v1678_v7 = vperm.slane %v1670_v28, %v5115_v18  ;;  %v1622_v55 = vperm.slane %v1614_v46, %v5115_v18 }
 0x3ca   : > { %2069 = vadd.xlane.f32.xlu2 %v2068_v5  ;;  %2075 = vadd.xlane.f32.xlu0 %v2074_v17  ;;  %v1668_v45 = vsel %vm1115_vm7, %v1667_v41, %v5408_v51  ;;  %v1612_v48 = vsel %vm1115_vm7, %v1611_v43, %v5413_v52  ;;  %v2077_v47 = vsel %vm2007_vm10, %v5453_v23, 0.0 }
 0x3cb   : > { %v1674_v61 = vperm.slane %v1668_v45, %v5115_v18  ;;  %v1618_v51 = vperm.slane %v1612_v48, %v5115_v18  ;;  %v1705_v3 = vrot.slane %v1678_v7, 4  ;;  %v1649_v6 = vrot.slane %v1622_v55, 4 }
 0x3cd   : > { %v1693_v31 = vrot.slane %v1674_v61, 4  ;;  %v1637_v21 = vrot.slane %v1618_v51, 4 }
 0x3d0   : > { %v4505_v53 = vpop.permute.xlu0 %4504 }
 0x3d1   : > { %v4507_v56 = vunpack.i.h.bf16 %v4505_v53  ;;  %v4506_v57 = vunpack.i.l.bf16 %v4505_v53 }
 0x3d2   : > { %2078 = vadd.xlane.f32.xlu0 %v2077_v47 }
 0x3d3   : > { %v1679_v16 = vrot.slane %v4507_v56, 4  ;;  %v1682_v52 = vsel %vm1115_vm7, %v4507_v56, %v1681_v49  ;;  %v1623_v63 = vrot.slane %v4506_v57, 4  ;;  %v1626_v0 = vsel %vm1115_vm7, %v4506_v57, %v1625_v37 }
 0x3d4   : > { %v1690_v59 = vperm.slane %v1682_v52, %v5115_v18  ;;  %v1634_v8 = vperm.slane %v1626_v0, %v5115_v18 }
 0x3d5   : > { %v1680_v20 = vsel %vm1115_vm7, %v1679_v16, %v4497_v44  ;;  %v1624_v9 = vsel %vm1115_vm7, %v1623_v63, %v4496_v60 }
 0x3d6   : > { %v1686_v11 = vperm.slane %v1680_v20, %v5115_v18  ;;  %v1703_v12 = vrot.slane %v1690_v59, 4  ;;  %v1706_v14 = vsel %vm1115_vm7, %v1690_v59, %v1705_v3  ;;  %v1630_v15 = vperm.slane %v1624_v9, %v5115_v18 }
 0x3d7   : > { %v1714_v50 = vperm.slane %v1706_v14, %v5124_v32  ;;  %v1647_v25 = vrot.slane %v1634_v8, 4  ;;  %v1650_v27 = vsel %vm1115_vm7, %v1634_v8, %v1649_v6 }
 0x3d8   : > { %v1691_v29 = vrot.slane %v1686_v11, 4  ;;  %v1694_v4 = vsel %vm1115_vm7, %v1686_v11, %v1693_v31  ;;  %v1704_v62 = vsel %vm1115_vm7, %v1703_v12, %v1678_v7  ;;  %v1635_v10 = vrot.slane %v1630_v15, 4 }
 0x3d9   : > { %v1702_v33 = vperm.slane %v1694_v4, %v5124_v32  ;;  %v1710_v34 = vperm.slane %v1704_v62, %v5124_v32  ;;  %v1721_v35 = vrot.slane %v1714_v50, 4  ;;  %v1638_v36 = vsel %vm1115_vm7, %v1630_v15, %v1637_v21 }
 0x3da   : > { %v1692_v22 = vsel %vm1115_vm7, %v1691_v29, %v1674_v61  ;;  %v1636_v30 = vsel %vm1115_vm7, %v1635_v10, %v1618_v51  ;;  %v1646_v40 = vperm.slane %v1638_v36, %v5124_v32  ;;  %v1648_v5 = vsel %vm1115_vm7, %v1647_v25, %v1622_v55 }
 0x3db   : > { %v1698_v17 = vperm.slane %v1692_v22, %v5124_v32  ;;  %v1717_v41 = vrot.slane %v1702_v33, 4  ;;  %v1719_v42 = vrot.slane %v1710_v34, 4  ;;  %v1722_v43 = vsel %vm1115_vm7, 0.0, %v1721_v35 }
 0x3dc   : > { %v1788_v44 = vsel %vm1115_vm7, %v1721_v35, %v1710_v34  ;;  %v1793_v60 = vrot.slane %v1722_v43, 4  ;;  %v1642_v26 = vperm.slane %v1636_v30, %v5124_v32  ;;  %v1654_v28 = vperm.slane %v1648_v5, %v5124_v32 }
 0x3dd   : > { %v1715_v45 = vrot.slane %v1698_v17, 4  ;;  %v1718_v46 = vsel %vm1115_vm7, 0.0, %v1717_v41  ;;  %v1720_v48 = vsel %vm1115_vm7, 0.0, %v1719_v42  ;;  %v1792_v49 = vperm.slane %v1788_v44, %v5115_v18 }
 0x3de   : > { %v1782_v37 = vrot.slane %v1718_v46, 4  ;;  %v1658_v7 = vperm.slane %v1650_v27, %v5124_v32  ;;  %v1659_v53 = vrot.slane %v1642_v26, 4  ;;  %v1661_v47 = vrot.slane %v1646_v40, 4 }
 0x3df   : > { %v1663_v61 = vrot.slane %v1654_v28, 4  ;;  %v1716_v55 = vsel %vm1115_vm7, 0.0, %v1715_v45  ;;  %v1777_v56 = vsel %vm1115_vm7, %v1717_v41, %v1698_v17  ;;  %v1794_v57 = vsel %vm1115_vm7, %v1793_v60, %v1720_v48 }
 0x3e0   : > { %v1662_v51 = vsel %vm1115_vm7, 0.0, %v1661_v47  ;;  %v1665_v16 = vrot.slane %v1658_v7, 4  ;;  %v1660_v52 = vsel %vm1115_vm7, 0.0, %v1659_v53  ;;  %v1723_v63 = vsel %vm1115_vm7, %v1661_v47, %v1642_v26 }
 0x3e1   : > { %v1664_v0 = vsel %vm1115_vm7, 0.0, %v1663_v61  ;;  %v1728_v3 = vrot.slane %v1662_v51, 4  ;;  %v1727_v59 = vperm.slane %v1723_v63, %v5115_v18  ;;  %v1781_v8 = vperm.slane %v1777_v56, %v5115_v18 }
 0x3e2   : > { %v1666_v31 = vsel %vm1115_vm7, 0.0, %v1665_v16  ;;  %v1734_v6 = vsel %vm1115_vm7, %v1665_v16, %v1654_v28  ;;  %v1783_v20 = vsel %vm1115_vm7, %v1782_v37, %v1716_v55  ;;  %v1798_v9 = vperm.slane %v1794_v57, %v5115_v18 }
 0x3e3   : > { %v1738_v11 = vperm.slane %v1734_v6, %v5115_v18  ;;  %v1739_v12 = vrot.slane %v1666_v31, 4  ;;  %v1729_v14 = vsel %vm1115_vm7, %v1728_v3, %v1660_v52  ;;  %v1747_v15 = vrot.slane %v1727_v59, 4 }
 0x3e4   : > { %v1733_v21 = vperm.slane %v1729_v14, %v5115_v18  ;;  %v1787_v50 = vperm.slane %v1783_v20, %v5115_v18  ;;  %v1801_v25 = vrot.slane %v1781_v8, 4  ;;  %v1813_v27 = vrot.slane %v1792_v49, 4 }
 0x3e5   : > { %v1740_v29 = vsel %vm1115_vm7, %v1739_v12, %v1664_v0  ;;  %v1759_v4 = vrot.slane %v1738_v11, 4  ;;  %v1811_v62 = vrot.slane %v1798_v9, 4 }
 0x3e6   : > { %v1744_v10 = vperm.slane %v1740_v29, %v5115_v18  ;;  %v1748_v33 = vsel %vm1115_vm7, %v1733_v21, %v1747_v15  ;;  %v1802_v34 = vsel %vm1115_vm7, %v1787_v50, %v1801_v25  ;;  %v1814_v35 = vsel %vm1115_vm7, %v1798_v9, %v1813_v27 }
 0x3e7   : > { %v1756_v36 = vperm.slane %v1748_v33, %v5124_v32  ;;  %v1810_v22 = vperm.slane %v1802_v34, %v5124_v32  ;;  %v1822_v30 = vperm.slane %v1814_v35, %v5124_v32  ;;  %v1745_v40 = vrot.slane %v1733_v21, 4 }
 0x3e8   : > { %v1760_v5 = vsel %vm1115_vm7, %v1744_v10, %v1759_v4  ;;  %v1757_v17 = vrot.slane %v1744_v10, 4  ;;  %v1799_v41 = vrot.slane %v1787_v50, 4  ;;  %v1812_v42 = vsel %vm1115_vm7, %v1811_v62, %v1792_v49 }
 0x3e9   : > { %v1768_v43 = vperm.slane %v1760_v5, %v5124_v32  ;;  %v1827_v44 = vrot.slane %v1822_v30, 4  ;;  %v1746_v60 = vsel %vm1115_vm7, %v1745_v40, %v1727_v59  ;;  %v1775_v26 = vrot.slane %v1756_v36, 4 }
 0x3ea   : > { %v1752_v28 = vperm.slane %v1746_v60, %v5124_v32  ;;  %v1758_v45 = vsel %vm1115_vm7, %v1757_v17, %v1738_v11  ;;  %v1800_v46 = vsel %vm1115_vm7, %v1799_v41, %v1781_v8  ;;  %v1818_v48 = vperm.slane %v1812_v42, %v5124_v32 }
 0x3eb   : > { %v1773_v37 = vrot.slane %v1768_v43, 4  ;;  %v1828_v7 = vsel %vm1115_vm7, %v1827_v44, %v1810_v22  ;;  %v1764_v53 = vperm.slane %v1758_v45, %v5124_v32  ;;  %v1776_v49 = vsel %vm1115_vm7, %v1768_v43, %v1775_v26 }
 0x3ec   : > { %v1837_v47 = vpack.c.bf16 %v1828_v7, %v1828_v7  ;;  %v1771_v61 = vrot.slane %v1752_v28, 4  ;;  %v1834_v55 = vpack.c.bf16 %v1776_v49, %v1776_v49  ;;  %v1806_v56 = vperm.slane %v1800_v46, %v5124_v32 }
 0x3ed   : > { %v1774_v57 = vsel %vm1115_vm7, %v1773_v37, %v1756_v36  ;;  %v1769_v51 = vrot.slane %v1764_v53, 4  ;;  %v1823_v16 = vrot.slane %v1818_v48, 4  ;;  %v1829_v52 = vrot.slane %v1810_v22, 4 }
 0x3ee   : > { %v1833_v63 = vpack.c.bf16 %v1774_v57, %v1774_v57  ;;  %v2223_v0 = vsel %vm2107_vm11, %v1837_v47, 0  ;;  %v2166_v3 = vsel %vm2107_vm11, %v1834_v55, 0  ;;  %v1772_v59 = vsel %vm1115_vm7, %v1764_v53, %v1771_v61 }
 0x3ef   : > { %v1770_v8 = vsel %vm1115_vm7, %v1769_v51, %v1752_v28  ;;  %2175 = vmatpush.bf16.msrb.mxu0 %v2166_v3  ;;  %v1824_v31 = vsel %vm1115_vm7, %v1823_v16, %v1806_v56  ;;  %v1830_v6 = vsel %vm1115_vm7, %v1822_v30, %v1829_v52  ;;  %v1832_v20 = vpack.c.bf16 %v1772_v59, %v1772_v59 }
 0x3f0   : > { %v2147_v9 = vsel %vm2107_vm11, %v1833_v63, 0  ;;  %v1831_v11 = vpack.c.bf16 %v1770_v8, %v1770_v8  ;;  %v1835_v12 = vpack.c.bf16 %v1824_v31, %v1824_v31  ;;  %v1838_v14 = vpack.c.bf16 %v1830_v6, %v1830_v6 }
 0x3f1   : > { %2156 = vmatpush.bf16.msra.mxu3 %v2147_v9  ;;  %v2128_v15 = vsel %vm2107_vm11, %v1832_v20, 0  ;;  %v1825_v21 = vrot.slane %v1806_v56, 4 }
 0x3f2   : > { %v2109_v50 = vsel %vm2107_vm11, %v1831_v11, 0  ;;  %v2185_v25 = vsel %vm2107_vm11, %v1835_v12, 0  ;;  %v2242_v27 = vsel %vm2107_vm11, %v1838_v14, 0  ;;  %2137 = vmatpush.bf16.msrb.mxu2 %v2128_v15 }
 0x3f3   : > { %2118 = vmatpush.bf16.msrb.mxu1 %v2109_v50  ;;  %2251 = vmatpush.bf16.msra.mxu0 %v2242_v27  ;;  %v1826_v29 = vsel %vm1115_vm7, %v1818_v48, %v1825_v21 }
 0x3f4   : > { %v1836_v4 = vpack.c.bf16 %v1826_v29, %v1826_v29 }
 0x3f5   : > { %2232 = vmatpush.bf16.msrb.mxu3 %v2223_v0 }
 0x3f6   : > { %v2204_v62 = vsel %vm2107_vm11, %v1836_v4, 0 }
 0x3f7   : > { %2194 = vmatpush.bf16.msra.mxu1 %v2185_v25  ;;  %2213 = vmatpush.bf16.msra.mxu2 %v2204_v62 }
 0x40d   : > { %v2058_v10 = vpop.xlane.xlu1 %2057 }
 0x40e   : > { %4551 = vrcp.f32 %v2058_v10 }
 0x414   : > { %v4552_v33 = vpop.eup %4551 }
 0x415   : > { %v2088_v34 = vmul.f32 %v4552_v33, %v5420_v58 }
 0x417   : > { %v2096_v35 = vpack.c.bf16 %v2088_v34, %v2088_v34 }
 0x419   : > { %3955 = vmatmul.msk.bf16.vlgmr.msrb.gmra.mxu1 %vm2007_vm10, %v2096_v35 }
 0x41d   : > { %v2061_v36 = vpop.xlane.xlu0 %2060 }
 0x41e   : > { %4553 = vrcp.f32 %v2061_v36 }
 0x424   : > { %v4554_v22 = vpop.eup %4553 }
 0x425   : > { %v2089_v30 = vmul.f32 %v4554_v22, %v5424_v19 }
 0x427   : > { %v2097_v40 = vpack.c.bf16 %v2089_v30, %v2089_v30 }
 0x429   : > { %3956 = vmatmul.msk.bf16.vlgmr.msrb.gmra.mxu2 %vm2007_vm10, %v2097_v40 }
 0x42a   : > { %v2073_v5 = vpop.xlane.xlu1 %2072 }
 0x42b   : > { %4555 = vrcp.f32 %v2073_v5 }
 0x42d   : > { %v2064_v17 = vpop.xlane.xlu2 %2063 }
 0x42e   : > { %4557 = vrcp.f32 %v2064_v17 }
 0x431   : > { %v4556_v41 = vpop.eup %4555 }
 0x432   : > { %v2093_v42 = vmul.f32 %v4556_v41, %v5429_v54 }
 0x434   : > { %v4558_v43 = vpop.eup %4557  ;;  %v2101_v26 = vpack.c.bf16 %v2093_v42, %v2093_v42 }
 0x435   : > { %v2090_v58 = vmul.f32 %v4558_v43, %v5433_v24  ;;  %v2067_v44 = vpop.xlane.xlu2 %2066 }
 0x436   : > { %4559 = vrcp.f32 %v2067_v44 }
 0x437   : > { %v2098_v60 = vpack.c.bf16 %v2090_v58, %v2090_v58 }
 0x439   : > { %3957 = vmatmul.msk.bf16.vlgmr.msra.gmra.mxu3 %vm2007_vm10, %v2098_v60  ;;  %3960 = vmatmul.msk.bf16.vlgmr.msra.gmra.mxu2 %vm2007_vm10, %v2101_v26 }
 0x43c   : > { %v4560_v19 = vpop.eup %4559 }
 0x43d   : > { %v2091_v28 = vmul.f32 %v4560_v19, %v5438_v2  ;;  %v2070_v45 = vpop.xlane.xlu2 %2069  ;;  %v2076_v46 = vpop.xlane.xlu0 %2075 }
 0x43e   : > { %4561 = vrcp.f32 %v2070_v45 }
 0x43f   : > { %v2099_v48 = vpack.c.bf16 %v2091_v28, %v2091_v28  ;;  %4563 = vrcp.f32 %v2076_v46 }
 0x441   : > { %3958 = vmatmul.msk.bf16.vlgmr.msrb.gmra.mxu0 %vm2007_vm10, %v2099_v48 }
 0x444   : > { %v4562_v54 = vpop.eup %4561 }
 0x445   : > { %v4564_v24 = vpop.eup %4563  ;;  %v2092_v37 = vmul.f32 %v4562_v54, %v5443_v38  ;;  %v2079_v7 = vpop.xlane.xlu0 %2078 }
 0x446   : > { %v2094_v53 = vmul.f32 %v4564_v24, %v5445_v39  ;;  %4565 = vrcp.f32 %v2079_v7 }
 0x447   : > { %v2100_v49 = vpack.c.bf16 %v2092_v37, %v2092_v37 }
 0x448   : > { %v2102_v47 = vpack.c.bf16 %v2094_v53, %v2094_v53 }
 0x449   : > { %3959 = vmatmul.msk.bf16.vlgmr.msra.gmra.mxu1 %vm2007_vm10, %v2100_v49 }
 0x44a   : > { %3961 = vmatmul.msk.bf16.vlgmr.msrb.gmra.mxu3 %vm2007_vm10, %v2102_v47 }
 0x44c   : > { %v4566_v2 = vpop.eup %4565 }
 0x44d   : > { %v2095_v61 = vmul.f32 %v4566_v2, %v5453_v23 }
 0x44f   : > { %v2103_v55 = vpack.c.bf16 %v2095_v61, %v2095_v61 }
 0x451   : > { %3962 = vmatmul.msk.bf16.vlgmr.msra.gmra.mxu0 %vm2007_vm10, %v2103_v55 }
 0x496   : > { %v2120_v56 = vpop.f32.mrf.mxu1 }
 0x497   : > { %v2259_v16 = vrot.slane %v2120_v56, 4 }
 0x49e   : > { %v2122_v57 = vpop.f32.mrf.mxu1 }
 0x4ac   : > { %v2139_v51 = vpop.f32.mrf.mxu2 }
 0x4ad   : > { %v2271_v63 = vrot.slane %v2139_v51, 4 }
 0x4b4   : > { %v2141_v38 = vpop.f32.mrf.mxu2 }
 0x4bc   : > { %v2158_v52 = vpop.f32.mrf.mxu3  ;;  %v5563_v39 = vpop.f32.mrf.mxu2 }
 0x4bd   : > { %v2257_v0 = vrot.slane %v2158_v52, 4  ;;  %v2260_v3 = vsel %vm1115_vm7, %v2158_v52, %v2259_v16  ;;  %v2327_v37 = vrot.slane %v5563_v39, 4 }
 0x4be   : > { %v2268_v59 = vperm.slane %v2260_v3, %v5115_v18  ;;  %v2177_v8 = vpop.f32.mrf.mxu0 }
 0x4bf   : > { %v2258_v23 = vsel %vm1115_vm7, %v2257_v0, %v2120_v56  ;;  %v2269_v31 = vrot.slane %v2177_v8, 4  ;;  %v2272_v6 = vsel %vm1115_vm7, %v2177_v8, %v2271_v63 }
 0x4c0   : > { %v2264_v20 = vperm.slane %v2258_v23, %v5115_v18  ;;  %v2295_v9 = vrot.slane %v2268_v59, 4  ;;  %v2280_v11 = vperm.slane %v2272_v6, %v5115_v18 }
 0x4c1   : > { %v2270_v12 = vsel %vm1115_vm7, %v2269_v31, %v2139_v51 }
 0x4c2   : > { %v2283_v14 = vrot.slane %v2264_v20, 4  ;;  %v2276_v15 = vperm.slane %v2270_v12, %v5115_v18  ;;  %v2293_v21 = vrot.slane %v2280_v11, 4  ;;  %v2296_v50 = vsel %vm1115_vm7, %v2280_v11, %v2295_v9 }
 0x4c3   : > { %v2304_v25 = vperm.slane %v2296_v50, %v5124_v32 }
 0x4c4   : > { %v2281_v27 = vrot.slane %v2276_v15, 4  ;;  %v2284_v29 = vsel %vm1115_vm7, %v2276_v15, %v2283_v14  ;;  %v2294_v4 = vsel %vm1115_vm7, %v2293_v21, %v2268_v59  ;;  %v2160_v62 = vpop.f32.mrf.mxu3  ;;  %v2217_v10 = vpop.f32.mrf.mxu2 }
 0x4c5   : > { %v2292_v33 = vperm.slane %v2284_v29, %v5124_v32  ;;  %v2300_v34 = vperm.slane %v2294_v4, %v5124_v32  ;;  %v2311_v35 = vrot.slane %v2304_v25, 4 }
 0x4c6   : > { %v2282_v36 = vsel %vm1115_vm7, %v2281_v27, %v2264_v20  ;;  %v2179_v22 = vpop.f32.mrf.mxu0  ;;  %v2196_v30 = vpop.f32.mrf.mxu1 }
 0x4c7   : > { %v2288_v40 = vperm.slane %v2282_v36, %v5124_v32  ;;  %v2307_v5 = vrot.slane %v2292_v33, 4  ;;  %v2309_v17 = vrot.slane %v2300_v34, 4  ;;  %v2312_v41 = vsel %vm1115_vm7, 0.0, %v2311_v35 }
 0x4c8   : > { %v2385_v42 = vrot.slane %v2312_v41, 4  ;;  %v2380_v60 = vsel %vm1115_vm7, %v2311_v35, %v2300_v34  ;;  %v2315_v48 = vrot.slane %v2196_v30, 4 }
 0x4c9   : > { %v2305_v43 = vrot.slane %v2288_v40, 4  ;;  %v2308_v58 = vsel %vm1115_vm7, 0.0, %v2307_v5  ;;  %v2310_v44 = vsel %vm1115_vm7, 0.0, %v2309_v17  ;;  %v2384_v46 = vperm.slane %v2380_v60, %v5115_v18 }
 0x4ca   : > { %v2374_v26 = vrot.slane %v2308_v58, 4  ;;  %v2386_v19 = vsel %vm1115_vm7, %v2385_v42, %v2310_v44  ;;  %v2369_v24 = vsel %vm1115_vm7, %v2307_v5, %v2288_v40 }
 0x4cb   : > { %v2390_v28 = vperm.slane %v2386_v19, %v5115_v18  ;;  %v2306_v45 = vsel %vm1115_vm7, 0.0, %v2305_v43  ;;  %v2405_v38 = vrot.slane %v2384_v46, 4  ;;  %v2373_v63 = vperm.slane %v2369_v24, %v5115_v18 }
 0x4cc   : > { %v2375_v54 = vsel %vm1115_vm7, %v2374_v26, %v2306_v45 }
 0x4cd   : > { %v2234_v7 = vpop.f32.mrf.mxu3  ;;  %v2379_v53 = vperm.slane %v2375_v54, %v5115_v18  ;;  %v2403_v51 = vrot.slane %v2390_v28, 4  ;;  %v2406_v21 = vsel %vm1115_vm7, %v2390_v28, %v2405_v38  ;;  %v2393_v27 = vrot.slane %v2373_v63, 4 }
 0x4ce   : > { %v2313_v49 = vrot.slane %v2234_v7, 4  ;;  %v2316_v47 = vsel %vm1115_vm7, %v2234_v7, %v2315_v48  ;;  %v2198_v2 = vpop.f32.mrf.mxu1  ;;  %v2253_v61 = vpop.f32.mrf.mxu0  ;;  %v2414_v22 = vperm.slane %v2406_v21, %v5124_v32 }
 0x4cf   : > { %v2324_v55 = vperm.slane %v2316_v47, %v5115_v18  ;;  %v2325_v56 = vrot.slane %v2253_v61, 4  ;;  %v2328_v57 = vsel %vm1115_vm7, %v2253_v61, %v2327_v37  ;;  %v2391_v8 = vrot.slane %v2379_v53, 4 }
 0x4d0   : > { %v2314_v16 = vsel %vm1115_vm7, %v2313_v49, %v2196_v30  ;;  %v2336_v52 = vperm.slane %v2328_v57, %v5115_v18  ;;  %v2404_v11 = vsel %vm1115_vm7, %v2403_v51, %v2384_v46  ;;  %v2394_v26 = vsel %vm1115_vm7, %v2379_v53, %v2393_v27  ;;  %v4330_v27 = vld [vmem:[%s4961_s22 + $0x20] sm:$0xff] }
 0x4d1   : > { %v2320_v0 = vperm.slane %v2314_v16, %v5115_v18  ;;  %v2351_v3 = vrot.slane %v2324_v55, 4  ;;  %v2326_v59 = vsel %vm1115_vm7, %v2325_v56, %v5563_v39  ;;  %v2392_v9 = vsel %vm1115_vm7, %v2391_v8, %v2373_v63 }
 0x4d2   : > { %v2332_v23 = vperm.slane %v2326_v59, %v5115_v18  ;;  %v2349_v31 = vrot.slane %v2336_v52, 4  ;;  %v2398_v29 = vperm.slane %v2392_v9, %v5124_v32  ;;  %v2410_v34 = vperm.slane %v2404_v11, %v5124_v32 }
 0x4d3   : > { %v2339_v6 = vrot.slane %v2320_v0, 4  ;;  %v2352_v20 = vsel %vm1115_vm7, %v2336_v52, %v2351_v3  ;;  %v2402_v37 = vperm.slane %v2394_v26, %v5124_v32  ;;  %v2419_v7 = vrot.slane %v2414_v22, 4 }
 0x4d4   : > { %v2337_v12 = vrot.slane %v2332_v23, 4  ;;  %v2350_v14 = vsel %vm1115_vm7, %v2349_v31, %v2324_v55  ;;  %v2360_v15 = vperm.slane %v2352_v20, %v5124_v32  ;;  %v2415_v17 = vrot.slane %v2410_v34, 4 }
 0x4d5   : > { %v2340_v39 = vsel %vm1115_vm7, %v2332_v23, %v2339_v6  ;;  %v2356_v50 = vperm.slane %v2350_v14, %v5124_v32  ;;  %v2236_v25 = vpop.f32.mrf.mxu3  ;;  %v2421_v52 = vrot.slane %v2402_v37, 4 }
 0x4d6   : > { %v2338_v4 = vsel %vm1115_vm7, %v2337_v12, %v2320_v0  ;;  %v2348_v62 = vperm.slane %v2340_v39, %v5124_v32  ;;  %v2367_v10 = vrot.slane %v2360_v15, 4  ;;  %v2255_v33 = vpop.f32.mrf.mxu0  ;;  %v5625_v19 = vsel %vm1115_vm7, %v2415_v17, %v2398_v29  ;;  %v4333_v39 = vld [vmem:[%s4961_s22 + $0x38] sm:$0xff]  ;;  %v4331_v25 = vld [vmem:[%s4961_s22 + $0x28] sm:$0xff] }
 0x4d7   : > { %v2344_v35 = vperm.slane %v2338_v4, %v5124_v32  ;;  %v2365_v36 = vrot.slane %v2356_v50, 4  ;;  %v2420_v0 = vsel %vm1115_vm7, %v2419_v7, %v2402_v37  ;;  %v2422_v20 = vsel %vm1115_vm7, %v2414_v22, %v2421_v52  ;;  %2578 = vmatpush.bf16.msrb.mxu1 %v4333_v39  ;;  %v4328_v4 = vld [vmem:[%s4961_s22 + $0x10] sm:$0xff]  ;;  %v4604_v37 = vld [vmem:[#allocation2 + $0x8] sm:$0xff] }
 0x4d8   : > { %v2363_v30 = vrot.slane %v2348_v62, 4  ;;  %v2368_v40 = vsel %vm1115_vm7, 0.0, %v2367_v10  ;;  %v2434_v5 = vsel %vm1115_vm7, %v2367_v10, %v2356_v50  ;;  %v4332_v50 = vld [vmem:[%s4961_s22 + $0x30] sm:$0xff]  ;;  %v4327_v62 = vld [vmem:[%s4961_s22 + $0x8] sm:$0xff]  ;;  %v4326_v10 = vld [vmem:[%s4961_s22] sm:$0xff] }
 0x4d9   : > { %v2361_v41 = vrot.slane %v2344_v35, 4  ;;  %v2366_v42 = vsel %vm1115_vm7, 0.0, %v2365_v36  ;;  %v2438_v43 = vperm.slane %v2434_v5, %v5115_v18  ;;  %v2439_v58 = vrot.slane %v2368_v40, 4  ;;  %v4359_v39 = vld [vmem:[%s4989_s5 + $0xcc] sm:$0xf] }
 0x4da   : > { %v2364_v44 = vsel %vm1115_vm7, 0.0, %v2363_v30  ;;  %v2423_v60 = vsel %vm1115_vm7, %v2363_v30, %v2344_v35 }
 0x4db   : > { %v2428_v28 = vrot.slane %v2364_v44, 4  ;;  %v2440_v45 = vsel %vm1115_vm7, %v2439_v58, %v2366_v42  ;;  %v2459_v46 = vrot.slane %v2438_v43, 4  ;;  %v2362_v48 = vsel %vm1115_vm7, 0.0, %v2361_v41  ;;  %2579 = vmatpush.bf16.msrb.mxu1 %v4332_v50  ;;  %v4103_v50 = vld [vmem:[%s4989_s5 + $0xd8] sm:$0xf0] }
 0x4dc   : > { %v2444_v54 = vperm.slane %v2440_v45, %v5115_v18  ;;  %v2427_v24 = vperm.slane %v2423_v60, %v5115_v18 }
 0x4dd   : > { %v2429_v49 = vsel %vm1115_vm7, %v2428_v28, %v2362_v48  ;;  %v4525_v28 = vld [vmem:[%s6167_s24] ss:$0 sm:$0xff] }
 0x4de   : > { %v2433_v53 = vperm.slane %v2429_v49, %v5115_v18  ;;  %v2447_v47 = vrot.slane %v2427_v24, 4  ;;  %v2460_v2 = vsel %vm1115_vm7, %v2444_v54, %v2459_v46  ;;  %v2457_v61 = vrot.slane %v2444_v54, 4  ;;  %v4603_v48 = vld [vmem:[#allocation2] sm:$0xff] }
 0x4df   : > { %v2468_v55 = vperm.slane %v2460_v2, %v5124_v32  ;;  %v2417_v18 = vrot.slane %v2398_v29, 4  ;;  %2580 = vmatpush.bf16.msrb.mxu1 %v4331_v25  ;;  %v4329_v29 = vld [vmem:[%s4961_s22 + $0x18] sm:$0xff]  ;;  %v4106_v25 = vor.u32 %v4359_v39, %v4103_v50  ;;  %v4021_v39 = vld [vmem:[%s4989_s5 + $0x28] sm:$0xf] }
 0x4e0   : > { %v2448_v56 = vsel %vm1115_vm7, %v2433_v53, %v2447_v47  ;;  %v2445_v57 = vrot.slane %v2433_v53, 4  ;;  %v2458_v51 = vsel %vm1115_vm7, %v2457_v61, %v2438_v43 }
 0x4e1   : > { %v2456_v38 = vperm.slane %v2448_v56, %v5124_v32  ;;  %v2473_v16 = vrot.slane %v2468_v55, 4  ;;  %v2464_v63 = vperm.slane %v2458_v51, %v5124_v32  ;;  %v2418_v15 = vsel %vm1115_vm7, %v2410_v34, %v2417_v18  ;;  %v4109_v51 = vld [vmem:[%s4989_s5 + $0xe0] sm:$0xf]  ;;  %v4365_v18 = vld [vmem:[%s4989_s5 + $0xf4] sm:$0xf0] }
 0x4e2   : > { %v2446_v3 = vsel %vm1115_vm7, %v2445_v57, %v2427_v24 }
 0x4e3   : > { %v2474_v59 = vsel %vm1115_vm7, %v2473_v16, %v2456_v38  ;;  %v2475_v8 = vrot.slane %v2456_v38, 4  ;;  %v2452_v23 = vperm.slane %v2446_v3, %v5124_v32  ;;  %v2469_v31 = vrot.slane %v2464_v63, 4  ;;  %2581 = vmatpush.bf16.msrb.mxu1 %v4330_v27  ;;  %v4364_v38 = vld [vmem:[%s4989_s5 + $0xec] sm:$0xf0]  ;;  %v4362_v16 = vld [vmem:[%s4989_s5 + $0xe4] sm:$0xf] }
 0x4e4   : > { %v4513_v6 = vpack.i.bf16 %v2474_v59, %v2420_v0  ;;  %v4110_v52 = vor.u32 %v4364_v38, %v4109_v51  ;;  %v4117_v0 = vld [vmem:[%s4989_s5 + $0xe8] sm:$0xf]  ;;  %v4077_v27 = vld [vmem:[%s4989_s5 + $0xa0] sm:$0xf]  ;;  %v4347_v51 = vld [vmem:[%s4989_s5 + $0x6c] sm:$0xf] }
 0x4e5   : > { %v2476_v9 = vsel %vm1115_vm7, %v2468_v55, %v2475_v8  ;;  %v2471_v11 = vrot.slane %v2452_v23, 4  ;;  %v2470_v12 = vsel %vm1115_vm7, %v2469_v31, %v2452_v23  ;;  %v4118_v59 = vor.u32 %v4365_v18, %v4117_v0  ;;  %v4363_v8 = vld [vmem:[%s4989_s5 + $0xec] sm:$0xf]  ;;  %v4119_v23 = vld [vmem:[%s4989_s5 + $0xf8] sm:$0xf0] }
 0x4e6   : > { %4514 = vrot.lane.b32.xlu2 %v4513_v6, %s4757_s13  ;;  %v4518_v14 = vpack.i.bf16 %v2476_v9, %v2422_v20  ;;  %2849 = vmatpush.bf16.msrb.mxu2 %v4110_v52  ;;  %v4122_v31 = vor.u32 %v4363_v8, %v4119_v23  ;;  %v4093_v6 = vld [vmem:[%s4989_s5 + $0xc0] sm:$0xf]  ;;  %v4360_v20 = vld [vmem:[%s4989_s5 + $0xcc] sm:$0xf0]  ;;  %v4358_v9 = vld [vmem:[%s4989_s5 + $0xc4] sm:$0xf] }
 0x4e7   : > { %v2472_v32 = vsel %vm1115_vm7, %v2464_v63, %v2471_v11  ;;  %2582 = vmatpush.bf16.msrb.mxu1 %v4329_v29  ;;  %v4111_v63 = vld [vmem:[%s4989_s5 + $0xf0] sm:$0xf0]  ;;  %2877 = vmatpush.bf16.msrb.mxu0 %v4118_v59  ;;  %v4094_v11 = vor.u32 %v4360_v20, %v4093_v6  ;;  %v4356_v29 = vld [vmem:[%s4989_s5 + $0xac] sm:$0xf0]  ;;  %v4055_v52 = vld [vmem:[%s4989_s5 + $0x78] sm:$0xf0] }
 0x4e8   : > { %4519 = vrot.lane.b32.xlu0 %v4518_v14, %s4756_s17  ;;  %v4508_v21 = vpack.i.bf16 %v2472_v32, %v2418_v15  ;;  %v4114_v3 = vor.u32 %v4362_v16, %v4111_v63  ;;  %v4101_v14 = vld [vmem:[%s4989_s5 + $0xc8] sm:$0xf]  ;;  %v4361_v15 = vld [vmem:[%s4989_s5 + $0xd4] sm:$0xf0]  ;;  %v4029_v63 = vld [vmem:[%s4989_s5 + $0x40] sm:$0xf]  ;;  %v4058_v0 = vor.u32 %v4347_v51, %v4055_v52 }
 0x4e9   : > { %v4344_v18 = vld [vmem:[%s4989_s5 + $0x4c] sm:$0xf0]  ;;  %v4031_v59 = vld [vmem:[%s4989_s5 + $0x50] sm:$0xf0]  ;;  %v4037_v23 = vld [vmem:[%s4989_s5 + $0x48] sm:$0xf] }
 0x4ea   : > { %4509 = vrot.lane.b32.xlu1 %v4508_v21, %s4755_s30  ;;  %2863 = vmatpush.bf16.msra.mxu3 %v4114_v3  ;;  %v4102_v21 = vor.u32 %v4361_v15, %v4101_v14  ;;  %v4342_v3 = vld [vmem:[%s4989_s5 + $0x44] sm:$0xf]  ;;  %v4030_v8 = vor.u32 %v4344_v18, %v4029_v63  ;;  %v4343_v6 = vld [vmem:[%s4989_s5 + $0x4c] sm:$0xf]  ;;  %v4340_v14 = vld [vmem:[%s4989_s5 + $0x2c] sm:$0xf0] }
 0x4eb   : > { %2583 = vmatpush.bf16.msrb.mxu1 %v4328_v4  ;;  %2850 = vmatpush.bf16.msrb.mxu2 %v4094_v11  ;;  %v4354_v4 = vld [vmem:[%s4989_s5 + $0xa4] sm:$0xf]  ;;  %v4034_v20 = vor.u32 %v4342_v3, %v4031_v59  ;;  %v4039_v11 = vld [vmem:[%s4989_s5 + $0x58] sm:$0xf0]  ;;  %v5770_v59 = vld [vmem:[%s4995_s21] sm:$0xf] }
 0x4ec   : > { %2878 = vmatpush.bf16.msrb.mxu0 %v4102_v21  ;;  %v4042_v15 = vor.u32 %v4343_v6, %v4039_v11  ;;  %v4015_v21 = vld [vmem:[%s4989_s5 + $0x30] sm:$0xf0] }
 0x4ed   : > { %v4388_v6 = vld [vmem:[%s5000_s28 + $0xb0] sm:$0xff] }
 0x4ef   : > { %2584 = vmatpush.bf16.msrb.mxu1 %v4327_v62  ;;  %v4078_v62 = vor.u32 %v4356_v29, %v4077_v27  ;;  %v4339_v27 = vld [vmem:[%s4989_s5 + $0x2c] sm:$0xf]  ;;  %v4023_v29 = vld [vmem:[%s4989_s5 + $0x38] sm:$0xf0] }
 0x4f1   : > { %2851 = vmatpush.bf16.msrb.mxu2 %v4078_v62 }
 0x4f3   : > { %2585 = vmatpush.bf16.msrb.mxu1 %v4326_v10  ;;  %v4079_v10 = vld [vmem:[%s4989_s5 + $0xb0] sm:$0xf0] }
 0x4f7   : > { %2891 = vmatpush.bf16.msra.mxu1 %v4122_v31  ;;  %v4345_v31 = vld [vmem:[%s4989_s5 + $0x54] sm:$0xf0] }
 0x4fb   : > { %2892 = vmatpush.bf16.msra.mxu1 %v4106_v25  ;;  %v4341_v25 = vld [vmem:[%s4989_s5 + $0x34] sm:$0xf0] }
 0x540   : > { %v4515_v33 = vpop.permute.xlu2 %4514 }
 0x541   : > { %v4517_v30 = vunpack.i.h.bf16 %v4515_v33  ;;  %v4516_v40 = vunpack.i.l.bf16 %v4515_v33  ;;  %v4085_v33 = vld [vmem:[%s4989_s5 + $0xa8] sm:$0xf] }
 0x55a   : > { %v4520_v34 = vpop.permute.xlu0 %4519 }
 0x55b   : > { %v4522_v5 = vunpack.i.h.bf16 %v4520_v34  ;;  %v4521_v17 = vunpack.i.l.bf16 %v4520_v34  ;;  %v4357_v34 = vld [vmem:[%s4989_s5 + $0xb4] sm:$0xf0] }
 0x55c   : > { %v4510_v35 = vpop.permute.xlu1 %4509 }
 0x55d   : > { %v4512_v36 = vunpack.i.h.bf16 %v4510_v35  ;;  %v4511_v22 = vunpack.i.l.bf16 %v4510_v35  ;;  %v4082_v35 = vor.u32 %v4354_v4, %v4079_v10  ;;  %v3997_v10 = vld [vmem:[%s4989_s5] sm:$0xf] }
 0x55f   : > { %v2501_v41 = vsel %vm1844_vm8, %v5625_v19, %v4511_v22  ;;  %v2502_v42 = vsel %vm1844_vm8, %v2470_v12, %v4512_v36  ;;  %v4095_v12 = vld [vmem:[%s4989_s5 + $0xd0] sm:$0xf0]  ;;  %v4086_v36 = vor.u32 %v4357_v34, %v4085_v33  ;;  %v4355_v22 = vld [vmem:[%s4989_s5 + $0xac] sm:$0xf]  ;;  %v4022_v34 = vor.u32 %v4341_v25, %v4021_v39 }
 0x560   : > { %v2504_v43 = vsel %vm2503_vm12, %v2501_v41, %v4516_v40  ;;  %v2505_v58 = vsel %vm2503_vm12, %v2502_v42, %v4517_v30  ;;  %v4098_v32 = vor.u32 %v4358_v9, %v4095_v12  ;;  %v4087_v30 = vld [vmem:[%s4989_s5 + $0xb8] sm:$0xf0]  ;;  %v4350_v41 = vld [vmem:[%s4989_s5 + $0x84] sm:$0xf]  ;;  %v4038_v9 = vor.u32 %v4345_v31, %v4037_v23  ;;  %v4013_v12 = vld [vmem:[%s4989_s5 + $0x20] sm:$0xf] }
 0x561   : > { %v2507_v44 = vsel %vm2506_vm13, %v2504_v43, %v4521_v17  ;;  %v2508_v60 = vsel %vm2506_vm13, %v2505_v58, %v4522_v5  ;;  %v4090_v40 = vor.u32 %v4355_v22, %v4087_v30  ;;  %2879 = vmatpush.bf16.msrb.mxu0 %v4086_v36  ;;  %v4061_v5 = vld [vmem:[%s4989_s5 + $0x80] sm:$0xf]  ;;  %v4352_v17 = vld [vmem:[%s4989_s5 + $0x8c] sm:$0xf0]  ;;  %v4063_v43 = vld [vmem:[%s4989_s5 + $0x90] sm:$0xf0]  ;;  %v4014_v62 = vor.u32 %v4340_v14, %v4013_v12 }
 0x562   : > { %v2509_v26 = vpack.c.bf16 %v2508_v60, %v2507_v44  ;;  %2864 = vmatpush.bf16.msra.mxu3 %v4098_v32  ;;  %v4062_v42 = vor.u32 %v4352_v17, %v4061_v5  ;;  %v4069_v58 = vld [vmem:[%s4989_s5 + $0x88] sm:$0xf]  ;;  %v4353_v44 = vld [vmem:[%s4989_s5 + $0x94] sm:$0xf0]  ;;  %v4338_v32 = vld [vmem:[%s4989_s5 + $0x24] sm:$0xf]  ;;  %v4026_v5 = vor.u32 %v4339_v27, %v4023_v29 }
 0x563   : > { %2893 = vmatpush.bf16.msra.mxu1 %v4090_v40  ;;  %v4018_v33 = vor.u32 %v4338_v32, %v4015_v21  ;;  %v4334_v36 = vld [vmem:[%s4989_s5 + $0x4] sm:$0xf]  ;;  %v3999_v22 = vld [vmem:[%s4989_s5 + $0x10] sm:$0xf0]  ;;  %v4005_v17 = vld [vmem:[%s4989_s5 + $0x8] sm:$0xf] }
 0x564   : > { %2586 = vmatmul.bf16.vlgmr.msrb.gmra.mxu1 %v2509_v26  ;;  %v4066_v26 = vor.u32 %v4350_v41, %v4063_v43  ;;  %2852 = vmatpush.bf16.msrb.mxu2 %v4062_v42  ;;  %v4337_v41 = vld [vmem:[%s4989_s5 + $0x14] sm:$0xf0]  ;;  %v4335_v43 = vld [vmem:[%s4989_s5 + $0xc] sm:$0xf]  ;;  %v2683_v23 = vperm.slane %v5770_v59, 2  ;;  %v2684_v31 = vperm.slane %v5770_v59, 3 }
 0x565   : > { %v4381_v32 = vld [vmem:[%s5000_s28 + $0x78] sm:$0xff]  ;;  %v2681_v21 = vperm.slane %v5770_v59, 0  ;;  %v2682_v39 = vperm.slane %v5770_v59, 1  ;;  %v4387_v27 = vld [vmem:[%s5000_s28 + $0xa8] sm:$0xff] }
 0x566   : > { %2865 = vmatpush.bf16.msra.mxu3 %v4082_v35  ;;  %v4336_v35 = vld [vmem:[%s4989_s5 + $0xc] sm:$0xf0]  ;;  %v4395_v29 = vld [vmem:[%s5000_s28 + $0xe8] sm:$0xff] }
 0x567   : > { %v4375_v59 = vld [vmem:[%s5000_s28 + $0x48] sm:$0xff] }
 0x56a   : > { %2866 = vmatpush.bf16.msra.mxu3 %v4066_v26  ;;  %v4002_v26 = vor.u32 %v4334_v36, %v3999_v22 }
 0x5e1   : > { %v2587_v45 = vpop.f32.mrf.mxu1 }
 0x5e2   : > { %v2588_v46 = vadd.f32 %v4525_v28, %v2587_v45  ;;  %v4351_v45 = vld [vmem:[%s4989_s5 + $0x8c] sm:$0xf] }
 0x5e4   : > { %v5668_v54 = vadd.f32 %v4603_v48, %v2588_v46  ;;  %v4071_v46 = vld [vmem:[%s4989_s5 + $0x98] sm:$0xf0]  ;;  %v4045_v48 = vld [vmem:[%s4989_s5 + $0x60] sm:$0xf] }
 0x5e6   : > { %2596 = vadd.xlane.f32.xlu1 %v5668_v54 }
 0x5e9   : > { %v2589_v19 = vpop.f32.mrf.mxu1 }
 0x5ea   : > { %v2590_v24 = vadd.f32 %v4525_v28, %v2589_v19  ;;  %v4070_v28 = vor.u32 %v4353_v44, %v4069_v58  ;;  %v4007_v58 = vld [vmem:[%s4989_s5 + $0x18] sm:$0xf0]  ;;  %v3998_v44 = vor.u32 %v4336_v35, %v3997_v10  ;;  %v4380_v35 = vld [vmem:[%s5000_s28 + $0x70] sm:$0xff] }
 0x5ec   : > { %v5671_v7 = vadd.f32 %v4604_v37, %v2590_v24  ;;  %v4074_v24 = vor.u32 %v4351_v45, %v4071_v46  ;;  %v4348_v37 = vld [vmem:[%s4989_s5 + $0x6c] sm:$0xf0]  ;;  %2880 = vmatpush.bf16.msrb.mxu0 %v4070_v28  ;;  %v4006_v28 = vor.u32 %v4337_v41, %v4005_v17  ;;  %v4010_v45 = vor.u32 %v4335_v43, %v4007_v58 }
 0x5ee   : > { %2598 = vadd.xlane.f32.xlu0 %v5671_v7  ;;  %2894 = vmatpush.bf16.msra.mxu1 %v4074_v24 }
 0x5f2   : > { %2895 = vmatpush.bf16.msra.mxu1 %v4058_v0 }
 0x5f6   : > { %2896 = vmatpush.bf16.msra.mxu1 %v4042_v15  ;;  %v4373_v15 = vld [vmem:[%s5000_s28 + $0x38] sm:$0xff] }
 0x5fa   : > { %2897 = vmatpush.bf16.msra.mxu1 %v4026_v5 }
 0x5fe   : > { %2898 = vmatpush.bf16.msra.mxu1 %v4010_v45 }
 0x659   : > { %v2597_v49 = vpop.xlane.xlu1 %2596 }
 0x65a   : > { %v2600_v53 = vmul.f32 %v2597_v49, %v5014_v13  ;;  %v4346_v49 = vld [vmem:[%s4989_s5 + $0x64] sm:$0xf] }
 0x65c   : > { %v5676_v47 = vsub.f32 %v5668_v54, %v2600_v53  ;;  %v4047_v53 = vld [vmem:[%s4989_s5 + $0x70] sm:$0xf0] }
 0x65e   : > { %v2604_v2 = vmul.f32 %v5676_v47, %v5676_v47 }
 0x660   : > { %2606 = vadd.xlane.f32.xlu2 %v2604_v2  ;;  %v4046_v2 = vor.u32 %v4348_v37, %v4045_v48 }
 0x661   : > { %v2599_v61 = vpop.xlane.xlu0 %2598 }
 0x662   : > { %v2601_v55 = vmul.f32 %v2599_v61, %v5014_v13  ;;  %v4050_v61 = vor.u32 %v4346_v49, %v4047_v53  ;;  %2853 = vmatpush.bf16.msrb.mxu2 %v4046_v2 }
 0x664   : > { %v5682_v56 = vsub.f32 %v5671_v7, %v2601_v55  ;;  %v4053_v55 = vld [vmem:[%s4989_s5 + $0x68] sm:$0xf]  ;;  %2867 = vmatpush.bf16.msra.mxu3 %v4050_v61 }
 0x666   : > { %v2605_v57 = vmul.f32 %v5682_v56, %v5682_v56  ;;  %2854 = vmatpush.bf16.msrb.mxu2 %v4030_v8  ;;  %v4397_v8 = vld [vmem:[%s5000_s28 + $0xf8] sm:$0xff] }
 0x667   : > { %3379 = vmatpush.bf16.msrb.mxu1 %v4397_v8 }
 0x668   : > { %2608 = vadd.xlane.f32.xlu1 %v2605_v57  ;;  %v4349_v57 = vld [vmem:[%s4989_s5 + $0x74] sm:$0xf0]  ;;  %2868 = vmatpush.bf16.msra.mxu3 %v4034_v20  ;;  %v4396_v20 = vld [vmem:[%s5000_s28 + $0xf0] sm:$0xff] }
 0x669   : > { %v4054_v16 = vor.u32 %v4349_v57, %v4053_v55  ;;  %v4526_v57 = vld [vmem:[%s6168_s15] ss:$0 sm:$0xff] }
 0x66a   : > { %2855 = vmatpush.bf16.msrb.mxu2 %v4014_v62 }
 0x66b   : > { %2881 = vmatpush.bf16.msrb.mxu0 %v4054_v16  ;;  %3380 = vmatpush.bf16.msrb.mxu1 %v4396_v20  ;;  %v4368_v20 = vld [vmem:[%s5000_s28 + $0x10] sm:$0xff] }
 0x66c   : > { %2869 = vmatpush.bf16.msra.mxu3 %v4018_v33 }
 0x66e   : > { %2856 = vmatpush.bf16.msrb.mxu2 %v3998_v44  ;;  %v4371_v44 = vld [vmem:[%s5000_s28 + $0x28] sm:$0xff] }
 0x66f   : > { %2882 = vmatpush.bf16.msrb.mxu0 %v4038_v9  ;;  %3381 = vmatpush.bf16.msrb.mxu1 %v4395_v29 }
 0x670   : > { %2870 = vmatpush.bf16.msra.mxu3 %v4002_v26 }
 0x672   : > { %3337 = vmatpush.bf16.msra.mxu2 %v4373_v15 }
 0x673   : > { %2883 = vmatpush.bf16.msrb.mxu0 %v4022_v34  ;;  %v4372_v34 = vld [vmem:[%s5000_s28 + $0x30] sm:$0xff] }
 0x674   : > { %3351 = vmatpush.bf16.msrb.mxu3 %v4381_v32 }
 0x676   : > { %3338 = vmatpush.bf16.msra.mxu2 %v4372_v34  ;;  %v4367_v34 = vld [vmem:[%s5000_s28 + $0x8] sm:$0xff] }
 0x677   : > { %2884 = vmatpush.bf16.msrb.mxu0 %v4006_v28 }
 0x678   : > { %3352 = vmatpush.bf16.msrb.mxu3 %v4380_v35 }
 0x67a   : > { %3339 = vmatpush.bf16.msra.mxu2 %v4371_v44 }
 0x6d3   : > { %v2607_v60 = vpop.xlane.xlu2 %2606 }
 0x6d4   : > { %v2610_v19 = vmul.f32 %v2607_v60, %v5014_v13 }
 0x6d6   : > { %v5726_v38 = vadd.f32 1e-05, %v2610_v19 }
 0x6d8   : > { %4567 = vrsqrt.f32 %v5726_v38  ;;  %vm2620_vm15 = vweird.f32 %v5726_v38 }
 0x6db   : > { %v2609_v50 = vpop.xlane.xlu1 %2608 }
 0x6dc   : > { %v2611_v4 = vmul.f32 %v2609_v50, %v5014_v13 }
 0x6de   : > { %v4568_v30 = vpop.eup %4567  ;;  %v2613_v40 = vadd.f32 1e-05, %v2611_v4 }
 0x6df   : > { %v2615_v42 = vmul.f32 %v4568_v30, %v5726_v38  ;;  %vm2621_vm14 = vweird.f32 %v4568_v30 }
 0x6e0   : > { %4569 = vrsqrt.f32 %v2613_v40  ;;  %vm2622_vm0 = vmor %vm2620_vm15, %vm2621_vm14  ;;  %vm2630_vm2 = vweird.f32 %v2613_v40 }
 0x6e1   : > { %v2616_v60 = vmul.f32 %v4568_v30, %v2615_v42 }
 0x6e3   : > { %v2617_v46 = vmul.f32 0.5, %v2616_v60  ;;  %v4379_v60 = vld [vmem:[%s5000_s28 + $0x68] sm:$0xff] }
 0x6e4   : > { %3353 = vmatpush.bf16.msrb.mxu3 %v4379_v60 }
 0x6e5   : > { %v2618_v48 = vsub.f32 1.5, %v2617_v46 }
 0x6e6   : > { %v4570_v19 = vpop.eup %4569 }
 0x6e7   : > { %v2619_v24 = vmul.f32 %v4568_v30, %v2618_v48  ;;  %v2625_v37 = vmul.f32 %v4570_v19, %v2613_v40  ;;  %vm2631_vm1 = vweird.f32 %v4570_v19  ;;  %v4394_v40 = vld [vmem:[%s5000_s28 + $0xe0] sm:$0xff]  ;;  %v4385_v48 = vld [vmem:[%s5000_s28 + $0x98] sm:$0xff] }
 0x6e8   : > { %vm2632_vm3 = vmor %vm2630_vm2, %vm2631_vm1  ;;  %3382 = vmatpush.bf16.msrb.mxu1 %v4394_v40 }
 0x6e9   : > { %v2626_v49 = vmul.f32 %v4570_v19, %v2625_v37  ;;  %v2623_v53 = vsel %vm2622_vm0, %v4568_v30, %v2619_v24  ;;  %v4386_v30 = vld [vmem:[%s5000_s28 + $0xa0] sm:$0xff] }
 0x6ea   : > { %v2634_v55 = vmul.f32 %v2623_v53, %v5676_v47  ;;  %v4527_v47 = vld [vmem:[%s6169_s26] ss:$0 sm:$0xff] }
 0x6eb   : > { %v2627_v2 = vmul.f32 0.5, %v2626_v49  ;;  %v4370_v53 = vld [vmem:[%s5000_s28 + $0x20] sm:$0xff] }
 0x6ec   : > { %v2639_v52 = vmul.f32 %v4526_v57, %v2634_v55  ;;  %3340 = vmatpush.bf16.msra.mxu2 %v4370_v53 }
 0x6ed   : > { %v2628_v61 = vsub.f32 1.5, %v2627_v2  ;;  %v4378_v2 = vld [vmem:[%s5000_s28 + $0x60] sm:$0xff] }
 0x6ee   : > { %v2644_v0 = vadd.f32 %v4527_v47, %v2639_v52  ;;  %3354 = vmatpush.bf16.msrb.mxu3 %v4378_v2  ;;  %v4392_v52 = vld [vmem:[%s5000_s28 + $0xd0] sm:$0xff] }
 0x6ef   : > { %v2629_v51 = vmul.f32 %v4570_v19, %v2628_v61 }
 0x6f1   : > { %v2633_v38 = vsel %vm2632_vm3, %v4570_v19, %v2629_v51  ;;  %v4393_v19 = vld [vmem:[%s5000_s28 + $0xd8] sm:$0xff] }
 0x6f2   : > { %v2635_v16 = vmul.f32 %v2633_v38, %v5682_v56  ;;  %v4389_v56 = vld [vmem:[%s5000_s28 + $0xb8] sm:$0xff]  ;;  %3383 = vmatpush.bf16.msrb.mxu1 %v4393_v19 }
 0x6f3   : > { %3365 = vmatpush.bf16.msra.mxu0 %v4389_v56  ;;  %v4383_v56 = vld [vmem:[%s5000_s28 + $0x88] sm:$0xff] }
 0x6f4   : > { %v2640_v63 = vmul.f32 %v4526_v57, %v2635_v16  ;;  %v4384_v16 = vld [vmem:[%s5000_s28 + $0x90] sm:$0xff] }
 0x6f6   : > { %v2645_v18 = vadd.f32 %v4527_v47, %v2640_v63  ;;  %3384 = vmatpush.bf16.msrb.mxu1 %v4392_v52  ;;  %v4369_v47 = vld [vmem:[%s5000_s28 + $0x18] sm:$0xff] }
 0x6f7   : > { %3366 = vmatpush.bf16.msra.mxu0 %v4388_v6  ;;  %v4377_v63 = vld [vmem:[%s5000_s28 + $0x58] sm:$0xff]  ;;  %3341 = vmatpush.bf16.msra.mxu2 %v4369_v47 }
 0x6f8   : > { %v2646_v3 = vpack.c.bf16 %v2645_v18, %v2644_v0  ;;  %3355 = vmatpush.bf16.msrb.mxu3 %v4377_v63 }
 0x6fa   : > { %2857 = vmatmul.bf16.vlgmr.msrb.gmra.mxu2 %v2646_v3  ;;  %2871 = vmatmul.bf16.vlgmr.msra.gmra.mxu3 %v2646_v3 }
 0x6fb   : > { %2885 = vmatmul.bf16.vlgmr.msrb.gmra.mxu0 %v2646_v3  ;;  %2899 = vmatmul.bf16.vlgmr.msra.gmra.mxu1 %v2646_v3 }
 0x6fc   : > { %3367 = vmatpush.bf16.msra.mxu0 %v4387_v27  ;;  %3342 = vmatpush.bf16.msra.mxu2 %v4368_v20  ;;  %v4390_v27 = vld [vmem:[%s5000_s28 + $0xc0] sm:$0xff] }
 0x700   : > { %3368 = vmatpush.bf16.msra.mxu0 %v4386_v30  ;;  %3343 = vmatpush.bf16.msra.mxu2 %v4367_v34 }
 0x704   : > { %3369 = vmatpush.bf16.msra.mxu0 %v4385_v48 }
 0x708   : > { %3370 = vmatpush.bf16.msra.mxu0 %v4384_v16 }
 0x70c   : > { %3371 = vmatpush.bf16.msra.mxu0 %v4383_v56 }
 0x778   : > { %v2886_v9 = vpop.f32.mrf.mxu0  ;;  %v2900_v11 = vpop.f32.mrf.mxu1 }
 0x779   : > { %v5778_v12 = vadd.f32 %v2886_v9, %v2683_v23  ;;  %v5780_v14 = vadd.f32 %v2900_v11, %v2684_v31  ;;  %v4376_v9 = vld [vmem:[%s5000_s28 + $0x50] sm:$0xff] }
 0x77a   : > { %3356 = vmatpush.bf16.msrb.mxu3 %v4376_v9 }
 0x77b   : > { %v4125_v50 = vmul.f32 -1.702, %v5778_v12  ;;  %v4126_v25 = vmul.f32 -1.702, %v5780_v14 }
 0x77d   : > { %v2925_v4 = vmul.f32 1.442695, %v4125_v50  ;;  %v2927_v62 = vmul.f32 1.442695, %v4126_v25  ;;  %v2858_v10 = vpop.f32.mrf.mxu2  ;;  %v2872_v33 = vpop.f32.mrf.mxu3  ;;  %v4382_v25 = vld [vmem:[%s5000_s28 + $0x80] sm:$0xff] }
 0x77e   : > { %v5792_v36 = vadd.f32 %v2858_v10, %v2681_v21  ;;  %v5796_v22 = vadd.f32 %v2872_v33, %v2682_v39  ;;  %3372 = vmatpush.bf16.msra.mxu0 %v4382_v25  ;;  %3357 = vmatpush.bf16.msrb.mxu3 %v4375_v59 }
 0x77f   : > { %4571 = vpow2.f32 %v2925_v4 }
 0x780   : > { %4573 = vpow2.f32 %v2927_v62  ;;  %v4123_v5 = vmul.f32 -1.702, %v5792_v36  ;;  %v4124_v17 = vmul.f32 -1.702, %v5796_v22  ;;  %v2888_v41 = vpop.f32.mrf.mxu0  ;;  %v2902_v42 = vpop.f32.mrf.mxu1 }
 0x781   : > { %v5802_v43 = vadd.f32 %v2888_v41, %v2683_v23  ;;  %v5804_v58 = vadd.f32 %v2902_v42, %v2684_v31  ;;  %v4391_v31 = vld [vmem:[%s5000_s28 + $0xc8] sm:$0xff]  ;;  %v4366_v41 = vld [vmem:[%s5000_s28] sm:$0xff] }
 0x782   : > { %v2921_v26 = vmul.f32 1.442695, %v4123_v5  ;;  %v2923_v28 = vmul.f32 1.442695, %v4124_v17  ;;  %3385 = vmatpush.bf16.msrb.mxu1 %v4391_v31  ;;  %v4374_v42 = vld [vmem:[%s5000_s28 + $0x40] sm:$0xff]  ;;  %3344 = vmatpush.bf16.msra.mxu2 %v4366_v41 }
 0x783   : > { %v4129_v45 = vmul.f32 -1.702, %v5802_v43  ;;  %v4130_v46 = vmul.f32 -1.702, %v5804_v58  ;;  %3358 = vmatpush.bf16.msrb.mxu3 %v4374_v42 }
 0x784   : > { %4575 = vpow2.f32 %v2921_v26 }
 0x785   : > { %v4572_v24 = vpop.eup %4571  ;;  %v2933_v37 = vmul.f32 1.442695, %v4129_v45  ;;  %v2860_v49 = vpop.f32.mrf.mxu2  ;;  %4577 = vpow2.f32 %v2923_v28  ;;  %v2935_v57 = vmul.f32 1.442695, %v4130_v46 }
 0x786   : > { %v4574_v61 = vpop.eup %4573  ;;  %v5814_v55 = vadd.f32 1.0, %v4572_v24  ;;  %v5816_v51 = vadd.f32 %v2860_v49, %v2681_v21  ;;  %v2874_v23 = vpop.f32.mrf.mxu3  ;;  %3386 = vmatpush.bf16.msrb.mxu1 %v4390_v27 }
 0x787   : > { %v5818_v38 = vadd.f32 1.0, %v4574_v61  ;;  %4579 = vpow2.f32 %v2933_v37  ;;  %v5842_v50 = vadd.f32 %v2874_v23, %v2682_v39 }
 0x788   : > { %4581 = vrcp.f32 %v5814_v55  ;;  %v4127_v18 = vmul.f32 -1.702, %v5816_v51  ;;  %v2984_v17 = vand.u32 2147483647, %v5814_v55  ;;  %v2986_v44 = vand.u32 2147483648, %v5814_v55 }
 0x789   : > { %4583 = vrcp.f32 %v5818_v38  ;;  %v4128_v35 = vmul.f32 -1.702, %v5842_v50  ;;  %v2999_v60 = vand.u32 2147483647, %v5818_v38  ;;  %v3001_v26 = vand.u32 2147483648, %v5818_v38 }
 0x78a   : > { %v4576_v0 = vpop.eup %4575  ;;  %4585 = vpow2.f32 %v2935_v57  ;;  %v2929_v15 = vmul.f32 1.442695, %v4127_v18  ;;  %vm2980_vm5 = vweird.f32 %v5814_v55  ;;  %vm5875_vm6 = vcmp.eq.f32.partialorder %v2984_v17, 8.507059e+37 }
 0x78b   : > { %v5827_v3 = vadd.f32 1.0, %v4576_v0  ;;  %v4578_v8 = vpop.eup %4577  ;;  %v2931_v28 = vmul.f32 1.442695, %v4128_v35  ;;  %vm2995_vm7 = vweird.f32 %v5818_v38  ;;  %v2987_v49 = vor.u32 1.1754944e-38, %v2986_v44 }
 0x78c   : > { %v5848_v10 = vadd.f32 1.0, %v4578_v8  ;;  %vm5880_vm8 = vcmp.eq.f32.partialorder %v2999_v60, 8.507059e+37  ;;  %v3002_v2 = vor.u32 1.1754944e-38, %v3001_v26 }
 0x78d   : > { %v4580_v6 = vpop.eup %4579  ;;  %4587 = vrcp.f32 %v5827_v3  ;;  %v2956_v8 = vand.u32 2147483648, %v5827_v3 }
 0x78e   : > { %v5833_v11 = vpop.eup %4581  ;;  %v5850_v33 = vadd.f32 1.0, %v4580_v6  ;;  %4589 = vpow2.f32 %v2929_v15 }
 0x78f   : > { %v5835_v32 = vpop.eup %4583  ;;  %v2976_v21 = vmul.f32 %v5833_v11, %v5814_v55  ;;  %vm2981_vm4 = vweird.f32 %v5833_v11 }
 0x790   : > { %v4586_v29 = vpop.eup %4585  ;;  %v2991_v4 = vmul.f32 %v5835_v32, %v5818_v38  ;;  %4591 = vrcp.f32 %v5850_v33  ;;  %vm5887_vm9 = vmor %vm2980_vm5, %vm2981_vm4  ;;  %vm2996_vm10 = vweird.f32 %v5835_v32  ;;  %v3044_v55 = vand.u32 2147483647, %v5850_v33 }
 0x791   : > { %v2977_v62 = vsub.f32 1.0, %v2976_v21  ;;  %v5854_v39 = vadd.f32 1.0, %v4586_v29  ;;  %4593 = vrcp.f32 %v5848_v10  ;;  %vm3040_vm11 = vweird.f32 %v5850_v33  ;;  %vm5912_vm13 = vmor %vm2995_vm7, %vm2996_vm10 }
 0x792   : > { %v2992_v40 = vsub.f32 1.0, %v2991_v4  ;;  %v3046_v23 = vand.u32 2147483648, %v5850_v33  ;;  %vm5917_vm15 = vcmp.eq.f32.partialorder %v3044_v55, 8.507059e+37  ;;  %vm2950_vm4 = vweird.f32 %v5827_v3 }
 0x793   : > { %v2978_v30 = vmul.f32 %v5833_v11, %v2977_v62  ;;  %v5859_v5 = vpop.eup %4587  ;;  %4595 = vrcp.f32 %v5854_v39  ;;  %v3061_v38 = vand.u32 2147483648, %v5854_v39  ;;  %v3059_v59 = vand.u32 2147483647, %v5854_v39 }
 0x794   : > { %v4590_v45 = vpop.eup %4589  ;;  %v2993_v48 = vmul.f32 %v5835_v32, %v2992_v40  ;;  %v2946_v19 = vmul.f32 %v5859_v5, %v5827_v3  ;;  %4597 = vpow2.f32 %v2931_v28  ;;  %vm2951_vm14 = vweird.f32 %v5859_v5 }
 0x795   : > { %v2979_v46 = vadd.f32 %v5833_v11, %v2978_v30  ;;  %v5893_v52 = vadd.f32 1.0, %v4590_v45  ;;  %v3047_v62 = vor.u32 1.1754944e-38, %v3046_v23  ;;  %vm3055_vm2 = vweird.f32 %v5854_v39 }
 0x796   : > { %v4592_v24 = vpop.eup %4591  ;;  %v2994_v0 = vadd.f32 %v5835_v32, %v2993_v48  ;;  %v2947_v18 = vsub.f32 1.0, %v2946_v19  ;;  %v3062_v26 = vor.u32 1.1754944e-38, %v3061_v38  ;;  %vm3060_vm5 = vcmp.eq.f32.partialorder %v3059_v59, 8.507059e+37 }
 0x797   : > { %v3036_v61 = vmul.f32 %v4592_v24, %v5850_v33  ;;  %v5885_v57 = vpop.eup %4593  ;;  %v2983_v63 = vsel %vm5887_vm9, %v5833_v11, %v2979_v46  ;;  %vm3041_vm12 = vweird.f32 %v4592_v24  ;;  %4599 = vrcp.f32 %v5893_v52 }
 0x798   : > { %v2961_v6 = vmul.f32 %v5885_v57, %v5848_v10  ;;  %v2988_v9 = vsel %vm5875_vm6, %v2987_v49, %v2983_v63  ;;  %v2998_v25 = vsel %vm5912_vm13, %v5835_v32, %v2994_v0  ;;  %v2948_v27 = vmul.f32 %v5859_v5, %v2947_v18  ;;  %vm3042_vm0 = vmor %vm3040_vm11, %vm3041_vm12 }
 0x799   : > { %v4596_v47 = vpop.eup %4595  ;;  %v3037_v56 = vsub.f32 1.0, %v3036_v61  ;;  %v3067_v32 = vmul.f32 %v2988_v9, %v5778_v12  ;;  %v3003_v17 = vsel %vm5880_vm8, %v3002_v2, %v2998_v25  ;;  %v2954_v28 = vand.u32 2147483647, %v5827_v3  ;;  %vm5947_vm6 = vmor %vm2950_vm4, %vm2951_vm14 }
 0x79a   : > { %v3051_v31 = vmul.f32 %v4596_v47, %v5854_v39  ;;  %v4598_v4 = vpop.eup %4597  ;;  %vm3056_vm1 = vweird.f32 %v4596_v47  ;;  %v2962_v35 = vsub.f32 1.0, %v2961_v6  ;;  %v2949_v44 = vadd.f32 %v5859_v5, %v2948_v27 }
 0x79b   : > { %v3038_v20 = vmul.f32 %v4592_v24, %v3037_v56  ;;  %v5930_v40 = vadd.f32 1.0, %v4598_v4  ;;  %vm3057_vm3 = vmor %vm3055_vm2, %vm3056_vm1  ;;  %v3068_v19 = vmul.f32 %v3003_v17, %v5780_v14  ;;  %v2957_v3 = vor.u32 1.1754944e-38, %v2956_v8 }
 0x79c   : > { %v3052_v21 = vsub.f32 1.0, %v3051_v31  ;;  %v2963_v45 = vmul.f32 %v5885_v57, %v2962_v35  ;;  %v2953_v49 = vsel %vm5947_vm6, %v5859_v5, %v2949_v44  ;;  %v3016_v53 = vand.u32 2147483648, %v5893_v52 }
 0x79d   : > { %v3039_v29 = vadd.f32 %v4592_v24, %v3038_v20  ;;  %v4600_v42 = vpop.eup %4599  ;;  %4601 = vrcp.f32 %v5930_v40  ;;  %v3014_v14 = vand.u32 2147483647, %v5893_v52  ;;  %vm2955_vm8 = vcmp.eq.f32.partialorder %v2954_v28, 8.507059e+37 }
 0x79e   : > { %v3053_v34 = vmul.f32 %v4596_v47, %v3052_v21  ;;  %v3006_v12 = vmul.f32 %v4600_v42, %v5893_v52  ;;  %vm3011_vm7 = vweird.f32 %v4600_v42  ;;  %v2964_v55 = vadd.f32 %v5885_v57, %v2963_v45 }
 0x79f   : > { %v3043_v30 = vsel %vm3042_vm0, %v4592_v24, %v3039_v29  ;;  %vm2966_vm9 = vweird.f32 %v5885_v57  ;;  %vm3010_vm10 = vweird.f32 %v5893_v52  ;;  %vm2965_vm11 = vweird.f32 %v5848_v10 }
 0x7a0   : > { %v3048_v33 = vsel %vm5917_vm15, %v3047_v62, %v3043_v30  ;;  %v3054_v41 = vadd.f32 %v4596_v47, %v3053_v34  ;;  %v3007_v37 = vsub.f32 1.0, %v3006_v12  ;;  %v2971_v63 = vand.u32 2147483648, %v5848_v10  ;;  %vm3012_vm12 = vmor %vm3010_vm10, %vm3011_vm7  ;;  %v4528_v62 = vld [vmem:[%s805_s1] ss:$0 sm:$0xff]  ;;  %s3402_s1 = sld [smem:[#allocation4 + %s6184_s2]] (!%p4259_p1) }
 0x7a1   : > { %v3071_v60 = vmul.f32 %v3048_v33, %v5802_v43  ;;  %v3017_v0 = vor.u32 1.1754944e-38, %v3016_v53  ;;  %vm5963_vm13 = vmor %vm2965_vm11, %vm2966_vm9  ;;  %v2969_v56 = vand.u32 2147483647, %v5848_v10  ;;  %vm3015_vm14 = vcmp.eq.f32.partialorder %v3014_v14, 8.507059e+37 }
 0x7a2   : > { %v3058_v39 = vsel %vm3057_vm3, %v4596_v47, %v3054_v41  ;;  %v3008_v61 = vmul.f32 %v4600_v42, %v3007_v37  ;;  %v2968_v31 = vsel %vm5963_vm13, %v5885_v57, %v2964_v55  ;;  %v3031_v20 = vand.u32 2147483648, %v5930_v40 }
 0x7a3   : > { %v3075_v46 = vpack.c.bf16 %v3071_v60, %v3067_v32  ;;  %v3063_v48 = vsel %vm3060_vm5, %v3062_v26, %v3058_v39  ;;  %v4602_v16 = vpop.eup %4601  ;;  %v3029_v15 = vand.u32 2147483647, %v5930_v40  ;;  %v2972_v21 = vor.u32 1.1754944e-38, %v2971_v63 }
 0x7a4   : > { %v3072_v24 = vmul.f32 %v3063_v48, %v5804_v58  ;;  %v2958_v58 = vsel %vm2955_vm8, %v2957_v3, %v2953_v49  ;;  %v3009_v47 = vadd.f32 %v4600_v42, %v3008_v61  ;;  %v3021_v5 = vmul.f32 %v4602_v16, %v5930_v40 }
 0x7a5   : > { %3373 = vmatmul.bf16.vlgmr.msra.gmra.mxu0 %v3075_v46  ;;  %v3065_v52 = vmul.f32 %v2958_v58, %v5792_v36  ;;  %vm3026_vm15 = vweird.f32 %v4602_v16  ;;  %vm2970_vm0 = vcmp.eq.f32.partialorder %v2969_v56, 8.507059e+37  ;;  %vm3025_vm1 = vweird.f32 %v5930_v40 }
 0x7a6   : > { %v3076_v2 = vpack.c.bf16 %v3072_v24, %v3068_v19  ;;  %v3013_v8 = vsel %vm3012_vm12, %v4600_v42, %v3009_v47  ;;  %v3022_v23 = vsub.f32 1.0, %v3021_v5  ;;  %v2973_v36 = vsel %vm2970_vm0, %v2972_v21, %v2968_v31  ;;  %vm3027_vm2 = vmor %vm3025_vm1, %vm3026_vm15 }
 0x7a7   : > { %v3018_v6 = vsel %vm3015_vm14, %v3017_v0, %v3013_v8  ;;  %v3032_v27 = vor.u32 1.1754944e-38, %v3031_v20  ;;  %vm3030_vm3 = vcmp.eq.f32.partialorder %v3029_v15, 8.507059e+37 }
 0x7a8   : > { %3387 = vmatmul.bf16.vlgmr.msrb.gmra.mxu1 %v3076_v2  ;;  %v3069_v9 = vmul.f32 %v3018_v6, %v5816_v51  ;;  %v3023_v11 = vmul.f32 %v4602_v16, %v3022_v23  ;;  %v3066_v51 = vmul.f32 %v2973_v36, %v5796_v22 }
 0x7aa   : > { %v3073_v10 = vpack.c.bf16 %v3069_v9, %v3065_v52  ;;  %v3024_v25 = vadd.f32 %v4602_v16, %v3023_v11 }
 0x7ac   : > { %v3028_v57 = vsel %vm3027_vm2, %v4602_v16, %v3024_v25  ;;  %3345 = vmatmul.bf16.vlgmr.msra.gmra.mxu2 %v3073_v10 }
 0x7ad   : > { %v3033_v29 = vsel %vm3030_vm3, %v3032_v27, %v3028_v57 }
 0x7ae   : > { %v3070_v38 = vmul.f32 %v3033_v29, %v5842_v50 }
 0x7b0   : > { %v3074_v4 = vpack.c.bf16 %v3070_v38, %v3066_v51 }
 0x7b2   : > { %3359 = vmatmul.bf16.vlgmr.msrb.gmra.mxu3 %v3074_v4 }
 0x822   : > { %v3374_v35 = vpop.f32.mrf.mxu0 }
 0x825   : > { %v3388_v32 = vpop.f32.mrf.mxu1 }
 0x82a   : > { %v3376_v60 = vpop.f32.mrf.mxu0 }
 0x82d   : > { %v3390_v39 = vpop.f32.mrf.mxu1 }
 0x82f   : > { %v3346_v34 = vpop.f32.mrf.mxu2 }
 0x830   : > { %v3347_v59 = vadd.f32 %v4528_v62, %v3346_v34 }
 0x835   : > { %v3360_v30 = vpop.f32.mrf.mxu3 }
 0x836   : > { %v3361_v40 = vadd.f32 %v3360_v30, %v3347_v59 }
 0x837   : > { %v3348_v17 = vpop.f32.mrf.mxu2 }
 0x838   : > { %v3375_v33 = vadd.f32 %v3374_v35, %v3361_v40  ;;  %v3349_v42 = vadd.f32 %v4528_v62, %v3348_v17 }
 0x83a   : > { %v3389_v41 = vadd.f32 %v3388_v32, %v3375_v33 }
 0x83c   : > { %v3393_v22 = vadd.f32 %v3389_v41, %v5668_v54 }
 0x83d   : > { %v3362_v50 = vpop.f32.mrf.mxu3 }
 0x83e   : > { %3395 = vst [vmem:[#allocation2] sm:$0xff] %v3393_v22  ;;  %v3363_v44 = vadd.f32 %v3362_v50, %v3349_v42 }
 0x840   : > { %v3377_v26 = vadd.f32 %v3376_v60, %v3363_v44 }
 0x842   : > { %v3391_v12 = vadd.f32 %v3390_v39, %v3377_v26  ;;  %3400 = sbr.rel (%p4259_p1) target bundleno = 2673 (0xa71), region = 96 }
 0x844   : > { %v3394_v28 = vadd.f32 %v3391_v12, %v5671_v7 }
 0x846   : > { %3396 = vst [vmem:[#allocation2 + $0x8] sm:$0xff] %v3394_v28 }
 0x847   : > { %v3403_v45 = vstv %s3402_s1  ;;  %v3416_v54 = vstv %s3415_s18  ;;  %vm3427_vm6 = vcmask 1040384   ;;  %vm3431_vm7 = vcmask 1041408   ;;  %v4404_v56 = vld [vmem:[%s6185_s19 + $0x30] sm:$0xff]  ;;  %v4403_v8 = vld [vmem:[%s6185_s19 + $0x28] sm:$0xff] }
 0x848   : > { %vm3404_vm4 = vcmp.eq.s32.totalorder %v5370_v1, %v3403_v45  ;;  %vm3417_vm5 = vcmp.eq.s32.totalorder %v5370_v1, %v3416_v54  ;;  %v4405_v1 = vld [vmem:[%s6185_s19 + $0x38] sm:$0xff]  ;;  %v4402_v23 = vld [vmem:[%s6185_s19 + $0x20] sm:$0xff]  ;;  %v4400_v31 = vld [vmem:[%s6185_s19 + $0x10] sm:$0xff] }
 0x849   : > { %v3407_v46 = vsel %vm3404_vm4, %v3393_v22, 0.0  ;;  %v3420_v19 = vsel %vm3417_vm5, %v3394_v28, 0.0  ;;  %3527 = vmatpush.bf16.msra.mxu0 %v4405_v1  ;;  %v4401_v52 = vld [vmem:[%s6185_s19 + $0x18] sm:$0xff]  ;;  %v4399_v6 = vld [vmem:[%s6185_s19 + $0x8] sm:$0xff]  ;;  %v4398_v20 = vld [vmem:[%s6185_s19] sm:$0xff] }
 0x84a   : > { %v3408_v48 = vrot.slane %v3407_v46, 4  ;;  %v3421_v43 = vrot.slane %v3420_v19, 4  ;;  %v4605_v29 = vld [vmem:[%s6186_s0] ss:$0 sm:$0xff] }
 0x84c   : > { %v3409_v7 = vadd.f32 %v3408_v48, %v3407_v46  ;;  %v3422_v24 = vadd.f32 %v3421_v43, %v3420_v19 }
 0x84d   : > { %3528 = vmatpush.bf16.msra.mxu0 %v4404_v56 }
 0x84e   : > { %v3410_v37 = vrot.slane %v3409_v7, 2  ;;  %v3423_v49 = vrot.slane %v3422_v24, 2 }
 0x850   : > { %v3411_v3 = vadd.f32 %v3410_v37, %v3409_v7  ;;  %v3424_v53 = vadd.f32 %v3423_v49, %v3422_v24 }
 0x851   : > { %3529 = vmatpush.bf16.msra.mxu0 %v4403_v8 }
 0x852   : > { %v3412_v2 = vrot.slane %v3411_v3, 1  ;;  %v3425_v61 = vrot.slane %v3424_v53, 1 }
 0x854   : > { %v3413_v14 = vadd.f32 %v3412_v2, %v3411_v3  ;;  %v3426_v16 = vadd.f32 %v3425_v61, %v3424_v53 }
 0x855   : > { %3530 = vmatpush.bf16.msra.mxu0 %v4402_v23 }
 0x856   : > { %v3428_v55 = vsel %vm3427_vm6, %v3413_v14, %v3426_v16 }
 0x857   : > { %v3432_v58 = vsel %vm3431_vm7, %v3428_v55, 0.0 }
 0x858   : > { %3433 = vadd.xlane.f32.xlu0 %v3432_v58 }
 0x859   : > { %3531 = vmatpush.bf16.msra.mxu0 %v4401_v52 }
 0x85d   : > { %3532 = vmatpush.bf16.msra.mxu0 %v4400_v31 }
 0x861   : > { %3533 = vmatpush.bf16.msra.mxu0 %v4399_v6 }
 0x865   : > { %3534 = vmatpush.bf16.msra.mxu0 %v4398_v20 }
 0x8cb   : > { %v3434_v47 = vpop.xlane.xlu0 %3433 }
 0x8cc   : > { %v3435_v5 = vmul.f32 %v3434_v47, %v5014_v13 }
 0x8ce   : > { %v3436_v63 = vsub.f32 %v3428_v55, %v3435_v5 }
 0x8d0   : > { %v3437_v0 = vmul.f32 %v3436_v63, %v3436_v63 }
 0x8d2   : > { %v3438_v18 = vsel %vm3431_vm7, %v3437_v0, 0.0 }
 0x8d3   : > { %3439 = vadd.xlane.f32.xlu0 %v3438_v18 }
 0x946   : > { %v3440_v9 = vpop.xlane.xlu0 %3439 }
 0x947   : > { %v3441_v11 = vmul.f32 %v3440_v9, %v5014_v13  ;;  %v4606_v13 = vld [vmem:[%s6187_s3] ss:$0 sm:$0xff] }
 0x949   : > { %v3442_v15 = vadd.f32 1e-05, %v3441_v11 }
 0x94b   : > { %4607 = vrsqrt.f32 %v3442_v15  ;;  %vm3449_vm9 = vweird.f32 %v3442_v15 }
 0x951   : > { %v4608_v21 = vpop.eup %4607 }
 0x952   : > { %v3444_v10 = vmul.f32 %v4608_v21, %v3442_v15  ;;  %vm3450_vm8 = vweird.f32 %v4608_v21 }
 0x953   : > { %vm3451_vm10 = vmor %vm3449_vm9, %vm3450_vm8 }
 0x954   : > { %v3445_v25 = vmul.f32 %v4608_v21, %v3444_v10 }
 0x956   : > { %v3446_v36 = vmul.f32 0.5, %v3445_v25 }
 0x958   : > { %v3447_v27 = vsub.f32 1.5, %v3446_v36 }
 0x95a   : > { %v3448_v57 = vmul.f32 %v4608_v21, %v3447_v27 }
 0x95c   : > { %v3452_v51 = vsel %vm3451_vm10, %v4608_v21, %v3448_v57 }
 0x95d   : > { %v3453_v38 = vmul.f32 %v3452_v51, %v3436_v63 }
 0x95f   : > { %v3457_v4 = vmul.f32 %v4605_v29, %v3453_v38 }
 0x961   : > { %v3461_v62 = vadd.f32 %v4606_v13, %v3457_v4 }
 0x963   : > { %v3462_v34 = vpack.c.bf16 %v3461_v62, %v3461_v62 }
 0x965   : > { %3535 = vmatmul.bf16.vlgmr.msra.gmra.mxu0 %v3462_v34 }
 0x9e2   : > { %v3536_v59 = vpop.f32.mrf.mxu0 }
 0x9e3   : > { %v3555_v35 = vrot.slane %v3536_v59, 1  ;;  %3557 = vst [vmem:[%s5006_s7] sm:$0x1] %v3536_v59  ;;  %v3540_v30 = vmul.f32 %v3536_v59, %v3536_v59 }
 0x9e5   : > { %3558 = vst [vmem:[%s5006_s7 + $0x1] sm:$0x1] %v3555_v35  ;;  %v3541_v40 = vsel %vm3431_vm7, %v3540_v30, 0.0 }
 0x9e6   : > { %3542 = vadd.xlane.f32.xlu1 %v3541_v40 }
 0x9ea   : > { %v3538_v32 = vpop.f32.mrf.mxu0 }
 0xa59   : > { %v3543_v17 = vpop.xlane.xlu1 %3542 }
 0xa5a   : > { %4609 = vrsqrt.f32 %v3543_v17  ;;  %vm3550_vm12 = vweird.f32 %v3543_v17 }
 0xa60   : > { %v4610_v33 = vpop.eup %4609 }
 0xa61   : > { %v3545_v41 = vmul.f32 %v4610_v33, %v3543_v17  ;;  %vm3551_vm11 = vweird.f32 %v4610_v33 }
 0xa62   : > { %vm3552_vm13 = vmor %vm3550_vm12, %vm3551_vm11 }
 0xa63   : > { %v3546_v42 = vmul.f32 %v4610_v33, %v3545_v41 }
 0xa65   : > { %v3547_v22 = vmul.f32 0.5, %v3546_v42 }
 0xa67   : > { %v3548_v50 = vsub.f32 1.5, %v3547_v22 }
 0xa69   : > { %v3549_v44 = vmul.f32 %v4610_v33, %v3548_v50 }
 0xa6b   : > { %v3553_v60 = vsel %vm3552_vm13, %v4610_v33, %v3549_v44 }
 0xa6c   : > { %v3559_v26 = vmul.f32 %v3553_v60, %v3536_v59 }
 0xa6e   : > { %v3561_v39 = vrot.slane %v3559_v26, 1  ;;  %3563 = vst [vmem:[%s5008_s27] sm:$0x1] %v3559_v26 }
 0xa70   : > { %3564 = vst [vmem:[%s5008_s27 + $0x1] sm:$0x1] %v3561_v39 }
 0xa71 PF: > { %s6188_s30 = sld [smem:[#allocation24_spill]]  ;;  %s3582_s15 = sshll.u32 %s5006_s7, 4  ;;  %s3583_s15 = int_to_ptr.vmem [resolvable:$true] %s3582_s15 }
 0xa72   : > { %s6189_s22 = sld [smem:[#allocation35_spill]] }
 0xa73   : > { %s6191_s24 = sld [smem:[#allocation23_spill]] }
 0xa78   : > { %s6190_s20 = smov %s6189_s22  ;;  %s3581_s29 = scalar_lea.hbm %s6189_s22, %s6188_s30 }
 0xa79   : > { %s3584_s16 = sshll.u32 %s3581_s29, 4  ;;  %s3566_s25 = scalar_lea.sflag [#allocation6], %s6191_s24  ;;  %s3585_s16 = int_to_ptr.hbm [resolvable:$true] %s3584_s16 }
 0xa7a   : > { %s4637_s26 = sshra.s32 %s3585_s16, 4  ;;  %s4643_s1 = scalar_lea.hbm %s6190_s20, 4  ;;  %s4638_s26 = int_to_ptr.hbm [resolvable:$true] %s4637_s26 }
 0xa7b   : > { %s4639_s21 = scalar_lea.hbm %s4638_s26, 2  ;;  %p4644_p6 = scmp.lt.s32.totalorder %s4638_s26, %s6190_s20 }
 0xa7c   : > { %p4640_p2 = scmp.ne.s32.totalorder %s4638_s26, %s4639_s21  ;;  %p4645_p7 = scmp.lt.s32.totalorder %s4643_s1, %s4639_s21 }
 0xa7e   : > { %p4641_p4 = pnand %p4640_p2, %p4912_p3  ;;  %p4646_p8 = por %p4645_p7, %p4644_p6 }
 0xa80   : > { %p4642_p5 = pneg %p4641_p4 }
 0xa82   : > { %p4647_p10 = pnand %p4646_p8, %p4642_p5 }
 0xa84   : > { %4650 = shalt.err (!%p4647_p10)
}
 0xa85   : > { %s4760_s7 = smov 16   ;;  %s4761_s23 = smov 1  }
 0xa86   : > { %4408 = dma.vmem_to_hbm [thread:$0]  (%p4912_p3), %s3583_s15, 32, %s3585_s16, %s3566_s25, %s4760_s7, %s4760_s7, %s4761_s23  }
 0xa87   : > { %s6193_s13 = sld [smem:[#allocation36_spill]]  ;;  %s3598_s28 = sshll.u32 %s5008_s27, 4  ;;  %s3599_s28 = int_to_ptr.vmem [resolvable:$true] %s3598_s28 }
 0xa88   : > { %s3571_s26 = scalar_lea.sflag [#allocation8], %s6191_s24 }
 0xa8d   : > { %s6194_s29 = smov %s6193_s13  ;;  %s3597_s22 = scalar_lea.hbm %s6193_s13, %s6188_s30 }
 0xa8e   : > { %s3600_s2 = sshll.u32 %s3597_s22, 4  ;;  %s4671_s15 = scalar_lea.hbm %s6194_s29, 4  ;;  %s3601_s2 = int_to_ptr.hbm [resolvable:$true] %s3600_s2 }
 0xa8f   : > { %s4665_s21 = sshra.s32 %s3601_s2, 4  ;;  %s4666_s21 = int_to_ptr.hbm [resolvable:$true] %s4665_s21 }
 0xa90   : > { %s4667_s1 = scalar_lea.hbm %s4666_s21, 2  ;;  %p4672_p0 = scmp.lt.s32.totalorder %s4666_s21, %s6194_s29 }
 0xa91   : > { %p4668_p11 = scmp.ne.s32.totalorder %s4666_s21, %s4667_s1  ;;  %p4673_p1 = scmp.lt.s32.totalorder %s4671_s15, %s4667_s1 }
 0xa93   : > { %p4669_p12 = pnand %p4668_p11, %p4912_p3  ;;  %p4674_p2 = por %p4673_p1, %p4672_p0 }
 0xa95   : > { %p4670_p13 = pneg %p4669_p12 }
 0xa97   : > { %p4675_p4 = pnand %p4674_p2, %p4670_p13 }
 0xa99   : > { %4678 = shalt.err (!%p4675_p4)
}
 0xa9a   : > { %4409 = dma.vmem_to_hbm [thread:$0]  (%p4912_p3), %s3599_s28, 32, %s3601_s2, %s3571_s26, %s4760_s7, %s4760_s7, %s4761_s23  }
 0xa9b PF: > { %s6195_s27 = sld [smem:[#allocation17_spill]] }
 0xa9c   : > { %s6196_s30 = sld [smem:[#allocation12_spill]] }
 0xaa1   : > { %p4419_p5 = scmp.ge.s32.totalorder %s6195_s27, 2 }
 0xaa2   : > { %s3615_s3 = sand.u32 1, %s6196_s30  }
 0xaa3   : > { %p4413_p6 = pnand %p4419_p5, %p4922_p9  ;;  %s3616_s17 = scalar_lea.sflag [#allocation6], %s3615_s3 }
 0xaa5   : > { %p4414_p7 = pneg %p4413_p6 }
 0xaa7   : > { %4714 = dma.done.wait (%p4414_p7), %s3616_s17, 32  }
 0xaa8   : > { %4716 = vsyncadd (%p4414_p7), %s3616_s17, 4294967264  ;;  %s3626_s13 = scalar_lea.sflag [#allocation8], %s3615_s3 }
 0xaa9   : > { %4718 = dma.done.wait (%p4414_p7), %s3626_s13, 32  }
 0xaaa   : > { %4720 = vsyncadd (%p4414_p7), %s3626_s13, 4294967264  ;;  %s44_s3 = sadd.s32 1, %s6195_s27   ;;  %s6198_s1 = sld [smem:[#allocation13_spill]] }
 0xaab   : > { %p41_p8 = scmp.ge.s32.totalorder %s44_s3, 6   ;;  %s6199_s22 = sld [smem:[#allocation14_spill]] }
 0xaac   : > { %s6200_s2 = sld [smem:[#allocation22_spill]] }
 0xaad   : > { %s6201_s23 = sld [smem:[#allocation15_spill]]  ;;  %43 = sbr.rel (!%p41_p8) target bundleno = 31 (0x1f), region = 184 }
 0xaae   : > { %s6202_s24 = sld [smem:[#allocation16_spill]] }
 0xaaf   : > { %s6203_s25 = sld [smem:[#allocation18_spill]] }
 0xab0   : > { %s6204_s13 = sld [smem:[#allocation20_spill]] }
 0xab2   :  { %3632 = vsyncpa [#allocation6], 1 }
 0xab3   :  { %3634 = vsyncpa [#allocation6 + $0x1], 1 }
 0xab4   :  { %3635 = vsyncpa [#allocation8], 1 }
 0xab5   :  { %3637 = vsyncpa [#allocation8 + $0x1], 1 }

</bundles_post_ra>
